<compile_context>
chip_gen: v7x
topology: tpu7x:2x2x1
jax: 0.10.0
libtpu: 0.0.40
codegen_flags: <defaults>
</compile_context>

<pallas_src>
import math
import functools

import jax
import jax.numpy as jnp
from jax import lax
from jax.experimental import pallas as pl
from jax.experimental.pallas import tpu as pltpu

# ----------------------- scaled-down BERT config -----------------------------
VOCAB = 100
HIDDEN = 128                 # stands in for BERT_HIDDEN_SIZE = 768
N_LAYERS = 2
N_HEADS = 4
HEAD_DIM = HIDDEN // N_HEADS
INTERMEDIATE = 4 * HIDDEN
MAX_POS = 32
N_SENTIMENT_CLASSES = 5
N_STS_CLASSES = 6
LN_EPS = 1e-12
HEAD_PAD = 128               # task-head outputs padded to a lane-dense 128-wide slab

_VMEM = pl.BlockSpec(memory_space=pltpu.MemorySpace.VMEM)


# ------------------------------ in-kernel helpers ------------------------------
def _ln(x, g, b):
    mu = jnp.mean(x, axis=-1, keepdims=True)
    var = jnp.mean(jnp.square(x - mu), axis=-1, keepdims=True)
    return (x - mu) * lax.rsqrt(var + LN_EPS) * g + b


def _gelu(x):
    # exact-erf GELU, as in BERT
    return 0.5 * x * (1.0 + lax.erf(x * (1.0 / math.sqrt(2.0))))


# --------------------- fused whole-forward kernel (one pallas_call) -------------
def _forward_kernel(x_ref, bias_ref, emb_g_ref, emb_b_ref,
                    wqkv_ref, bqkv_ref, wao_ref, bao_ref, ln1g_ref, ln1b_ref,
                    wi_ref, bi_ref, wo_ref, bo_ref, ln2g_ref, ln2b_ref,
                    pool_w_ref, pool_b_ref, head_w_ref, head_b_ref,
                    o_ref, *, batch, seq, n_heads, head_dim, n_layers, pair_half):
    H = n_heads * head_dim

    # ---- embedding LayerNorm ----
    x = _ln(x_ref[...], emb_g_ref[...], emb_b_ref[...])            # (M, H), M = B*S

    bias3 = bias_ref[...][:, None, :]                               # (B,1,S) hoisted once
    scale = 1.0 / math.sqrt(head_dim)

    # ---- encoder layers (static unrolled loop; params stacked along layer axis) ----
    for l in range(n_layers):
        # fused QKV projection: one MXU call with N = 3H
        qkv = jnp.dot(x, wqkv_ref[l], preferred_element_type=jnp.float32) + bqkv_ref[l]
        qkv3 = qkv.reshape(batch, seq, 3 * H)                       # sublane-only reshape

        # per-head attention, batched over B via einsum (static head loop)
        ctx_heads = []
        for h in range(n_heads):
            lo = h * head_dim
            qh = qkv3[:, :, lo:lo + head_dim]                       # (B, S, HD)
            kh = qkv3[:, :, H + lo:H + lo + head_dim]
            vh = qkv3[:, :, 2 * H + lo:2 * H + lo + head_dim]
            s = jnp.einsum('bqd,bkd->bqk', qh, kh,
                           preferred_element_type=jnp.float32) * scale
            s = s + bias3                                           # additive attention mask
            s = s - jnp.max(s, axis=-1, keepdims=True)
            p = jnp.exp(s)
            p = p * pl.reciprocal(jnp.sum(p, axis=-1, keepdims=True), approx=True)
            ctx_heads.append(jnp.einsum('bqk,bkd->bqd', p, vh,
                                        preferred_element_type=jnp.float32))
        ctx = jnp.concatenate(ctx_heads, axis=-1).reshape(batch * seq, H)

        # attention output projection + residual + LN
        attn_out = jnp.dot(ctx, wao_ref[l], preferred_element_type=jnp.float32) + bao_ref[l]
        h1 = _ln(attn_out + x, ln1g_ref[l], ln1b_ref[l])

        # FFN (GELU) + residual + LN
        inter = _gelu(jnp.dot(h1, wi_ref[l], preferred_element_type=jnp.float32) + bi_ref[l])
        ffn = jnp.dot(inter, wo_ref[l], preferred_element_type=jnp.float32) + bo_ref[l]
        x = _ln(ffn + h1, ln2g_ref[l], ln2b_ref[l])

    # ---- CLS-token extraction + tanh pooler (BertModel 'pooler_output') ----
    cls = x.reshape(batch, seq, H)[:, 0, :]                          # (B, H)
    pooled = jnp.tanh(jnp.dot(cls, pool_w_ref[...],
                              preferred_element_type=jnp.float32) + pool_b_ref[...])

    # ---- task head (lane-dense 128-wide padded output) ----
    if pair_half is None:
        o_ref[...] = jnp.dot(pooled, head_w_ref[...],
                             preferred_element_type=jnp.float32) + head_b_ref[...]
    else:
        # pair head on concat([e1, e2]) folded into two half-weight matmuls
        e1 = pooled[:pair_half]
        e2 = pooled[pair_half:]
        o_ref[...] = (jnp.dot(e1, head_w_ref[:H], preferred_element_type=jnp.float32)
                      + jnp.dot(e2, head_w_ref[H:], preferred_element_type=jnp.float32)
                      + head_b_ref[...])


def _multitask_forward(params, input_ids, attention_mask, head_wt, head_b, pair_half):
    """Embedding lookup in glue (XLA gather), then ONE fused Pallas kernel to logits."""
    B, S = input_ids.shape
    we = params["word_emb"][input_ids]                              # (B,S,H) gather (glue)
    pe = params["pos_emb"][:S][None, :, :]                          # (1,S,H)
    te = params["type_emb"][0][None, None, :]                       # token_type_ids = 0
    emb = (we + pe + te).reshape(B * S, HIDDEN).astype(jnp.float32)
    # additive attention bias precomputed once per forward, reused by every layer
    attn_bias = (1.0 - attention_mask.astype(jnp.float32)) * -10000.0   # (B,S)

    out_rows = B if pair_half is None else pair_half
    return pl.pallas_call(
        functools.partial(_forward_kernel, batch=B, seq=S, n_heads=N_HEADS,
                          head_dim=HEAD_DIM, n_layers=N_LAYERS, pair_half=pair_half),
        out_shape=jax.ShapeDtypeStruct((out_rows, HEAD_PAD), jnp.float32),
        in_specs=[_VMEM] * 20,
        out_specs=_VMEM,
    )(emb, attn_bias, params["emb_ln_g"], params["emb_ln_b"],
      params["wqkv_t"], params["bqkv"], params["wao_t"], params["bao"],
      params["ln1_g"], params["ln1_b"], params["wi_t"], params["bi"],
      params["wo_t"], params["bo"], params["ln2_g"], params["ln2_b"],
      params["pool_wt"], params["pool_b"], head_wt, head_b)


# --------------------------- MultitaskBERT task APIs -----------------------------
@jax.jit
def predict_sentiment(params, input_ids, attention_mask):
    # dropout_sentiment is identity in eval mode
    out = _multitask_forward(params, input_ids, attention_mask,
                             params["sent_wt"], params["sent_b"], pair_half=None)
    return out[:, :N_SENTIMENT_CLASSES]                             # (B, 5)


@jax.jit
def predict_paraphrase(params, ids1, mask1, ids2, mask2):
    B = ids1.shape[0]
    out = _multitask_forward(params,
                             jnp.concatenate([ids1, ids2], axis=0),
                             jnp.concatenate([mask1, mask2], axis=0),
                             params["para_wt"], params["para_b"], pair_half=B)
    return out[:, :1]                                               # (B, 1)


@jax.jit
def predict_similarity(params, ids1, mask1, ids2, mask2):
    B = ids1.shape[0]
    out = _multitask_forward(params,
                             jnp.concatenate([ids1, ids2], axis=0),
                             jnp.concatenate([mask1, mask2], axis=0),
                             params["sim_wt"], params["sim_b"], pair_half=B)
    return out[:, :N_STS_CLASSES]                                   # (B, 6)


# ------------------------------ param init / packing -----------------------------
def init_params(key):
    """PyTorch-convention (nn.Linear) weights with scaled-down BERT shapes."""
    def nrm(k, shape, std=0.02):
        return (std * jax.random.normal(k, shape)).astype(jnp.float32)

    keys = iter(jax.random.split(key, 256))
    params = {
        "word_emb": nrm(next(keys), (VOCAB, HIDDEN)),
        "pos_emb": nrm(next(keys), (MAX_POS, HIDDEN)),
        "type_emb": nrm(next(keys), (2, HIDDEN)),
        "emb_ln_g": jnp.ones((HIDDEN,), jnp.float32),
        "emb_ln_b": jnp.zeros((HIDDEN,), jnp.float32),
        "pool_w": nrm(next(keys), (HIDDEN, HIDDEN)),
        "pool_b": jnp.zeros((HIDDEN,), jnp.float32),
        "sent_w": nrm(next(keys), (N_SENTIMENT_CLASSES, HIDDEN)),
        "sent_b": jnp.zeros((N_SENTIMENT_CLASSES,), jnp.float32),
        "para_w": nrm(next(keys), (1, 2 * HIDDEN)),
        "para_b": jnp.zeros((1,), jnp.float32),
        "sim_w": nrm(next(keys), (N_STS_CLASSES, 2 * HIDDEN)),
        "sim_b": jnp.zeros((N_STS_CLASSES,), jnp.float32),
        "layers": [],
    }
    for _ in range(N_LAYERS):
        lp = {
            "q_w": nrm(next(keys), (HIDDEN, HIDDEN)), "q_b": jnp.zeros((HIDDEN,), jnp.float32),
            "k_w": nrm(next(keys), (HIDDEN, HIDDEN)), "k_b": jnp.zeros((HIDDEN,), jnp.float32),
            "v_w": nrm(next(keys), (HIDDEN, HIDDEN)), "v_b": jnp.zeros((HIDDEN,), jnp.float32),
            "ao_w": nrm(next(keys), (HIDDEN, HIDDEN)), "ao_b": jnp.zeros((HIDDEN,), jnp.float32),
            "ln1_g": jnp.ones((HIDDEN,), jnp.float32), "ln1_b": jnp.zeros((HIDDEN,), jnp.float32),
            "i_w": nrm(next(keys), (INTERMEDIATE, HIDDEN)), "i_b": jnp.zeros((INTERMEDIATE,), jnp.float32),
            "o_w": nrm(next(keys), (HIDDEN, INTERMEDIATE)), "o_b": jnp.zeros((HIDDEN,), jnp.float32),
            "ln2_g": jnp.ones((HIDDEN,), jnp.float32), "ln2_b": jnp.zeros((HIDDEN,), jnp.float32),
        }
        params["layers"].append(lp)
    return params


def _pack_head(w, b):
    """PyTorch Linear (n_out, in) -> transposed + zero-padded to a 128-lane-dense slab."""
    n_out, in_dim = w.shape
    wt = jnp.zeros((in_dim, HEAD_PAD), jnp.float32).at[:, :n_out].set(w.T)
    bp = jnp.zeros((1, HEAD_PAD), jnp.float32).at[0, :n_out].set(b)
    return wt, bp


def pack_params(p):
    """One-time repack: transpose weights (kernels do plain x @ W), fuse QKV, pad heads,
    and stack per-layer params along a leading layer axis for the single fused kernel."""
    sent_wt, sent_b = _pack_head(p["sent_w"], p["sent_b"])
    para_wt, para_b = _pack_head(p["para_w"], p["para_b"])
    sim_wt, sim_b = _pack_head(p["sim_w"], p["sim_b"])

    layers = p["layers"]

    def stk(fn):
        return jnp.stack([fn(lp) for lp in layers], axis=0)

    packed = {
        "word_emb": p["word_emb"], "pos_emb": p["pos_emb"], "type_emb": p["type_emb"],
        "emb_ln_g": p["emb_ln_g"].reshape(1, HIDDEN),
        "emb_ln_b": p["emb_ln_b"].reshape(1, HIDDEN),
        "pool_wt": p["pool_w"].T, "pool_b": p["pool_b"].reshape(1, HIDDEN),
        "sent_wt": sent_wt, "sent_b": sent_b,
        "para_wt": para_wt, "para_b": para_b,
        "sim_wt": sim_wt, "sim_b": sim_b,
        # stacked per-layer params: leading axis = layer
        "wqkv_t": stk(lambda lp: jnp.concatenate([lp["q_w"], lp["k_w"], lp["v_w"]], axis=0).T),
        "bqkv": stk(lambda lp: jnp.concatenate([lp["q_b"], lp["k_b"], lp["v_b"]],
                                               axis=0).reshape(1, 3 * HIDDEN)),
        "wao_t": stk(lambda lp: lp["ao_w"].T),
        "bao": stk(lambda lp: lp["ao_b"].reshape(1, HIDDEN)),
        "ln1_g": stk(lambda lp: lp["ln1_g"].reshape(1, HIDDEN)),
        "ln1_b": stk(lambda lp: lp["ln1_b"].reshape(1, HIDDEN)),
        "wi_t": stk(lambda lp: lp["i_w"].T),
        "bi": stk(lambda lp: lp["i_b"].reshape(1, INTERMEDIATE)),
        "wo_t": stk(lambda lp: lp["o_w"].T),
        "bo": stk(lambda lp: lp["o_b"].reshape(1, HIDDEN)),
        "ln2_g": stk(lambda lp: lp["ln2_g"].reshape(1, HIDDEN)),
        "ln2_b": stk(lambda lp: lp["ln2_b"].reshape(1, HIDDEN)),
    }
    return packed


# ------------------------------------ main ---------------------------------------
if __name__ == "__main__":
    B, S = 2, 8
    key = jax.random.PRNGKey(0)
    kp, k1, k2 = jax.random.split(key, 3)

    params = pack_params(init_params(kp))

    input_ids_1 = jax.random.randint(k1, (B, S), 0, VOCAB, dtype=jnp.int32)
    input_ids_2 = jax.random.randint(k2, (B, S), 0, VOCAB, dtype=jnp.int32)
    # attention masks: sentence 0 full length, sentence 1 has last 2 tokens padded
    attn_mask_1 = jnp.array([[1] * S, [1] * (S - 2) + [0, 0]], dtype=jnp.int32)
    attn_mask_2 = jnp.ones((B, S), dtype=jnp.int32)

    sent_logits = predict_sentiment(params, input_ids_1, attn_mask_1)
    para_logits = predict_paraphrase(params, input_ids_1, attn_mask_1, input_ids_2, attn_mask_2)
    sim_logits = predict_similarity(params, input_ids_1, attn_mask_1, input_ids_2, attn_mask_2)

    jax.block_until_ready((sent_logits, para_logits, sim_logits))

    assert sent_logits.shape == (B, N_SENTIMENT_CLASSES)
    assert para_logits.shape == (B, 1)
    assert sim_logits.shape == (B, N_STS_CLASSES)
    assert bool(jnp.all(jnp.isfinite(sent_logits)))
    assert bool(jnp.all(jnp.isfinite(para_logits)))
    assert bool(jnp.all(jnp.isfinite(sim_logits)))

    print("KERNEL_OK")
</pallas_src>

<mosaic_0001>
module attributes {stable_mosaic.version = 11 : i64} {
  func.func @_forward_kernel(%arg0: memref<16x128xf32, #tpu.memory_space<vmem>>, %arg1: memref<2x8xf32, #tpu.memory_space<vmem>>, %arg2: memref<1x128xf32, #tpu.memory_space<vmem>>, %arg3: memref<1x128xf32, #tpu.memory_space<vmem>>, %arg4: memref<2x128x384xf32, #tpu.memory_space<vmem>>, %arg5: memref<2x1x384xf32, #tpu.memory_space<vmem>>, %arg6: memref<2x128x128xf32, #tpu.memory_space<vmem>>, %arg7: memref<2x1x128xf32, #tpu.memory_space<vmem>>, %arg8: memref<2x1x128xf32, #tpu.memory_space<vmem>>, %arg9: memref<2x1x128xf32, #tpu.memory_space<vmem>>, %arg10: memref<2x128x512xf32, #tpu.memory_space<vmem>>, %arg11: memref<2x1x512xf32, #tpu.memory_space<vmem>>, %arg12: memref<2x512x128xf32, #tpu.memory_space<vmem>>, %arg13: memref<2x1x128xf32, #tpu.memory_space<vmem>>, %arg14: memref<2x1x128xf32, #tpu.memory_space<vmem>>, %arg15: memref<2x1x128xf32, #tpu.memory_space<vmem>>, %arg16: memref<128x128xf32, #tpu.memory_space<vmem>>, %arg17: memref<1x128xf32, #tpu.memory_space<vmem>>, %arg18: memref<128x128xf32, #tpu.memory_space<vmem>>, %arg19: memref<1x128xf32, #tpu.memory_space<vmem>>, %arg20: memref<2x128xf32, #tpu.memory_space<vmem>>) attributes {dimension_semantics = [], scalar_prefetch = 0 : i64, scratch_operands = 0 : i64, tpu.core_type = #tpu.core_type<tc>} {
    %c0 = arith.constant 0 : index
    %c0_0 = arith.constant 0 : index
    %0 = vector.load %arg0[%c0, %c0_0] : memref<16x128xf32, #tpu.memory_space<vmem>>, vector<16x128xf32>
    %c0_1 = arith.constant 0 : index
    %c0_2 = arith.constant 0 : index
    %1 = vector.load %arg2[%c0_1, %c0_2] : memref<1x128xf32, #tpu.memory_space<vmem>>, vector<1x128xf32>
    %c0_3 = arith.constant 0 : index
    %c0_4 = arith.constant 0 : index
    %2 = vector.load %arg3[%c0_3, %c0_4] : memref<1x128xf32, #tpu.memory_space<vmem>>, vector<1x128xf32>
    %cst = arith.constant dense<0.000000e+00> : vector<16xf32>
    %3 = vector.multi_reduction <add>, %0, %cst [1] : vector<16x128xf32> to vector<16xf32>
    %4 = vector.shape_cast %3 : vector<16xf32> to vector<16x1xf32>
    %cst_5 = arith.constant 1.280000e+02 : f32
    %5 = vector.broadcast %cst_5 : f32 to vector<16x1xf32>
    %6 = arith.divf %4, %5 : vector<16x1xf32>
    %7 = vector.broadcast %6 : vector<16x1xf32> to vector<16x128xf32>
    %8 = arith.subf %0, %7 : vector<16x128xf32>
    %9 = arith.mulf %8, %8 : vector<16x128xf32>
    %cst_6 = arith.constant dense<0.000000e+00> : vector<16xf32>
    %10 = vector.multi_reduction <add>, %9, %cst_6 [1] : vector<16x128xf32> to vector<16xf32>
    %11 = vector.shape_cast %10 : vector<16xf32> to vector<16x1xf32>
    %cst_7 = arith.constant 1.280000e+02 : f32
    %12 = vector.broadcast %cst_7 : f32 to vector<16x1xf32>
    %13 = arith.divf %11, %12 : vector<16x1xf32>
    %14 = vector.broadcast %6 : vector<16x1xf32> to vector<16x128xf32>
    %15 = arith.subf %0, %14 : vector<16x128xf32>
    %cst_8 = arith.constant 9.99999996E-13 : f32
    %16 = vector.broadcast %cst_8 : f32 to vector<16x1xf32>
    %17 = arith.addf %13, %16 : vector<16x1xf32>
    %18 = math.rsqrt %17 : vector<16x1xf32>
    %19 = vector.broadcast %18 : vector<16x1xf32> to vector<16x128xf32>
    %20 = arith.mulf %15, %19 : vector<16x128xf32>
    %21 = vector.broadcast %1 : vector<1x128xf32> to vector<16x128xf32>
    %22 = arith.mulf %20, %21 : vector<16x128xf32>
    %23 = vector.broadcast %2 : vector<1x128xf32> to vector<16x128xf32>
    %24 = arith.addf %22, %23 : vector<16x128xf32>
    %c0_9 = arith.constant 0 : index
    %c0_10 = arith.constant 0 : index
    %25 = vector.load %arg1[%c0_9, %c0_10] : memref<2x8xf32, #tpu.memory_space<vmem>>, vector<2x8xf32>
    %26 = vector.shape_cast %25 : vector<2x8xf32> to vector<2x1x8xf32>
    %c0_11 = arith.constant 0 : index
    %c0_12 = arith.constant 0 : index
    %c0_13 = arith.constant 0 : index
    %27 = vector.load %arg4[%c0_11, %c0_12, %c0_13] : memref<2x128x384xf32, #tpu.memory_space<vmem>>, vector<1x128x384xf32>
    %28 = vector.shape_cast %27 : vector<1x128x384xf32> to vector<128x384xf32>
    %cst_14 = arith.constant dense<0.000000e+00> : vector<16x384xf32>
    %29 = tpu.matmul %24, %28, %cst_14 {dimension_numbers = #tpu.dot_dimension_numbers<[1], [0], [0], [1], [0, 0, 1, 1], [], []>} : vector<16x128xf32>, vector<128x384xf32>, vector<16x384xf32> -> vector<16x384xf32>
    %c0_15 = arith.constant 0 : index
    %c0_16 = arith.constant 0 : index
    %c0_17 = arith.constant 0 : index
    %30 = vector.load %arg5[%c0_15, %c0_16, %c0_17] : memref<2x1x384xf32, #tpu.memory_space<vmem>>, vector<1x1x384xf32>
    %31 = vector.shape_cast %30 : vector<1x1x384xf32> to vector<1x384xf32>
    %32 = vector.broadcast %31 : vector<1x384xf32> to vector<16x384xf32>
    %33 = arith.addf %29, %32 : vector<16x384xf32>
    %34 = vector.shape_cast %33 : vector<16x384xf32> to vector<2x8x384xf32>
    %35 = vector.extract_strided_slice %34 {offsets = [0, 0, 0], sizes = [2, 8, 32], strides = [1, 1, 1]} : vector<2x8x384xf32> to vector<2x8x32xf32>
    %36 = vector.extract_strided_slice %34 {offsets = [0, 0, 128], sizes = [2, 8, 32], strides = [1, 1, 1]} : vector<2x8x384xf32> to vector<2x8x32xf32>
    %37 = vector.extract_strided_slice %34 {offsets = [0, 0, 256], sizes = [2, 8, 32], strides = [1, 1, 1]} : vector<2x8x384xf32> to vector<2x8x32xf32>
    "tpu.trace_start"() <{level = 10 : i32, message = "bqd,bkd->bqk"}> : () -> ()
    %cst_18 = arith.constant dense<0.000000e+00> : vector<2x8x8xf32>
    %38 = tpu.matmul %35, %36, %cst_18 {dimension_numbers = #tpu.dot_dimension_numbers<[2], [2], [1], [1], [0, 0, 0, 1, 1, 1], [0], [0]>} : vector<2x8x32xf32>, vector<2x8x32xf32>, vector<2x8x8xf32> -> vector<2x8x8xf32>
    "tpu.trace_stop"() : () -> ()
    %cst_19 = arith.constant 0.176776692 : f32
    %39 = vector.broadcast %cst_19 : f32 to vector<2x8x8xf32>
    %40 = arith.mulf %38, %39 : vector<2x8x8xf32>
    %41 = vector.broadcast %26 : vector<2x1x8xf32> to vector<2x8x8xf32>
    %42 = arith.addf %40, %41 : vector<2x8x8xf32>
    %cst_20 = arith.constant dense<0xFF800000> : vector<2x8xf32>
    %43 = vector.multi_reduction <maximumf>, %42, %cst_20 [2] : vector<2x8x8xf32> to vector<2x8xf32>
    %44 = vector.shape_cast %43 : vector<2x8xf32> to vector<2x8x1xf32>
    %45 = vector.broadcast %44 : vector<2x8x1xf32> to vector<2x8x8xf32>
    %46 = arith.subf %42, %45 : vector<2x8x8xf32>
    %47 = math.exp %46 : vector<2x8x8xf32>
    %cst_21 = arith.constant dense<0.000000e+00> : vector<2x8xf32>
    %48 = vector.multi_reduction <add>, %47, %cst_21 [2] : vector<2x8x8xf32> to vector<2x8xf32>
    %49 = vector.shape_cast %48 : vector<2x8xf32> to vector<2x8x1xf32>
    %50 = tpu.reciprocal %49 {approx = true} : vector<2x8x1xf32> -> vector<2x8x1xf32>
    %51 = vector.broadcast %50 : vector<2x8x1xf32> to vector<2x8x8xf32>
    %52 = arith.mulf %47, %51 : vector<2x8x8xf32>
    "tpu.trace_start"() <{level = 10 : i32, message = "bqk,bkd->bqd"}> : () -> ()
    %cst_22 = arith.constant dense<0.000000e+00> : vector<2x8x32xf32>
    %53 = tpu.matmul %52, %37, %cst_22 {dimension_numbers = #tpu.dot_dimension_numbers<[2], [1], [1], [2], [0, 0, 0, 1, 1, 2], [0], [0]>} : vector<2x8x8xf32>, vector<2x8x32xf32>, vector<2x8x32xf32> -> vector<2x8x32xf32>
    "tpu.trace_stop"() : () -> ()
    %54 = vector.extract_strided_slice %34 {offsets = [0, 0, 32], sizes = [2, 8, 32], strides = [1, 1, 1]} : vector<2x8x384xf32> to vector<2x8x32xf32>
    %55 = vector.extract_strided_slice %34 {offsets = [0, 0, 160], sizes = [2, 8, 32], strides = [1, 1, 1]} : vector<2x8x384xf32> to vector<2x8x32xf32>
    %56 = vector.extract_strided_slice %34 {offsets = [0, 0, 288], sizes = [2, 8, 32], strides = [1, 1, 1]} : vector<2x8x384xf32> to vector<2x8x32xf32>
    "tpu.trace_start"() <{level = 10 : i32, message = "bqd,bkd->bqk"}> : () -> ()
    %cst_23 = arith.constant dense<0.000000e+00> : vector<2x8x8xf32>
    %57 = tpu.matmul %54, %55, %cst_23 {dimension_numbers = #tpu.dot_dimension_numbers<[2], [2], [1], [1], [0, 0, 0, 1, 1, 1], [0], [0]>} : vector<2x8x32xf32>, vector<2x8x32xf32>, vector<2x8x8xf32> -> vector<2x8x8xf32>
    "tpu.trace_stop"() : () -> ()
    %cst_24 = arith.constant 0.176776692 : f32
    %58 = vector.broadcast %cst_24 : f32 to vector<2x8x8xf32>
    %59 = arith.mulf %57, %58 : vector<2x8x8xf32>
    %60 = vector.broadcast %26 : vector<2x1x8xf32> to vector<2x8x8xf32>
    %61 = arith.addf %59, %60 : vector<2x8x8xf32>
    %cst_25 = arith.constant dense<0xFF800000> : vector<2x8xf32>
    %62 = vector.multi_reduction <maximumf>, %61, %cst_25 [2] : vector<2x8x8xf32> to vector<2x8xf32>
    %63 = vector.shape_cast %62 : vector<2x8xf32> to vector<2x8x1xf32>
    %64 = vector.broadcast %63 : vector<2x8x1xf32> to vector<2x8x8xf32>
    %65 = arith.subf %61, %64 : vector<2x8x8xf32>
    %66 = math.exp %65 : vector<2x8x8xf32>
    %cst_26 = arith.constant dense<0.000000e+00> : vector<2x8xf32>
    %67 = vector.multi_reduction <add>, %66, %cst_26 [2] : vector<2x8x8xf32> to vector<2x8xf32>
    %68 = vector.shape_cast %67 : vector<2x8xf32> to vector<2x8x1xf32>
    %69 = tpu.reciprocal %68 {approx = true} : vector<2x8x1xf32> -> vector<2x8x1xf32>
    %70 = vector.broadcast %69 : vector<2x8x1xf32> to vector<2x8x8xf32>
    %71 = arith.mulf %66, %70 : vector<2x8x8xf32>
    "tpu.trace_start"() <{level = 10 : i32, message = "bqk,bkd->bqd"}> : () -> ()
    %cst_27 = arith.constant dense<0.000000e+00> : vector<2x8x32xf32>
    %72 = tpu.matmul %71, %56, %cst_27 {dimension_numbers = #tpu.dot_dimension_numbers<[2], [1], [1], [2], [0, 0, 0, 1, 1, 2], [0], [0]>} : vector<2x8x8xf32>, vector<2x8x32xf32>, vector<2x8x32xf32> -> vector<2x8x32xf32>
    "tpu.trace_stop"() : () -> ()
    %73 = vector.extract_strided_slice %34 {offsets = [0, 0, 64], sizes = [2, 8, 32], strides = [1, 1, 1]} : vector<2x8x384xf32> to vector<2x8x32xf32>
    %74 = vector.extract_strided_slice %34 {offsets = [0, 0, 192], sizes = [2, 8, 32], strides = [1, 1, 1]} : vector<2x8x384xf32> to vector<2x8x32xf32>
    %75 = vector.extract_strided_slice %34 {offsets = [0, 0, 320], sizes = [2, 8, 32], strides = [1, 1, 1]} : vector<2x8x384xf32> to vector<2x8x32xf32>
    "tpu.trace_start"() <{level = 10 : i32, message = "bqd,bkd->bqk"}> : () -> ()
    %cst_28 = arith.constant dense<0.000000e+00> : vector<2x8x8xf32>
    %76 = tpu.matmul %73, %74, %cst_28 {dimension_numbers = #tpu.dot_dimension_numbers<[2], [2], [1], [1], [0, 0, 0, 1, 1, 1], [0], [0]>} : vector<2x8x32xf32>, vector<2x8x32xf32>, vector<2x8x8xf32> -> vector<2x8x8xf32>
    "tpu.trace_stop"() : () -> ()
    %cst_29 = arith.constant 0.176776692 : f32
    %77 = vector.broadcast %cst_29 : f32 to vector<2x8x8xf32>
    %78 = arith.mulf %76, %77 : vector<2x8x8xf32>
    %79 = vector.broadcast %26 : vector<2x1x8xf32> to vector<2x8x8xf32>
    %80 = arith.addf %78, %79 : vector<2x8x8xf32>
    %cst_30 = arith.constant dense<0xFF800000> : vector<2x8xf32>
    %81 = vector.multi_reduction <maximumf>, %80, %cst_30 [2] : vector<2x8x8xf32> to vector<2x8xf32>
    %82 = vector.shape_cast %81 : vector<2x8xf32> to vector<2x8x1xf32>
    %83 = vector.broadcast %82 : vector<2x8x1xf32> to vector<2x8x8xf32>
    %84 = arith.subf %80, %83 : vector<2x8x8xf32>
    %85 = math.exp %84 : vector<2x8x8xf32>
    %cst_31 = arith.constant dense<0.000000e+00> : vector<2x8xf32>
    %86 = vector.multi_reduction <add>, %85, %cst_31 [2] : vector<2x8x8xf32> to vector<2x8xf32>
    %87 = vector.shape_cast %86 : vector<2x8xf32> to vector<2x8x1xf32>
    %88 = tpu.reciprocal %87 {approx = true} : vector<2x8x1xf32> -> vector<2x8x1xf32>
    %89 = vector.broadcast %88 : vector<2x8x1xf32> to vector<2x8x8xf32>
    %90 = arith.mulf %85, %89 : vector<2x8x8xf32>
    "tpu.trace_start"() <{level = 10 : i32, message = "bqk,bkd->bqd"}> : () -> ()
    %cst_32 = arith.constant dense<0.000000e+00> : vector<2x8x32xf32>
    %91 = tpu.matmul %90, %75, %cst_32 {dimension_numbers = #tpu.dot_dimension_numbers<[2], [1], [1], [2], [0, 0, 0, 1, 1, 2], [0], [0]>} : vector<2x8x8xf32>, vector<2x8x32xf32>, vector<2x8x32xf32> -> vector<2x8x32xf32>
    "tpu.trace_stop"() : () -> ()
    %92 = vector.extract_strided_slice %34 {offsets = [0, 0, 96], sizes = [2, 8, 32], strides = [1, 1, 1]} : vector<2x8x384xf32> to vector<2x8x32xf32>
    %93 = vector.extract_strided_slice %34 {offsets = [0, 0, 224], sizes = [2, 8, 32], strides = [1, 1, 1]} : vector<2x8x384xf32> to vector<2x8x32xf32>
    %94 = vector.extract_strided_slice %34 {offsets = [0, 0, 352], sizes = [2, 8, 32], strides = [1, 1, 1]} : vector<2x8x384xf32> to vector<2x8x32xf32>
    "tpu.trace_start"() <{level = 10 : i32, message = "bqd,bkd->bqk"}> : () -> ()
    %cst_33 = arith.constant dense<0.000000e+00> : vector<2x8x8xf32>
    %95 = tpu.matmul %92, %93, %cst_33 {dimension_numbers = #tpu.dot_dimension_numbers<[2], [2], [1], [1], [0, 0, 0, 1, 1, 1], [0], [0]>} : vector<2x8x32xf32>, vector<2x8x32xf32>, vector<2x8x8xf32> -> vector<2x8x8xf32>
    "tpu.trace_stop"() : () -> ()
    %cst_34 = arith.constant 0.176776692 : f32
    %96 = vector.broadcast %cst_34 : f32 to vector<2x8x8xf32>
    %97 = arith.mulf %95, %96 : vector<2x8x8xf32>
    %98 = vector.broadcast %26 : vector<2x1x8xf32> to vector<2x8x8xf32>
    %99 = arith.addf %97, %98 : vector<2x8x8xf32>
    %cst_35 = arith.constant dense<0xFF800000> : vector<2x8xf32>
    %100 = vector.multi_reduction <maximumf>, %99, %cst_35 [2] : vector<2x8x8xf32> to vector<2x8xf32>
    %101 = vector.shape_cast %100 : vector<2x8xf32> to vector<2x8x1xf32>
    %102 = vector.broadcast %101 : vector<2x8x1xf32> to vector<2x8x8xf32>
    %103 = arith.subf %99, %102 : vector<2x8x8xf32>
    %104 = math.exp %103 : vector<2x8x8xf32>
    %cst_36 = arith.constant dense<0.000000e+00> : vector<2x8xf32>
    %105 = vector.multi_reduction <add>, %104, %cst_36 [2] : vector<2x8x8xf32> to vector<2x8xf32>
    %106 = vector.shape_cast %105 : vector<2x8xf32> to vector<2x8x1xf32>
    %107 = tpu.reciprocal %106 {approx = true} : vector<2x8x1xf32> -> vector<2x8x1xf32>
    %108 = vector.broadcast %107 : vector<2x8x1xf32> to vector<2x8x8xf32>
    %109 = arith.mulf %104, %108 : vector<2x8x8xf32>
    "tpu.trace_start"() <{level = 10 : i32, message = "bqk,bkd->bqd"}> : () -> ()
    %cst_37 = arith.constant dense<0.000000e+00> : vector<2x8x32xf32>
    %110 = tpu.matmul %109, %94, %cst_37 {dimension_numbers = #tpu.dot_dimension_numbers<[2], [1], [1], [2], [0, 0, 0, 1, 1, 2], [0], [0]>} : vector<2x8x8xf32>, vector<2x8x32xf32>, vector<2x8x32xf32> -> vector<2x8x32xf32>
    "tpu.trace_stop"() : () -> ()
    %111 = tpu.concatenate %53, %72, %91, %110 in 2 : vector<2x8x32xf32>, vector<2x8x32xf32>, vector<2x8x32xf32>, vector<2x8x32xf32> -> vector<2x8x128xf32>
    %112 = vector.shape_cast %111 : vector<2x8x128xf32> to vector<16x128xf32>
    %c0_38 = arith.constant 0 : index
    %c0_39 = arith.constant 0 : index
    %c0_40 = arith.constant 0 : index
    %113 = vector.load %arg6[%c0_38, %c0_39, %c0_40] : memref<2x128x128xf32, #tpu.memory_space<vmem>>, vector<1x128x128xf32>
    %114 = vector.shape_cast %113 : vector<1x128x128xf32> to vector<128x128xf32>
    %cst_41 = arith.constant dense<0.000000e+00> : vector<16x128xf32>
    %115 = tpu.matmul %112, %114, %cst_41 {dimension_numbers = #tpu.dot_dimension_numbers<[1], [0], [0], [1], [0, 0, 1, 1], [], []>} : vector<16x128xf32>, vector<128x128xf32>, vector<16x128xf32> -> vector<16x128xf32>
    %c0_42 = arith.constant 0 : index
    %c0_43 = arith.constant 0 : index
    %c0_44 = arith.constant 0 : index
    %116 = vector.load %arg7[%c0_42, %c0_43, %c0_44] : memref<2x1x128xf32, #tpu.memory_space<vmem>>, vector<1x1x128xf32>
    %117 = vector.shape_cast %116 : vector<1x1x128xf32> to vector<1x128xf32>
    %118 = vector.broadcast %117 : vector<1x128xf32> to vector<16x128xf32>
    %119 = arith.addf %115, %118 : vector<16x128xf32>
    %120 = arith.addf %119, %24 : vector<16x128xf32>
    %c0_45 = arith.constant 0 : index
    %c0_46 = arith.constant 0 : index
    %c0_47 = arith.constant 0 : index
    %121 = vector.load %arg8[%c0_45, %c0_46, %c0_47] : memref<2x1x128xf32, #tpu.memory_space<vmem>>, vector<1x1x128xf32>
    %122 = vector.shape_cast %121 : vector<1x1x128xf32> to vector<1x128xf32>
    %c0_48 = arith.constant 0 : index
    %c0_49 = arith.constant 0 : index
    %c0_50 = arith.constant 0 : index
    %123 = vector.load %arg9[%c0_48, %c0_49, %c0_50] : memref<2x1x128xf32, #tpu.memory_space<vmem>>, vector<1x1x128xf32>
    %124 = vector.shape_cast %123 : vector<1x1x128xf32> to vector<1x128xf32>
    %cst_51 = arith.constant dense<0.000000e+00> : vector<16xf32>
    %125 = vector.multi_reduction <add>, %120, %cst_51 [1] : vector<16x128xf32> to vector<16xf32>
    %126 = vector.shape_cast %125 : vector<16xf32> to vector<16x1xf32>
    %cst_52 = arith.constant 1.280000e+02 : f32
    %127 = vector.broadcast %cst_52 : f32 to vector<16x1xf32>
    %128 = arith.divf %126, %127 : vector<16x1xf32>
    %129 = vector.broadcast %128 : vector<16x1xf32> to vector<16x128xf32>
    %130 = arith.subf %120, %129 : vector<16x128xf32>
    %131 = arith.mulf %130, %130 : vector<16x128xf32>
    %cst_53 = arith.constant dense<0.000000e+00> : vector<16xf32>
    %132 = vector.multi_reduction <add>, %131, %cst_53 [1] : vector<16x128xf32> to vector<16xf32>
    %133 = vector.shape_cast %132 : vector<16xf32> to vector<16x1xf32>
    %cst_54 = arith.constant 1.280000e+02 : f32
    %134 = vector.broadcast %cst_54 : f32 to vector<16x1xf32>
    %135 = arith.divf %133, %134 : vector<16x1xf32>
    %136 = vector.broadcast %128 : vector<16x1xf32> to vector<16x128xf32>
    %137 = arith.subf %120, %136 : vector<16x128xf32>
    %cst_55 = arith.constant 9.99999996E-13 : f32
    %138 = vector.broadcast %cst_55 : f32 to vector<16x1xf32>
    %139 = arith.addf %135, %138 : vector<16x1xf32>
    %140 = math.rsqrt %139 : vector<16x1xf32>
    %141 = vector.broadcast %140 : vector<16x1xf32> to vector<16x128xf32>
    %142 = arith.mulf %137, %141 : vector<16x128xf32>
    %143 = vector.broadcast %122 : vector<1x128xf32> to vector<16x128xf32>
    %144 = arith.mulf %142, %143 : vector<16x128xf32>
    %145 = vector.broadcast %124 : vector<1x128xf32> to vector<16x128xf32>
    %146 = arith.addf %144, %145 : vector<16x128xf32>
    %c0_56 = arith.constant 0 : index
    %c0_57 = arith.constant 0 : index
    %c0_58 = arith.constant 0 : index
    %147 = vector.load %arg10[%c0_56, %c0_57, %c0_58] : memref<2x128x512xf32, #tpu.memory_space<vmem>>, vector<1x128x512xf32>
    %148 = vector.shape_cast %147 : vector<1x128x512xf32> to vector<128x512xf32>
    %cst_59 = arith.constant dense<0.000000e+00> : vector<16x512xf32>
    %149 = tpu.matmul %146, %148, %cst_59 {dimension_numbers = #tpu.dot_dimension_numbers<[1], [0], [0], [1], [0, 0, 1, 1], [], []>} : vector<16x128xf32>, vector<128x512xf32>, vector<16x512xf32> -> vector<16x512xf32>
    %c0_60 = arith.constant 0 : index
    %c0_61 = arith.constant 0 : index
    %c0_62 = arith.constant 0 : index
    %150 = vector.load %arg11[%c0_60, %c0_61, %c0_62] : memref<2x1x512xf32, #tpu.memory_space<vmem>>, vector<1x1x512xf32>
    %151 = vector.shape_cast %150 : vector<1x1x512xf32> to vector<1x512xf32>
    %152 = vector.broadcast %151 : vector<1x512xf32> to vector<16x512xf32>
    %153 = arith.addf %149, %152 : vector<16x512xf32>
    %cst_63 = arith.constant 5.000000e-01 : f32
    %154 = vector.broadcast %cst_63 : f32 to vector<16x512xf32>
    %155 = arith.mulf %154, %153 : vector<16x512xf32>
    %cst_64 = arith.constant 0.707106769 : f32
    %156 = vector.broadcast %cst_64 : f32 to vector<16x512xf32>
    %157 = arith.mulf %153, %156 : vector<16x512xf32>
    %158 = math.erf %157 : vector<16x512xf32>
    %cst_65 = arith.constant 1.000000e+00 : f32
    %159 = vector.broadcast %cst_65 : f32 to vector<16x512xf32>
    %160 = arith.addf %159, %158 : vector<16x512xf32>
    %161 = arith.mulf %155, %160 : vector<16x512xf32>
    %c0_66 = arith.constant 0 : index
    %c0_67 = arith.constant 0 : index
    %c0_68 = arith.constant 0 : index
    %162 = vector.load %arg12[%c0_66, %c0_67, %c0_68] : memref<2x512x128xf32, #tpu.memory_space<vmem>>, vector<1x512x128xf32>
    %163 = vector.shape_cast %162 : vector<1x512x128xf32> to vector<512x128xf32>
    %cst_69 = arith.constant dense<0.000000e+00> : vector<16x128xf32>
    %164 = tpu.matmul %161, %163, %cst_69 {dimension_numbers = #tpu.dot_dimension_numbers<[1], [0], [0], [1], [0, 0, 1, 1], [], []>} : vector<16x512xf32>, vector<512x128xf32>, vector<16x128xf32> -> vector<16x128xf32>
    %c0_70 = arith.constant 0 : index
    %c0_71 = arith.constant 0 : index
    %c0_72 = arith.constant 0 : index
    %165 = vector.load %arg13[%c0_70, %c0_71, %c0_72] : memref<2x1x128xf32, #tpu.memory_space<vmem>>, vector<1x1x128xf32>
    %166 = vector.shape_cast %165 : vector<1x1x128xf32> to vector<1x128xf32>
    %167 = vector.broadcast %166 : vector<1x128xf32> to vector<16x128xf32>
    %168 = arith.addf %164, %167 : vector<16x128xf32>
    %169 = arith.addf %168, %146 : vector<16x128xf32>
    %c0_73 = arith.constant 0 : index
    %c0_74 = arith.constant 0 : index
    %c0_75 = arith.constant 0 : index
    %170 = vector.load %arg14[%c0_73, %c0_74, %c0_75] : memref<2x1x128xf32, #tpu.memory_space<vmem>>, vector<1x1x128xf32>
    %171 = vector.shape_cast %170 : vector<1x1x128xf32> to vector<1x128xf32>
    %c0_76 = arith.constant 0 : index
    %c0_77 = arith.constant 0 : index
    %c0_78 = arith.constant 0 : index
    %172 = vector.load %arg15[%c0_76, %c0_77, %c0_78] : memref<2x1x128xf32, #tpu.memory_space<vmem>>, vector<1x1x128xf32>
    %173 = vector.shape_cast %172 : vector<1x1x128xf32> to vector<1x128xf32>
    %cst_79 = arith.constant dense<0.000000e+00> : vector<16xf32>
    %174 = vector.multi_reduction <add>, %169, %cst_79 [1] : vector<16x128xf32> to vector<16xf32>
    %175 = vector.shape_cast %174 : vector<16xf32> to vector<16x1xf32>
    %cst_80 = arith.constant 1.280000e+02 : f32
    %176 = vector.broadcast %cst_80 : f32 to vector<16x1xf32>
    %177 = arith.divf %175, %176 : vector<16x1xf32>
    %178 = vector.broadcast %177 : vector<16x1xf32> to vector<16x128xf32>
    %179 = arith.subf %169, %178 : vector<16x128xf32>
    %180 = arith.mulf %179, %179 : vector<16x128xf32>
    %cst_81 = arith.constant dense<0.000000e+00> : vector<16xf32>
    %181 = vector.multi_reduction <add>, %180, %cst_81 [1] : vector<16x128xf32> to vector<16xf32>
    %182 = vector.shape_cast %181 : vector<16xf32> to vector<16x1xf32>
    %cst_82 = arith.constant 1.280000e+02 : f32
    %183 = vector.broadcast %cst_82 : f32 to vector<16x1xf32>
    %184 = arith.divf %182, %183 : vector<16x1xf32>
    %185 = vector.broadcast %177 : vector<16x1xf32> to vector<16x128xf32>
    %186 = arith.subf %169, %185 : vector<16x128xf32>
    %cst_83 = arith.constant 9.99999996E-13 : f32
    %187 = vector.broadcast %cst_83 : f32 to vector<16x1xf32>
    %188 = arith.addf %184, %187 : vector<16x1xf32>
    %189 = math.rsqrt %188 : vector<16x1xf32>
    %190 = vector.broadcast %189 : vector<16x1xf32> to vector<16x128xf32>
    %191 = arith.mulf %186, %190 : vector<16x128xf32>
    %192 = vector.broadcast %171 : vector<1x128xf32> to vector<16x128xf32>
    %193 = arith.mulf %191, %192 : vector<16x128xf32>
    %194 = vector.broadcast %173 : vector<1x128xf32> to vector<16x128xf32>
    %195 = arith.addf %193, %194 : vector<16x128xf32>
    %c1 = arith.constant 1 : index
    %c0_84 = arith.constant 0 : index
    %c0_85 = arith.constant 0 : index
    %196 = vector.load %arg4[%c1, %c0_84, %c0_85] : memref<2x128x384xf32, #tpu.memory_space<vmem>>, vector<1x128x384xf32>
    %197 = vector.shape_cast %196 : vector<1x128x384xf32> to vector<128x384xf32>
    %cst_86 = arith.constant dense<0.000000e+00> : vector<16x384xf32>
    %198 = tpu.matmul %195, %197, %cst_86 {dimension_numbers = #tpu.dot_dimension_numbers<[1], [0], [0], [1], [0, 0, 1, 1], [], []>} : vector<16x128xf32>, vector<128x384xf32>, vector<16x384xf32> -> vector<16x384xf32>
    %c1_87 = arith.constant 1 : index
    %c0_88 = arith.constant 0 : index
    %c0_89 = arith.constant 0 : index
    %199 = vector.load %arg5[%c1_87, %c0_88, %c0_89] : memref<2x1x384xf32, #tpu.memory_space<vmem>>, vector<1x1x384xf32>
    %200 = vector.shape_cast %199 : vector<1x1x384xf32> to vector<1x384xf32>
    %201 = vector.broadcast %200 : vector<1x384xf32> to vector<16x384xf32>
    %202 = arith.addf %198, %201 : vector<16x384xf32>
    %203 = vector.shape_cast %202 : vector<16x384xf32> to vector<2x8x384xf32>
    %204 = vector.extract_strided_slice %203 {offsets = [0, 0, 0], sizes = [2, 8, 32], strides = [1, 1, 1]} : vector<2x8x384xf32> to vector<2x8x32xf32>
    %205 = vector.extract_strided_slice %203 {offsets = [0, 0, 128], sizes = [2, 8, 32], strides = [1, 1, 1]} : vector<2x8x384xf32> to vector<2x8x32xf32>
    %206 = vector.extract_strided_slice %203 {offsets = [0, 0, 256], sizes = [2, 8, 32], strides = [1, 1, 1]} : vector<2x8x384xf32> to vector<2x8x32xf32>
    "tpu.trace_start"() <{level = 10 : i32, message = "bqd,bkd->bqk"}> : () -> ()
    %cst_90 = arith.constant dense<0.000000e+00> : vector<2x8x8xf32>
    %207 = tpu.matmul %204, %205, %cst_90 {dimension_numbers = #tpu.dot_dimension_numbers<[2], [2], [1], [1], [0, 0, 0, 1, 1, 1], [0], [0]>} : vector<2x8x32xf32>, vector<2x8x32xf32>, vector<2x8x8xf32> -> vector<2x8x8xf32>
    "tpu.trace_stop"() : () -> ()
    %cst_91 = arith.constant 0.176776692 : f32
    %208 = vector.broadcast %cst_91 : f32 to vector<2x8x8xf32>
    %209 = arith.mulf %207, %208 : vector<2x8x8xf32>
    %210 = vector.broadcast %26 : vector<2x1x8xf32> to vector<2x8x8xf32>
    %211 = arith.addf %209, %210 : vector<2x8x8xf32>
    %cst_92 = arith.constant dense<0xFF800000> : vector<2x8xf32>
    %212 = vector.multi_reduction <maximumf>, %211, %cst_92 [2] : vector<2x8x8xf32> to vector<2x8xf32>
    %213 = vector.shape_cast %212 : vector<2x8xf32> to vector<2x8x1xf32>
    %214 = vector.broadcast %213 : vector<2x8x1xf32> to vector<2x8x8xf32>
    %215 = arith.subf %211, %214 : vector<2x8x8xf32>
    %216 = math.exp %215 : vector<2x8x8xf32>
    %cst_93 = arith.constant dense<0.000000e+00> : vector<2x8xf32>
    %217 = vector.multi_reduction <add>, %216, %cst_93 [2] : vector<2x8x8xf32> to vector<2x8xf32>
    %218 = vector.shape_cast %217 : vector<2x8xf32> to vector<2x8x1xf32>
    %219 = tpu.reciprocal %218 {approx = true} : vector<2x8x1xf32> -> vector<2x8x1xf32>
    %220 = vector.broadcast %219 : vector<2x8x1xf32> to vector<2x8x8xf32>
    %221 = arith.mulf %216, %220 : vector<2x8x8xf32>
    "tpu.trace_start"() <{level = 10 : i32, message = "bqk,bkd->bqd"}> : () -> ()
    %cst_94 = arith.constant dense<0.000000e+00> : vector<2x8x32xf32>
    %222 = tpu.matmul %221, %206, %cst_94 {dimension_numbers = #tpu.dot_dimension_numbers<[2], [1], [1], [2], [0, 0, 0, 1, 1, 2], [0], [0]>} : vector<2x8x8xf32>, vector<2x8x32xf32>, vector<2x8x32xf32> -> vector<2x8x32xf32>
    "tpu.trace_stop"() : () -> ()
    %223 = vector.extract_strided_slice %203 {offsets = [0, 0, 32], sizes = [2, 8, 32], strides = [1, 1, 1]} : vector<2x8x384xf32> to vector<2x8x32xf32>
    %224 = vector.extract_strided_slice %203 {offsets = [0, 0, 160], sizes = [2, 8, 32], strides = [1, 1, 1]} : vector<2x8x384xf32> to vector<2x8x32xf32>
    %225 = vector.extract_strided_slice %203 {offsets = [0, 0, 288], sizes = [2, 8, 32], strides = [1, 1, 1]} : vector<2x8x384xf32> to vector<2x8x32xf32>
    "tpu.trace_start"() <{level = 10 : i32, message = "bqd,bkd->bqk"}> : () -> ()
    %cst_95 = arith.constant dense<0.000000e+00> : vector<2x8x8xf32>
    %226 = tpu.matmul %223, %224, %cst_95 {dimension_numbers = #tpu.dot_dimension_numbers<[2], [2], [1], [1], [0, 0, 0, 1, 1, 1], [0], [0]>} : vector<2x8x32xf32>, vector<2x8x32xf32>, vector<2x8x8xf32> -> vector<2x8x8xf32>
    "tpu.trace_stop"() : () -> ()
    %cst_96 = arith.constant 0.176776692 : f32
    %227 = vector.broadcast %cst_96 : f32 to vector<2x8x8xf32>
    %228 = arith.mulf %226, %227 : vector<2x8x8xf32>
    %229 = vector.broadcast %26 : vector<2x1x8xf32> to vector<2x8x8xf32>
    %230 = arith.addf %228, %229 : vector<2x8x8xf32>
    %cst_97 = arith.constant dense<0xFF800000> : vector<2x8xf32>
    %231 = vector.multi_reduction <maximumf>, %230, %cst_97 [2] : vector<2x8x8xf32> to vector<2x8xf32>
    %232 = vector.shape_cast %231 : vector<2x8xf32> to vector<2x8x1xf32>
    %233 = vector.broadcast %232 : vector<2x8x1xf32> to vector<2x8x8xf32>
    %234 = arith.subf %230, %233 : vector<2x8x8xf32>
    %235 = math.exp %234 : vector<2x8x8xf32>
    %cst_98 = arith.constant dense<0.000000e+00> : vector<2x8xf32>
    %236 = vector.multi_reduction <add>, %235, %cst_98 [2] : vector<2x8x8xf32> to vector<2x8xf32>
    %237 = vector.shape_cast %236 : vector<2x8xf32> to vector<2x8x1xf32>
    %238 = tpu.reciprocal %237 {approx = true} : vector<2x8x1xf32> -> vector<2x8x1xf32>
    %239 = vector.broadcast %238 : vector<2x8x1xf32> to vector<2x8x8xf32>
    %240 = arith.mulf %235, %239 : vector<2x8x8xf32>
    "tpu.trace_start"() <{level = 10 : i32, message = "bqk,bkd->bqd"}> : () -> ()
    %cst_99 = arith.constant dense<0.000000e+00> : vector<2x8x32xf32>
    %241 = tpu.matmul %240, %225, %cst_99 {dimension_numbers = #tpu.dot_dimension_numbers<[2], [1], [1], [2], [0, 0, 0, 1, 1, 2], [0], [0]>} : vector<2x8x8xf32>, vector<2x8x32xf32>, vector<2x8x32xf32> -> vector<2x8x32xf32>
    "tpu.trace_stop"() : () -> ()
    %242 = vector.extract_strided_slice %203 {offsets = [0, 0, 64], sizes = [2, 8, 32], strides = [1, 1, 1]} : vector<2x8x384xf32> to vector<2x8x32xf32>
    %243 = vector.extract_strided_slice %203 {offsets = [0, 0, 192], sizes = [2, 8, 32], strides = [1, 1, 1]} : vector<2x8x384xf32> to vector<2x8x32xf32>
    %244 = vector.extract_strided_slice %203 {offsets = [0, 0, 320], sizes = [2, 8, 32], strides = [1, 1, 1]} : vector<2x8x384xf32> to vector<2x8x32xf32>
    "tpu.trace_start"() <{level = 10 : i32, message = "bqd,bkd->bqk"}> : () -> ()
    %cst_100 = arith.constant dense<0.000000e+00> : vector<2x8x8xf32>
    %245 = tpu.matmul %242, %243, %cst_100 {dimension_numbers = #tpu.dot_dimension_numbers<[2], [2], [1], [1], [0, 0, 0, 1, 1, 1], [0], [0]>} : vector<2x8x32xf32>, vector<2x8x32xf32>, vector<2x8x8xf32> -> vector<2x8x8xf32>
    "tpu.trace_stop"() : () -> ()
    %cst_101 = arith.constant 0.176776692 : f32
    %246 = vector.broadcast %cst_101 : f32 to vector<2x8x8xf32>
    %247 = arith.mulf %245, %246 : vector<2x8x8xf32>
    %248 = vector.broadcast %26 : vector<2x1x8xf32> to vector<2x8x8xf32>
    %249 = arith.addf %247, %248 : vector<2x8x8xf32>
    %cst_102 = arith.constant dense<0xFF800000> : vector<2x8xf32>
    %250 = vector.multi_reduction <maximumf>, %249, %cst_102 [2] : vector<2x8x8xf32> to vector<2x8xf32>
    %251 = vector.shape_cast %250 : vector<2x8xf32> to vector<2x8x1xf32>
    %252 = vector.broadcast %251 : vector<2x8x1xf32> to vector<2x8x8xf32>
    %253 = arith.subf %249, %252 : vector<2x8x8xf32>
    %254 = math.exp %253 : vector<2x8x8xf32>
    %cst_103 = arith.constant dense<0.000000e+00> : vector<2x8xf32>
    %255 = vector.multi_reduction <add>, %254, %cst_103 [2] : vector<2x8x8xf32> to vector<2x8xf32>
    %256 = vector.shape_cast %255 : vector<2x8xf32> to vector<2x8x1xf32>
    %257 = tpu.reciprocal %256 {approx = true} : vector<2x8x1xf32> -> vector<2x8x1xf32>
    %258 = vector.broadcast %257 : vector<2x8x1xf32> to vector<2x8x8xf32>
    %259 = arith.mulf %254, %258 : vector<2x8x8xf32>
    "tpu.trace_start"() <{level = 10 : i32, message = "bqk,bkd->bqd"}> : () -> ()
    %cst_104 = arith.constant dense<0.000000e+00> : vector<2x8x32xf32>
    %260 = tpu.matmul %259, %244, %cst_104 {dimension_numbers = #tpu.dot_dimension_numbers<[2], [1], [1], [2], [0, 0, 0, 1, 1, 2], [0], [0]>} : vector<2x8x8xf32>, vector<2x8x32xf32>, vector<2x8x32xf32> -> vector<2x8x32xf32>
    "tpu.trace_stop"() : () -> ()
    %261 = vector.extract_strided_slice %203 {offsets = [0, 0, 96], sizes = [2, 8, 32], strides = [1, 1, 1]} : vector<2x8x384xf32> to vector<2x8x32xf32>
    %262 = vector.extract_strided_slice %203 {offsets = [0, 0, 224], sizes = [2, 8, 32], strides = [1, 1, 1]} : vector<2x8x384xf32> to vector<2x8x32xf32>
    %263 = vector.extract_strided_slice %203 {offsets = [0, 0, 352], sizes = [2, 8, 32], strides = [1, 1, 1]} : vector<2x8x384xf32> to vector<2x8x32xf32>
    "tpu.trace_start"() <{level = 10 : i32, message = "bqd,bkd->bqk"}> : () -> ()
    %cst_105 = arith.constant dense<0.000000e+00> : vector<2x8x8xf32>
    %264 = tpu.matmul %261, %262, %cst_105 {dimension_numbers = #tpu.dot_dimension_numbers<[2], [2], [1], [1], [0, 0, 0, 1, 1, 1], [0], [0]>} : vector<2x8x32xf32>, vector<2x8x32xf32>, vector<2x8x8xf32> -> vector<2x8x8xf32>
    "tpu.trace_stop"() : () -> ()
    %cst_106 = arith.constant 0.176776692 : f32
    %265 = vector.broadcast %cst_106 : f32 to vector<2x8x8xf32>
    %266 = arith.mulf %264, %265 : vector<2x8x8xf32>
    %267 = vector.broadcast %26 : vector<2x1x8xf32> to vector<2x8x8xf32>
    %268 = arith.addf %266, %267 : vector<2x8x8xf32>
    %cst_107 = arith.constant dense<0xFF800000> : vector<2x8xf32>
    %269 = vector.multi_reduction <maximumf>, %268, %cst_107 [2] : vector<2x8x8xf32> to vector<2x8xf32>
    %270 = vector.shape_cast %269 : vector<2x8xf32> to vector<2x8x1xf32>
    %271 = vector.broadcast %270 : vector<2x8x1xf32> to vector<2x8x8xf32>
    %272 = arith.subf %268, %271 : vector<2x8x8xf32>
    %273 = math.exp %272 : vector<2x8x8xf32>
    %cst_108 = arith.constant dense<0.000000e+00> : vector<2x8xf32>
    %274 = vector.multi_reduction <add>, %273, %cst_108 [2] : vector<2x8x8xf32> to vector<2x8xf32>
    %275 = vector.shape_cast %274 : vector<2x8xf32> to vector<2x8x1xf32>
    %276 = tpu.reciprocal %275 {approx = true} : vector<2x8x1xf32> -> vector<2x8x1xf32>
    %277 = vector.broadcast %276 : vector<2x8x1xf32> to vector<2x8x8xf32>
    %278 = arith.mulf %273, %277 : vector<2x8x8xf32>
    "tpu.trace_start"() <{level = 10 : i32, message = "bqk,bkd->bqd"}> : () -> ()
    %cst_109 = arith.constant dense<0.000000e+00> : vector<2x8x32xf32>
    %279 = tpu.matmul %278, %263, %cst_109 {dimension_numbers = #tpu.dot_dimension_numbers<[2], [1], [1], [2], [0, 0, 0, 1, 1, 2], [0], [0]>} : vector<2x8x8xf32>, vector<2x8x32xf32>, vector<2x8x32xf32> -> vector<2x8x32xf32>
    "tpu.trace_stop"() : () -> ()
    %280 = tpu.concatenate %222, %241, %260, %279 in 2 : vector<2x8x32xf32>, vector<2x8x32xf32>, vector<2x8x32xf32>, vector<2x8x32xf32> -> vector<2x8x128xf32>
    %281 = vector.shape_cast %280 : vector<2x8x128xf32> to vector<16x128xf32>
    %c1_110 = arith.constant 1 : index
    %c0_111 = arith.constant 0 : index
    %c0_112 = arith.constant 0 : index
    %282 = vector.load %arg6[%c1_110, %c0_111, %c0_112] : memref<2x128x128xf32, #tpu.memory_space<vmem>>, vector<1x128x128xf32>
    %283 = vector.shape_cast %282 : vector<1x128x128xf32> to vector<128x128xf32>
    %cst_113 = arith.constant dense<0.000000e+00> : vector<16x128xf32>
    %284 = tpu.matmul %281, %283, %cst_113 {dimension_numbers = #tpu.dot_dimension_numbers<[1], [0], [0], [1], [0, 0, 1, 1], [], []>} : vector<16x128xf32>, vector<128x128xf32>, vector<16x128xf32> -> vector<16x128xf32>
    %c1_114 = arith.constant 1 : index
    %c0_115 = arith.constant 0 : index
    %c0_116 = arith.constant 0 : index
    %285 = vector.load %arg7[%c1_114, %c0_115, %c0_116] : memref<2x1x128xf32, #tpu.memory_space<vmem>>, vector<1x1x128xf32>
    %286 = vector.shape_cast %285 : vector<1x1x128xf32> to vector<1x128xf32>
    %287 = vector.broadcast %286 : vector<1x128xf32> to vector<16x128xf32>
    %288 = arith.addf %284, %287 : vector<16x128xf32>
    %289 = arith.addf %288, %195 : vector<16x128xf32>
    %c1_117 = arith.constant 1 : index
    %c0_118 = arith.constant 0 : index
    %c0_119 = arith.constant 0 : index
    %290 = vector.load %arg8[%c1_117, %c0_118, %c0_119] : memref<2x1x128xf32, #tpu.memory_space<vmem>>, vector<1x1x128xf32>
    %291 = vector.shape_cast %290 : vector<1x1x128xf32> to vector<1x128xf32>
    %c1_120 = arith.constant 1 : index
    %c0_121 = arith.constant 0 : index
    %c0_122 = arith.constant 0 : index
    %292 = vector.load %arg9[%c1_120, %c0_121, %c0_122] : memref<2x1x128xf32, #tpu.memory_space<vmem>>, vector<1x1x128xf32>
    %293 = vector.shape_cast %292 : vector<1x1x128xf32> to vector<1x128xf32>
    %cst_123 = arith.constant dense<0.000000e+00> : vector<16xf32>
    %294 = vector.multi_reduction <add>, %289, %cst_123 [1] : vector<16x128xf32> to vector<16xf32>
    %295 = vector.shape_cast %294 : vector<16xf32> to vector<16x1xf32>
    %cst_124 = arith.constant 1.280000e+02 : f32
    %296 = vector.broadcast %cst_124 : f32 to vector<16x1xf32>
    %297 = arith.divf %295, %296 : vector<16x1xf32>
    %298 = vector.broadcast %297 : vector<16x1xf32> to vector<16x128xf32>
    %299 = arith.subf %289, %298 : vector<16x128xf32>
    %300 = arith.mulf %299, %299 : vector<16x128xf32>
    %cst_125 = arith.constant dense<0.000000e+00> : vector<16xf32>
    %301 = vector.multi_reduction <add>, %300, %cst_125 [1] : vector<16x128xf32> to vector<16xf32>
    %302 = vector.shape_cast %301 : vector<16xf32> to vector<16x1xf32>
    %cst_126 = arith.constant 1.280000e+02 : f32
    %303 = vector.broadcast %cst_126 : f32 to vector<16x1xf32>
    %304 = arith.divf %302, %303 : vector<16x1xf32>
    %305 = vector.broadcast %297 : vector<16x1xf32> to vector<16x128xf32>
    %306 = arith.subf %289, %305 : vector<16x128xf32>
    %cst_127 = arith.constant 9.99999996E-13 : f32
    %307 = vector.broadcast %cst_127 : f32 to vector<16x1xf32>
    %308 = arith.addf %304, %307 : vector<16x1xf32>
    %309 = math.rsqrt %308 : vector<16x1xf32>
    %310 = vector.broadcast %309 : vector<16x1xf32> to vector<16x128xf32>
    %311 = arith.mulf %306, %310 : vector<16x128xf32>
    %312 = vector.broadcast %291 : vector<1x128xf32> to vector<16x128xf32>
    %313 = arith.mulf %311, %312 : vector<16x128xf32>
    %314 = vector.broadcast %293 : vector<1x128xf32> to vector<16x128xf32>
    %315 = arith.addf %313, %314 : vector<16x128xf32>
    %c1_128 = arith.constant 1 : index
    %c0_129 = arith.constant 0 : index
    %c0_130 = arith.constant 0 : index
    %316 = vector.load %arg10[%c1_128, %c0_129, %c0_130] : memref<2x128x512xf32, #tpu.memory_space<vmem>>, vector<1x128x512xf32>
    %317 = vector.shape_cast %316 : vector<1x128x512xf32> to vector<128x512xf32>
    %cst_131 = arith.constant dense<0.000000e+00> : vector<16x512xf32>
    %318 = tpu.matmul %315, %317, %cst_131 {dimension_numbers = #tpu.dot_dimension_numbers<[1], [0], [0], [1], [0, 0, 1, 1], [], []>} : vector<16x128xf32>, vector<128x512xf32>, vector<16x512xf32> -> vector<16x512xf32>
    %c1_132 = arith.constant 1 : index
    %c0_133 = arith.constant 0 : index
    %c0_134 = arith.constant 0 : index
    %319 = vector.load %arg11[%c1_132, %c0_133, %c0_134] : memref<2x1x512xf32, #tpu.memory_space<vmem>>, vector<1x1x512xf32>
    %320 = vector.shape_cast %319 : vector<1x1x512xf32> to vector<1x512xf32>
    %321 = vector.broadcast %320 : vector<1x512xf32> to vector<16x512xf32>
    %322 = arith.addf %318, %321 : vector<16x512xf32>
    %cst_135 = arith.constant 5.000000e-01 : f32
    %323 = vector.broadcast %cst_135 : f32 to vector<16x512xf32>
    %324 = arith.mulf %323, %322 : vector<16x512xf32>
    %cst_136 = arith.constant 0.707106769 : f32
    %325 = vector.broadcast %cst_136 : f32 to vector<16x512xf32>
    %326 = arith.mulf %322, %325 : vector<16x512xf32>
    %327 = math.erf %326 : vector<16x512xf32>
    %cst_137 = arith.constant 1.000000e+00 : f32
    %328 = vector.broadcast %cst_137 : f32 to vector<16x512xf32>
    %329 = arith.addf %328, %327 : vector<16x512xf32>
    %330 = arith.mulf %324, %329 : vector<16x512xf32>
    %c1_138 = arith.constant 1 : index
    %c0_139 = arith.constant 0 : index
    %c0_140 = arith.constant 0 : index
    %331 = vector.load %arg12[%c1_138, %c0_139, %c0_140] : memref<2x512x128xf32, #tpu.memory_space<vmem>>, vector<1x512x128xf32>
    %332 = vector.shape_cast %331 : vector<1x512x128xf32> to vector<512x128xf32>
    %cst_141 = arith.constant dense<0.000000e+00> : vector<16x128xf32>
    %333 = tpu.matmul %330, %332, %cst_141 {dimension_numbers = #tpu.dot_dimension_numbers<[1], [0], [0], [1], [0, 0, 1, 1], [], []>} : vector<16x512xf32>, vector<512x128xf32>, vector<16x128xf32> -> vector<16x128xf32>
    %c1_142 = arith.constant 1 : index
    %c0_143 = arith.constant 0 : index
    %c0_144 = arith.constant 0 : index
    %334 = vector.load %arg13[%c1_142, %c0_143, %c0_144] : memref<2x1x128xf32, #tpu.memory_space<vmem>>, vector<1x1x128xf32>
    %335 = vector.shape_cast %334 : vector<1x1x128xf32> to vector<1x128xf32>
    %336 = vector.broadcast %335 : vector<1x128xf32> to vector<16x128xf32>
    %337 = arith.addf %333, %336 : vector<16x128xf32>
    %338 = arith.addf %337, %315 : vector<16x128xf32>
    %c1_145 = arith.constant 1 : index
    %c0_146 = arith.constant 0 : index
    %c0_147 = arith.constant 0 : index
    %339 = vector.load %arg14[%c1_145, %c0_146, %c0_147] : memref<2x1x128xf32, #tpu.memory_space<vmem>>, vector<1x1x128xf32>
    %340 = vector.shape_cast %339 : vector<1x1x128xf32> to vector<1x128xf32>
    %c1_148 = arith.constant 1 : index
    %c0_149 = arith.constant 0 : index
    %c0_150 = arith.constant 0 : index
    %341 = vector.load %arg15[%c1_148, %c0_149, %c0_150] : memref<2x1x128xf32, #tpu.memory_space<vmem>>, vector<1x1x128xf32>
    %342 = vector.shape_cast %341 : vector<1x1x128xf32> to vector<1x128xf32>
    %cst_151 = arith.constant dense<0.000000e+00> : vector<16xf32>
    %343 = vector.multi_reduction <add>, %338, %cst_151 [1] : vector<16x128xf32> to vector<16xf32>
    %344 = vector.shape_cast %343 : vector<16xf32> to vector<16x1xf32>
    %cst_152 = arith.constant 1.280000e+02 : f32
    %345 = vector.broadcast %cst_152 : f32 to vector<16x1xf32>
    %346 = arith.divf %344, %345 : vector<16x1xf32>
    %347 = vector.broadcast %346 : vector<16x1xf32> to vector<16x128xf32>
    %348 = arith.subf %338, %347 : vector<16x128xf32>
    %349 = arith.mulf %348, %348 : vector<16x128xf32>
    %cst_153 = arith.constant dense<0.000000e+00> : vector<16xf32>
    %350 = vector.multi_reduction <add>, %349, %cst_153 [1] : vector<16x128xf32> to vector<16xf32>
    %351 = vector.shape_cast %350 : vector<16xf32> to vector<16x1xf32>
    %cst_154 = arith.constant 1.280000e+02 : f32
    %352 = vector.broadcast %cst_154 : f32 to vector<16x1xf32>
    %353 = arith.divf %351, %352 : vector<16x1xf32>
    %354 = vector.broadcast %346 : vector<16x1xf32> to vector<16x128xf32>
    %355 = arith.subf %338, %354 : vector<16x128xf32>
    %cst_155 = arith.constant 9.99999996E-13 : f32
    %356 = vector.broadcast %cst_155 : f32 to vector<16x1xf32>
    %357 = arith.addf %353, %356 : vector<16x1xf32>
    %358 = math.rsqrt %357 : vector<16x1xf32>
    %359 = vector.broadcast %358 : vector<16x1xf32> to vector<16x128xf32>
    %360 = arith.mulf %355, %359 : vector<16x128xf32>
    %361 = vector.broadcast %340 : vector<1x128xf32> to vector<16x128xf32>
    %362 = arith.mulf %360, %361 : vector<16x128xf32>
    %363 = vector.broadcast %342 : vector<1x128xf32> to vector<16x128xf32>
    %364 = arith.addf %362, %363 : vector<16x128xf32>
    %365 = vector.shape_cast %364 : vector<16x128xf32> to vector<2x8x128xf32>
    %366 = vector.extract_strided_slice %365 {offsets = [0, 0, 0], sizes = [2, 1, 128], strides = [1, 1, 1]} : vector<2x8x128xf32> to vector<2x1x128xf32>
    %367 = vector.shape_cast %366 : vector<2x1x128xf32> to vector<2x128xf32>
    %c0_156 = arith.constant 0 : index
    %c0_157 = arith.constant 0 : index
    %368 = vector.load %arg16[%c0_156, %c0_157] : memref<128x128xf32, #tpu.memory_space<vmem>>, vector<128x128xf32>
    %cst_158 = arith.constant dense<0.000000e+00> : vector<2x128xf32>
    %369 = tpu.matmul %367, %368, %cst_158 {dimension_numbers = #tpu.dot_dimension_numbers<[1], [0], [0], [1], [0, 0, 1, 1], [], []>} : vector<2x128xf32>, vector<128x128xf32>, vector<2x128xf32> -> vector<2x128xf32>
    %c0_159 = arith.constant 0 : index
    %c0_160 = arith.constant 0 : index
    %370 = vector.load %arg17[%c0_159, %c0_160] : memref<1x128xf32, #tpu.memory_space<vmem>>, vector<1x128xf32>
    %371 = vector.broadcast %370 : vector<1x128xf32> to vector<2x128xf32>
    %372 = arith.addf %369, %371 : vector<2x128xf32>
    %373 = math.tanh %372 : vector<2x128xf32>
    %c0_161 = arith.constant 0 : index
    %c0_162 = arith.constant 0 : index
    %374 = vector.load %arg18[%c0_161, %c0_162] : memref<128x128xf32, #tpu.memory_space<vmem>>, vector<128x128xf32>
    %cst_163 = arith.constant dense<0.000000e+00> : vector<2x128xf32>
    %375 = tpu.matmul %373, %374, %cst_163 {dimension_numbers = #tpu.dot_dimension_numbers<[1], [0], [0], [1], [0, 0, 1, 1], [], []>} : vector<2x128xf32>, vector<128x128xf32>, vector<2x128xf32> -> vector<2x128xf32>
    %c0_164 = arith.constant 0 : index
    %c0_165 = arith.constant 0 : index
    %376 = vector.load %arg19[%c0_164, %c0_165] : memref<1x128xf32, #tpu.memory_space<vmem>>, vector<1x128xf32>
    %377 = vector.broadcast %376 : vector<1x128xf32> to vector<2x128xf32>
    %378 = arith.addf %375, %377 : vector<2x128xf32>
    %c0_166 = arith.constant 0 : index
    %c0_167 = arith.constant 0 : index
    %379 = vector.load %arg20[%c0_166, %c0_167] : memref<2x128xf32, #tpu.memory_space<vmem>>, vector<2x128xf32>
    tpu.vector_store %arg20[%c0_166, %c0_167], %378 {strides = array<i32>} : memref<2x128xf32, #tpu.memory_space<vmem>>, vector<2x128xf32>,
    return
  }
}

</mosaic_0001>

<bundles_post_ra>
// kernel: predict_sentiment.1
= control target key start
LH: loop header
LB: loop body
LE: loop exit
PB: predicated region body
PF: predicated region fallthrough
CT: control target
= control target key end

     0   :  { %s7342_s0 = inlined_call_operand.vmem [shape: f32[16,128], index: 0, kind: input, shape index: {}]   ;;  %s7343_s1 = inlined_call_operand.vmem [shape: f32[2,8], index: 1, kind: input, shape index: {}]   ;;  %s7344_s2 = inlined_call_operand.vmem [shape: f32[1,128], index: 2, kind: input, shape index: {}]   ;;  %s7345_s3 = inlined_call_operand.vmem [shape: f32[1,128], index: 3, kind: input, shape index: {}]   ;;  %s7346_s4 = inlined_call_operand.hbm [shape: f32[2,128,384], index: 4, kind: input, shape index: {}]   ;;  %s7347_s5 = inlined_call_operand.vmem [shape: f32[2,1,384], index: 5, kind: input, shape index: {}]   ;;  %s7348_s6 = inlined_call_operand.hbm [shape: f32[2,128,128], index: 6, kind: input, shape index: {}]   ;;  %s7349_s7 = inlined_call_operand.vmem [shape: f32[2,1,128], index: 7, kind: input, shape index: {}]   ;;  %s7350_s8 = inlined_call_operand.vmem [shape: f32[2,1,128], index: 8, kind: input, shape index: {}]   ;;  %s7351_s9 = inlined_call_operand.vmem [shape: f32[2,1,128], index: 9, kind: input, shape index: {}]   ;;  %s7352_s10 = inlined_call_operand.hbm [shape: f32[2,128,512], index: 10, kind: input, shape index: {}]   ;;  %s7353_s11 = inlined_call_operand.vmem [shape: f32[2,1,512], index: 11, kind: input, shape index: {}]   ;;  %s7354_s12 = inlined_call_operand.hbm [shape: f32[2,512,128], index: 12, kind: input, shape index: {}]   ;;  %s7355_s13 = inlined_call_operand.vmem [shape: f32[2,1,128], index: 13, kind: input, shape index: {}]   ;;  %s7356_s14 = inlined_call_operand.vmem [shape: f32[2,1,128], index: 14, kind: input, shape index: {}]   ;;  %s7357_s15 = inlined_call_operand.vmem [shape: f32[2,1,128], index: 15, kind: input, shape index: {}]   ;;  %s7358_s16 = inlined_call_operand.vmem [shape: f32[128,128], index: 16, kind: input, shape index: {}]   ;;  %s7359_s17 = inlined_call_operand.vmem [shape: f32[1,128], index: 17, kind: input, shape index: {}]   ;;  %s7360_s18 = inlined_call_operand.hbm [shape: f32[128,128], index: 18, kind: input, shape index: {}]   ;;  %s7361_s19 = inlined_call_operand.vmem [shape: f32[1,128], index: 19, kind: input, shape index: {}]   ;;  %s7362_s20 = inlined_call_operand.hbm [shape: f32[2,128], index: 20, kind: output, shape index: {}]  }
   0x1   :  { %7366 = sst [smem:[#allocation16_spill]] %s7342_s0 }
   0x2   :  { %7367 = sst [smem:[#allocation17_spill]] %s7343_s1 }
   0x3   :  { %7368 = sst [smem:[#allocation18_spill]] %s7344_s2 }
   0x4   :  { %7369 = sst [smem:[#allocation19_spill]] %s7345_s3 }
   0x5   :  { %7370 = sst [smem:[#allocation20_spill]] %s7346_s4 }
   0x6   :  { %7371 = sst [smem:[#allocation21_spill]] %s7362_s20 }
   0x7   :  { %25 = vsyncpa [#allocation3], 0 }
   0x8   :  { %26 = vsyncpa [#allocation6], 0 }
   0x9   :  { %27 = vsyncpa [#allocation9], 0 }
   0xa   :  { %28 = vsyncpa [#allocation4], 0  ;;  %s6521_s1 = smov [#allocation5]   ;;  %s6381_s2 = scalar_lea.hbm %s7348_s6, 4096 }
   0xb   :  { %s56_s22 = sshll.u32 %s6521_s1, 4  ;;  %p6382_p0 = scmp.ne.s32.totalorder %s7348_s6, %s6381_s2  ;;  %s57_s22 = int_to_ptr.vmem [resolvable:$true] %s56_s22 }
   0xc   :  { %p6385_p1 = scmp.lt.u32.totalorder %s6381_s2, %s7348_s6 }
   0xe   :  { %p6387_p2 = pnand %p6385_p1, %p6382_p0 }
  0x10   :  { %6390 = shalt.err (!%p6387_p2)
}
  0x11   :  { %s6391_s28 = scalar_lea.vmem %s57_s22, 4096  ;;  %p6396_p4 = scmp.lt.s32.totalorder %s57_s22, %s57_s22 }
  0x12   :  { %p6392_p3 = scmp.ne.s32.totalorder %s57_s22, %s6391_s28  ;;  %p6397_p5 = scmp.lt.s32.totalorder %s6391_s28, %s6391_s28 }
  0x14   :  { %p6398_p6 = por %p6397_p5, %p6396_p4 }
  0x16   :  { %p6399_p7 = pnand %p6398_p6, %p6392_p3 }
  0x18   :  { %6402 = shalt.err (!%p6399_p7)
}
  0x19   :  { %s6522_s4 = smov 128   ;;  %s6523_s29 = smov 8  }
  0x1a   :  { %62 = dma.hbm_to_vmem [thread:$0]  %s7348_s6, 4096, %s57_s22, [#allocation6], %s6522_s4, %s6522_s4, %s6523_s29  }
  0x1b   :  { %s6524_s21 = smov [#allocation8]   ;;  %s6525_s23 = smov [#allocation2]  }
  0x1c   :  { %s88_s1 = sshll.u32 %s6524_s21, 4  ;;  %s42_s24 = sshll.u32 %s6525_s23, 4  ;;  %s89_s1 = int_to_ptr.vmem [resolvable:$true] %s88_s1  ;;  %s43_s24 = int_to_ptr.vmem [resolvable:$true] %s42_s24 }
  0x1d   :  { %s6403_s3 = scalar_lea.hbm %s7354_s12, 16384 }
  0x1e   :  { %p6404_p8 = scmp.ne.s32.totalorder %s7354_s12, %s6403_s3  ;;  %p6407_p9 = scmp.lt.u32.totalorder %s6403_s3, %s7354_s12 }
  0x20   :  { %p6409_p10 = pnand %p6407_p9, %p6404_p8 }
  0x22   :  { %6412 = shalt.err (!%p6409_p10)
}
  0x23   :  { %s6413_s6 = scalar_lea.vmem %s89_s1, 16384  ;;  %p6418_p12 = scmp.lt.s32.totalorder %s89_s1, %s89_s1 }
  0x24   :  { %p6414_p11 = scmp.ne.s32.totalorder %s89_s1, %s6413_s6  ;;  %p6419_p13 = scmp.lt.s32.totalorder %s6413_s6, %s6413_s6 }
  0x26   :  { %p6420_p0 = por %p6419_p13, %p6418_p12 }
  0x28   :  { %p6421_p1 = pnand %p6420_p0, %p6414_p11 }
  0x2a   :  { %6424 = shalt.err (!%p6421_p1)
}
  0x2b   :  { %94 = dma.hbm_to_vmem [thread:$0]  %s7354_s12, 16384, %s89_s1, [#allocation9], %s6522_s4, %s6522_s4, %s6523_s29  }
  0x2c   :  { %s7372_s21 = sld [smem:[#allocation20_spill]] }
  0x32   :  { %s6425_s23 = scalar_lea.hbm %s7372_s21, 12288 }
  0x33   :  { %p6426_p2 = scmp.ne.s32.totalorder %s7372_s21, %s6425_s23  ;;  %p6429_p3 = scmp.lt.u32.totalorder %s6425_s23, %s7372_s21 }
  0x35   :  { %p6431_p4 = pnand %p6429_p3, %p6426_p2 }
  0x37   :  { %6434 = shalt.err (!%p6431_p4)
}
  0x38   :  { %s6435_s27 = scalar_lea.vmem %s43_s24, 12288  ;;  %p6440_p6 = scmp.lt.s32.totalorder %s43_s24, %s43_s24 }
  0x39   :  { %p6436_p5 = scmp.ne.s32.totalorder %s43_s24, %s6435_s27  ;;  %p6441_p7 = scmp.lt.s32.totalorder %s6435_s27, %s6435_s27 }
  0x3b   :  { %p6442_p8 = por %p6441_p7, %p6440_p6 }
  0x3d   :  { %p6443_p9 = pnand %p6442_p8, %p6436_p5 }
  0x3f   :  { %6446 = shalt.err (!%p6443_p9)
}
  0x40   :  { %s6526_s12 = smov 384   ;;  %s6527_s1 = smov 24  }
  0x41   :  { %48 = dma.hbm_to_vmem [thread:$0]  %s7372_s21, 12288, %s43_s24, [#allocation3], %s6526_s12, %s6526_s12, %s6527_s1  }
  0x42   :  { %s6528_s22 = smov [#allocation7]   ;;  %s6447_s23 = scalar_lea.hbm %s7352_s10, 16384 }
  0x43   :  { %s74_s30 = sshll.u32 %s6528_s22, 4  ;;  %p6448_p10 = scmp.ne.s32.totalorder %s7352_s10, %s6447_s23  ;;  %s75_s30 = int_to_ptr.vmem [resolvable:$true] %s74_s30 }
  0x44   :  { %p6451_p11 = scmp.lt.u32.totalorder %s6447_s23, %s7352_s10 }
  0x46   :  { %p6453_p12 = pnand %p6451_p11, %p6448_p10 }
  0x48   :  { %6456 = shalt.err (!%p6453_p12)
}
  0x49   :  { %s6457_s27 = scalar_lea.vmem %s75_s30, 16384  ;;  %p6462_p0 = scmp.lt.s32.totalorder %s75_s30, %s75_s30 }
  0x4a   :  { %p6458_p13 = scmp.ne.s32.totalorder %s75_s30, %s6457_s27  ;;  %p6463_p1 = scmp.lt.s32.totalorder %s6457_s27, %s6457_s27 }
  0x4c   :  { %p6464_p2 = por %p6463_p1, %p6462_p0 }
  0x4e   :  { %p6465_p3 = pnand %p6464_p2, %p6458_p13 }
  0x50   :  { %6468 = shalt.err (!%p6465_p3)
}
  0x51   :  { %s6529_s24 = smov 512   ;;  %s6530_s21 = smov 32  }
  0x52   :  { %80 = dma.hbm_to_vmem [thread:$0]  %s7352_s10, 16384, %s75_s30, [#allocation6], %s6529_s24, %s6529_s24, %s6530_s21  }
  0x53   :  { %s6531_s28 = smov [#allocation10]   ;;  %s6469_s20 = scalar_lea.hbm %s7360_s18, 2048 }
  0x54   :  { %s110_s6 = sshll.u32 %s6531_s28, 4  ;;  %p6470_p4 = scmp.ne.s32.totalorder %s7360_s18, %s6469_s20  ;;  %s111_s6 = int_to_ptr.vmem [resolvable:$true] %s110_s6 }
  0x55   :  { %p6473_p5 = scmp.lt.u32.totalorder %s6469_s20, %s7360_s18 }
  0x57   :  { %p6475_p6 = pnand %p6473_p5, %p6470_p4 }
  0x59   :  { %6478 = shalt.err (!%p6475_p6)
}
  0x5a   :  { %s6479_s26 = scalar_lea.vmem %s111_s6, 2048  ;;  %p6484_p8 = scmp.lt.s32.totalorder %s111_s6, %s111_s6 }
  0x5b   :  { %p6480_p7 = scmp.ne.s32.totalorder %s111_s6, %s6479_s26  ;;  %p6485_p9 = scmp.lt.s32.totalorder %s6479_s26, %s6479_s26 }
  0x5d   :  { %p6486_p10 = por %p6485_p9, %p6484_p8 }
  0x5f   :  { %p6487_p11 = pnand %p6486_p10, %p6480_p7 }
  0x61   :  { %6490 = shalt.err (!%p6487_p11)
}
  0x62   :  { %116 = dma.hbm_to_vmem [thread:$0]  %s7360_s18, 2048, %s111_s6, [#allocation9], %s6522_s4, %s6522_s4, %s6523_s29  }
  0x63   :  { %6513 = dma.done.wait [#allocation3], 12288  }
  0x64   :  { %6514 = vsyncadd [#allocation3], 4294955008 }
  0x65   :  { %6515 = dma.done.wait [#allocation6], 20480  }
  0x66   :  { %6516 = vsyncadd [#allocation6], 4294946816 }
  0x67   :  { %6517 = dma.done.wait [#allocation9], 18432  }
  0x68   :  { %6518 = vsyncadd [#allocation9], 4294948864  ;;  %s7373_s12 = sld [smem:[#allocation16_spill]]  ;;  %v202_v2 = vld [vmem:[#allocation2 + $0x8] sm:$0xff]  ;;  %v205_v3 = vld [vmem:[#allocation2 + $0x20] sm:$0xff]  ;;  %s7374_s29 = sld [smem:[#allocation18_spill]] }
  0x69   :  { %v201_v4 = vld [vmem:[#allocation2] sm:$0xff]  ;;  %v5719_v5 = vpack.c.bf16 %v205_v3, %v202_v2  ;;  %v204_v6 = vld [vmem:[#allocation2 + $0x18] sm:$0xff]  ;;  %v211_v8 = vld [vmem:[#allocation2 + $0x50] sm:$0xff]  ;;  %s7375_s0 = sld [smem:[#allocation19_spill]]  ;;  %vm6533_vm0 = vmmov 0   ;;  %vm418_vm1 = vcmask 261120  }
  0x6a   :  { %v208_v7 = vld [vmem:[#allocation2 + $0x38] sm:$0xff]  ;;  %v5721_v9 = vpack.c.bf16 %v204_v6, %v201_v4  ;;  %v203_v11 = vld [vmem:[#allocation2 + $0x10] sm:$0xff]  ;;  %v206_v12 = vld [vmem:[#allocation2 + $0x28] sm:$0xff]  ;;  %v6532_v4 = vmov 0.0   ;;  %s7376_s3 = sld [smem:[#allocation17_spill]]  ;;  %vm585_vm2 = vcmask 64512  }
  0x6b   :  { %v5723_v10 = vpack.c.bf16 %v211_v8, %v208_v7  ;;  %v207_v13 = vld [vmem:[#allocation2 + $0x30] sm:$0xff]  ;;  %5720 = vmatprep.subr.bf16.mxu0 %v5719_v5  ;;  %v5751_v14 = vpack.c.bf16 %v206_v12, %v203_v11  ;;  %v210_v15 = vld [vmem:[#allocation2 + $0x48] sm:$0xff]  ;;  %v217_v17 = vld [vmem:[#allocation2 + $0x80] sm:$0xff]  ;;  %330 = vmatprep.mubr.f32.mxu0 %v6532_v4  ;;  %s6535_s26 = smov 96   ;;  %s6536_s10 = smov 64   ;;  %vm1784_vm3 = vcmask 523264  }
  0x6c   :  { %v214_v16 = vld [vmem:[#allocation2 + $0x68] sm:$0xff]  ;;  %5722 = vmatpush1.bf16.msra.mxu0 %v5721_v9  ;;  %v5725_v18 = vpack.c.bf16 %v210_v15, %v207_v13  ;;  %v209_v19 = vld [vmem:[#allocation2 + $0x40] sm:$0xff]  ;;  %v212_v20 = vld [vmem:[#allocation2 + $0x58] sm:$0xff]  ;;  %vm1787_vm4 = vcmask 785408   ;;  %vm4769_vm5 = vcmask 1041409  }
  0x6d   :  { %5724 = vmatprep.subr.bf16.mxu0 %v5723_v10  ;;  %5752 = vmatprep.subr.bf16.mxu1 %v5751_v14  ;;  %v5727_v21 = vpack.c.bf16 %v217_v17, %v214_v16  ;;  %v5755_v22 = vpack.c.bf16 %v212_v20, %v209_v19  ;;  %v213_v23 = vld [vmem:[#allocation2 + $0x60] sm:$0xff]  ;;  %v216_v24 = vld [vmem:[#allocation2 + $0x78] sm:$0xff]  ;;  %v223_v35 = vld [vmem:[#allocation2 + $0xb0] sm:$0xff] }
  0x6e   :  { %v134_v0 = vld [vmem:[%s7373_s12] sm:$0xff]  ;;  %v135_v1 = vld [vmem:[%s7373_s12 + $0x8] sm:$0xff]  ;;  %5754 = vmatpush3.bf16.msra.mxu1 %v5751_v14  ;;  %v5729_v25 = vpack.c.bf16 %v216_v24, %v213_v23  ;;  %v220_v34 = vld [vmem:[#allocation2 + $0x98] sm:$0xff] }
  0x6f   :  { %138 = vadd.xlane.f32.xlu0 %v134_v0  ;;  %5756 = vmatprep.subr.bf16.mxu1 %v5755_v22  ;;  %v215_v36 = vld [vmem:[#allocation2 + $0x70] sm:$0xff]  ;;  %v5731_v37 = vpack.c.bf16 %v223_v35, %v220_v34  ;;  %v218_v38 = vld [vmem:[#allocation2 + $0x88] sm:$0xff]  ;;  %v229_v44 = vld [vmem:[#allocation2 + $0xe0] sm:$0xff] }
  0x70   :  { %5726 = vmatpush1.bf16.msra.mxu0 %v5725_v18  ;;  %v219_v39 = vld [vmem:[#allocation2 + $0x90] sm:$0xff]  ;;  %v222_v40 = vld [vmem:[#allocation2 + $0xa8] sm:$0xff]  ;;  %v5759_v41 = vpack.c.bf16 %v218_v38, %v215_v36  ;;  %v221_v45 = vld [vmem:[#allocation2 + $0xa0] sm:$0xff] }
  0x71   :  { %5728 = vmatprep.subr.bf16.mxu0 %v5727_v21  ;;  %v5733_v42 = vpack.c.bf16 %v222_v40, %v219_v39  ;;  %v226_v43 = vld [vmem:[#allocation2 + $0xc8] sm:$0xff]  ;;  %v224_v47 = vld [vmem:[#allocation2 + $0xb8] sm:$0xff]  ;;  %v225_v48 = vld [vmem:[#allocation2 + $0xc0] sm:$0xff] }
  0x72   :  { %5758 = vmatpush3.bf16.msra.mxu1 %v5755_v22  ;;  %v5735_v46 = vpack.c.bf16 %v229_v44, %v226_v43  ;;  %v228_v49 = vld [vmem:[#allocation2 + $0xd8] sm:$0xff]  ;;  %v5763_v50 = vpack.c.bf16 %v224_v47, %v221_v45  ;;  %v235_v53 = vld [vmem:[#allocation2 + $0x110] sm:$0xff]  ;;  %v230_v56 = vld [vmem:[#allocation2 + $0xe8] sm:$0xff] }
  0x73   :  { %140 = vadd.xlane.f32.xlu0 %v135_v1  ;;  %5760 = vmatprep.subr.bf16.mxu1 %v5759_v41  ;;  %v5737_v51 = vpack.c.bf16 %v228_v49, %v225_v48  ;;  %v232_v52 = vld [vmem:[#allocation2 + $0xf8] sm:$0xff]  ;;  %v227_v54 = vld [vmem:[#allocation2 + $0xd0] sm:$0xff]  ;;  %v234_v58 = vld [vmem:[#allocation2 + $0x108] sm:$0xff] }
  0x74   :  { %5730 = vmatpush1.bf16.msra.mxu0 %v5729_v25  ;;  %v5739_v55 = vpack.c.bf16 %v235_v53, %v232_v52  ;;  %v231_v57 = vld [vmem:[#allocation2 + $0xf0] sm:$0xff]  ;;  %v5767_v59 = vpack.c.bf16 %v230_v56, %v227_v54  ;;  %v238_v61 = vld [vmem:[#allocation2 + $0x128] sm:$0xff]  ;;  %v241_v62 = vld [vmem:[#allocation2 + $0x140] sm:$0xff]  ;;  %v6534_v56 = vmov 1966171168  }
  0x75   :  { %5732 = vmatprep.subr.bf16.mxu0 %v5731_v37  ;;  %v5741_v60 = vpack.c.bf16 %v234_v58, %v231_v57  ;;  %v233_v63 = vld [vmem:[#allocation2 + $0x100] sm:$0xff]  ;;  %v240_v3 = vld [vmem:[#allocation2 + $0x138] sm:$0xff]  ;;  %v247_v8 = vld [vmem:[#allocation2 + $0x170] sm:$0xff]  ;;  %v188_v57 = vunpack.c.l.s4 %v6534_v56 }
  0x76   :  { %5762 = vmatpush3.bf16.msra.mxu1 %v5759_v41  ;;  %v237_v2 = vld [vmem:[#allocation2 + $0x120] sm:$0xff]  ;;  %v244_v7 = vld [vmem:[#allocation2 + $0x158] sm:$0xff]  ;;  %v239_v9 = vld [vmem:[#allocation2 + $0x130] sm:$0xff] }
  0x77   :  { %5764 = vmatprep.subr.bf16.mxu1 %v5763_v50  ;;  %v5745_v6 = vpack.c.bf16 %v240_v3, %v237_v2  ;;  %v5747_v10 = vpack.c.bf16 %v247_v8, %v244_v7  ;;  %v242_v11 = vld [vmem:[#allocation2 + $0x148] sm:$0xff]  ;;  %v243_v12 = vld [vmem:[#allocation2 + $0x150] sm:$0xff]  ;;  %v245_v16 = vld [vmem:[#allocation2 + $0x160] sm:$0xff]  ;;  %v189_v58 = vunpack.c.0.s8 %v188_v57 }
  0x78   :  { %5734 = vmatpush1.bf16.msra.mxu0 %v5733_v42  ;;  %v246_v13 = vld [vmem:[#allocation2 + $0x168] sm:$0xff]  ;;  %v5775_v14 = vpack.c.bf16 %v242_v11, %v239_v9  ;;  %v248_v17 = vld [vmem:[#allocation2 + $0x178] sm:$0xff]  ;;  %v249_v38 = vld [vmem:[%s7347_s5] sm:$0x7] }
  0x79   :  { %5736 = vmatprep.subr.bf16.mxu0 %v5735_v46  ;;  %v5749_v15 = vpack.c.bf16 %v246_v13, %v243_v12  ;;  %v5779_v18 = vpack.c.bf16 %v248_v17, %v245_v16 }
  0x7a   :  { %5766 = vmatpush3.bf16.msra.mxu1 %v5763_v50 }
  0x7b   :  { %5768 = vmatprep.subr.bf16.mxu1 %v5767_v59 }
  0x7c   :  { %5738 = vmatpush1.bf16.msra.mxu0 %v5737_v51 }
  0x7d   :  { %5740 = vmatprep.subr.bf16.mxu0 %v5739_v55 }
  0x7e   :  { %5770 = vmatpush3.bf16.msra.mxu1 %v5767_v59 }
  0x80   :  { %5742 = vmatpush1.bf16.msra.mxu0 %v5741_v60  ;;  %v4956_v60 = vld.sshfl [vmem:[%s7376_s3] sm:$0x11 pattern:$0x75316420] }
  0xfc   :  { %v139_v26 = vpop.xlane.xlu0 %138 }
  0xfd   :  { %v143_v27 = vmul.f32 0.0078125, %v139_v26  ;;  %v4954_v26 = vld [vmem:[%s7374_s29] ss:$0 sm:$0xff] }
  0xff   :  { %v6720_v28 = vsub.f32 %v134_v0, %v143_v27  ;;  %v5743_v0 = vpack.c.bf16 %v241_v62, %v238_v61  ;;  %v186_v62 = vcombine.high %v4956_v60, %v4956_v60 }
 0x100   :  { %v141_v29 = vpop.xlane.xlu0 %140 }
 0x101   :  { %v144_v30 = vmul.f32 0.0078125, %v141_v29  ;;  %v147_v31 = vmul.f32 %v6720_v28, %v6720_v28  ;;  %5744 = vmatprep.subr.bf16.mxu0 %v5743_v0  ;;  %v4955_v29 = vld [vmem:[%s7375_s0] ss:$0 sm:$0xff]  ;;  %s6538_s0 = smov [#allocation11]  }
 0x102   :  { %5746 = vmatpush1.bf16.msra.mxu0 %v5745_v6  ;;  %s4943_s20 = sshll.u32 %s6538_s0, 4  ;;  %s4944_s20 = int_to_ptr.vmem [resolvable:$true] %s4943_s20 }
 0x103   :  { %v6724_v32 = vsub.f32 %v135_v1, %v144_v30  ;;  %149 = vadd.xlane.f32.xlu1 %v147_v31  ;;  %v236_v1 = vld [vmem:[#allocation2 + $0x118] sm:$0xff]  ;;  %5748 = vmatprep.subr.bf16.mxu0 %v5747_v10  ;;  %s6491_s23 = scalar_lea.vmem %s4944_s20, 32  ;;  %p6496_p13 = scmp.lt.s32.totalorder %s4944_s20, %s4944_s20 }
 0x104   :  { %v5771_v5 = vpack.c.bf16 %v236_v1, %v233_v63  ;;  %p6492_p12 = scmp.ne.s32.totalorder %s4944_s20, %s6491_s23  ;;  %p6497_p0 = scmp.lt.s32.totalorder %s6491_s23, %s6491_s23 }
 0x105   :  { %v148_v33 = vmul.f32 %v6724_v32, %v6724_v32 }
 0x106   :  { %5772 = vmatprep.subr.bf16.mxu1 %v5771_v5  ;;  %5750 = vmatpush1.bf16.msra.mxu0 %v5749_v15  ;;  %p6498_p1 = por %p6497_p0, %p6496_p13 }
 0x107   :  { %151 = vadd.xlane.f32.xlu1 %v148_v33  ;;  %5774 = vmatpush3.bf16.msra.mxu1 %v5771_v5 }
 0x108   :  { %5776 = vmatprep.subr.bf16.mxu1 %v5775_v14  ;;  %5429 = vmatprep.subr.mxu0 %v6532_v4  ;;  %p6499_p2 = pnand %p6498_p1, %p6492_p12 }
 0x10b   :  { %5778 = vmatpush3.bf16.msra.mxu1 %v5775_v14 }
 0x10c   :  { %5780 = vmatprep.subr.bf16.mxu1 %v5779_v18 }
 0x10f   :  { %5782 = vmatpush3.bf16.msra.mxu1 %v5779_v18 }
 0x110   :  { %5384 = vmatprep.subr.mxu1 %v6532_v4 }
 0x190   :  { %v150_v19 = vpop.xlane.xlu1 %149 }
 0x191   :  { %v153_v20 = vmul.f32 0.0078125, %v150_v19 }
 0x193   :  { %v155_v21 = vadd.f32 1e-12, %v153_v20 }
 0x194   :  { %v152_v22 = vpop.xlane.xlu1 %151 }
 0x195   :  { %6263 = vrsqrt.f32 %v155_v21  ;;  %v154_v23 = vmul.f32 0.0078125, %v152_v22 }
 0x197   :  { %v156_v24 = vadd.f32 1e-12, %v154_v23 }
 0x199   :  { %6265 = vrsqrt.f32 %v156_v24 }
 0x19f   :  { %v6264_v25 = vpop.eup %6263 }
 0x1a0   :  { %v159_v27 = vmul.f32 %v6264_v25, %v6720_v28  ;;  %v190_v28 = vlaneseq }
 0x1a2   :  { %v167_v30 = vmul.f32 %v4954_v26, %v159_v27 }
 0x1a3   :  { %v6266_v31 = vpop.eup %6265 }
 0x1a4   :  { %v6738_v33 = vadd.f32 %v4955_v29, %v167_v30  ;;  %v160_v34 = vmul.f32 %v6266_v31, %v6724_v32  ;;  %v6752_v32 = vshrl.u32 %v190_v28, 7 }
 0x1a6   :  { %331 = vmatmul.mubr.f32.vlgmr.msra.gmra.mrb[0].mxu0 %v6738_v33  ;;  %5381 = vmatprep.mubr.f32.mxu1 %v6738_v33  ;;  %v168_v35 = vmul.f32 %v4954_v26, %v160_v34  ;;  %v6755_v37 = vsub.s32 1, %v6752_v32  ;;  %v6761_v39 = vsub.s32 0, %v6752_v32  ;;  %v6764_v40 = vsub.s32 2, %v6752_v32 }
 0x1a7   :  { %336 = vmatprep.mubr.f32.mxu0 %v6532_v4  ;;  %v192_v59 = vsub.s32 %v189_v58, %v6752_v32 }
 0x1a8   :  { %v6744_v36 = vadd.f32 %v4955_v29, %v168_v35  ;;  %v258_v41 = vrot.slane %v249_v38, %v6755_v37  ;;  %v254_v43 = vrot.slane %v249_v38, %v6761_v39  ;;  %v262_v45 = vrot.slane %v249_v38, %v6764_v40 }
 0x1a9   :  { %v193_v61 = vrot.slane %v4956_v60, %v192_v59  ;;  %v200_v0 = vrot.slane %v186_v62, %v192_v59 }
 0x1aa   :  { %337 = vmatmul.mubr.f32.gmra.mrb[2].mxu0 %v6744_v36  ;;  %5382 = vmatmul.mubr.f32.vlgmr.msra.gmra.mrb[0].mxu1 %v6744_v36 }
 0x1ab   :  { %5386 = vmatprep.mubr.msk.f32.mxu1 %vm6533_vm0, %v6532_v4  ;;  %5431 = vmatprep.mubr.msk.f32.mxu0 %vm6533_vm0, %v6532_v4  ;;  %v6802_v63 = vrot.slane %v193_v61, %v6761_v39  ;;  %v6806_v6 = vrot.slane %v200_v0, %v6761_v39 }
 0x279   :  { %v332_v42 = vpop.f32.mrb[0].mxu0 }
 0x27a   :  { %v334_v44 = vpop.f32.mrb[1].mxu0  ;;  %v6773_v49 = vadd.f32 %v332_v42, %v254_v43 }
 0x27b   :  { %v6769_v46 = vadd.f32 %v334_v44, %v258_v41 }
 0x27d   :  { %v338_v47 = vpop.f32.mrb[2].mxu0  ;;  %v5383_v48 = vpop.f32.mrb[0].mxu1  ;;  %5385 = vmatpush3.xpose.msk.msra.mxu1 %vm418_vm1, %v6769_v46 }
 0x27e   :  { %v6775_v50 = vadd.f32 %v5383_v48, %v262_v45  ;;  %v340_v51 = vpop.f32.mrb[3].mxu0  ;;  %v409_v52 = vpop.f32.mrb[1].mxu1  ;;  %5389 = vmatprep.subr.mxu1 %v6532_v4  ;;  %v6786_v54 = vadd.f32 %v338_v47, %v254_v43 }
 0x27f   :  { %v6778_v53 = vadd.f32 %v340_v51, %v258_v41  ;;  %v6789_v55 = vadd.f32 %v409_v52, %v262_v45 }
 0x280   :  { %5387 = vmatmul.mubr.msk.f32.vlgmr.msra.gmra.mrb[2].mxu1 %vm418_vm1, %v6773_v49 }
 0x281   :  { %5390 = vmatpush3.xpose.msk.msra.mxu1 %vm418_vm1, %v6778_v53  ;;  %5391 = vmatprep.mubr.msk.f32.mxu1 %vm6533_vm0, %v6532_v4 }
 0x282   :  { %5394 = vmatprep.subr.mxu1 %v6532_v4 }
 0x284   :  { %5392 = vmatmul.mubr.msk.f32.vlgmr.msra.gmra.mrb[4].mxu1 %vm418_vm1, %v6786_v54 }
 0x285   :  { %5395 = vmatpush3.msra.mxu1 %v6789_v55  ;;  %5396 = vmatprep.mubr.msk.f32.mxu1 %vm6533_vm0, %v6532_v4 }
 0x286   :  { %5399 = vmatprep.subr.mxu1 %v6532_v4 }
 0x353   :  { %v491_v1 = vpop.f32.mrb[2].mxu1 }
 0x354   :  { %v571_v2 = vmul.f32 0.17677669, %v491_v1  ;;  %v5388_v3 = vpop.f32.mrb[3].mxu1 }
 0x356   :  { %v583_v5 = vadd.f32 %v6802_v63, %v571_v2 }
 0x357   :  { %v567_v7 = vpop.f32.mrb[4].mxu1 }
 0x358   :  { %v572_v8 = vmul.f32 0.17677669, %v567_v7  ;;  %v5393_v9 = vpop.f32.mrb[5].mxu1  ;;  %v586_v10 = vsel %vm585_vm2, %v583_v5, -inf }
 0x359   :  { %587 = vmax.xlane.f32.xlu0 %v586_v10 }
 0x35a   :  { %v584_v11 = vadd.f32 %v6806_v6, %v572_v8 }
 0x35c   :  { %v589_v12 = vsel %vm585_vm2, %v584_v11, -inf }
 0x35d   :  { %590 = vmax.xlane.f32.xlu1 %v589_v12 }
 0x36e   :  { %754 = vrot.lane.b32.xlu1 %v6773_v49, %s6535_s26 }
 0x3e6   :  { %v588_v13 = vpop.xlane.xlu0 %587 }
 0x3e7   :  { %v592_v14 = vsub.f32 %v583_v5, %v588_v13 }
 0x3e9   :  { %v594_v15 = vmul.f32 1.442695, %v592_v14 }
 0x3ea   :  { %v591_v16 = vpop.xlane.xlu1 %590 }
 0x3eb   :  { %6267 = vpow2.f32 %v594_v15  ;;  %v593_v17 = vsub.f32 %v584_v11, %v591_v16 }
 0x3ed   :  { %v596_v18 = vmul.f32 1.442695, %v593_v17 }
 0x3ee   :  { %v755_v23 = vpop.permute.xlu1 %754 }
 0x3ef   :  { %6269 = vpow2.f32 %v596_v18 }
 0x3f5   :  { %v6268_v19 = vpop.eup %6267 }
 0x3f6   :  { %v598_v20 = vsel %vm585_vm2, %v6268_v19, 0.0 }
 0x3f7   :  { %599 = vadd.xlane.f32.xlu0 %v598_v20 }
 0x3f9   :  { %v6270_v21 = vpop.eup %6269 }
 0x3fa   :  { %v601_v22 = vsel %vm585_vm2, %v6270_v21, 0.0 }
 0x3fb   :  { %602 = vadd.xlane.f32.xlu1 %v601_v22 }
 0x40c   :  { %834 = vrot.lane.b32.xlu1 %v6778_v53, %s6535_s26 }
 0x40d   :  { %756 = vrot.lane.b32.xlu0 %v6769_v46, %s6535_s26 }
 0x410   :  { %832 = vrot.lane.b32.xlu1 %v6786_v54, %s6535_s26 }
 0x484   :  { %v600_v24 = vpop.xlane.xlu0 %599 }
 0x485   :  { %6271 = vrcp.f32 %v600_v24 }
 0x488   :  { %v603_v25 = vpop.xlane.xlu1 %602  ;;  %v757_v31 = vpop.permute.xlu0 %756 }
 0x489   :  { %6273 = vrcp.f32 %v603_v25 }
 0x48c   :  { %v835_v34 = vpop.permute.xlu1 %834 }
 0x48f   :  { %v6272_v26 = vpop.eup %6271 }
 0x490   :  { %v606_v27 = vmul.f32 %v6272_v26, %v6268_v19  ;;  %v833_v35 = vpop.permute.xlu1 %832 }
 0x492   :  { %5397 = vmatmul.mubr.msk.f32.vlgmr.msra.gmra.mrb[6].mxu1 %vm585_vm2, %v606_v27 }
 0x493   :  { %v6274_v29 = vpop.eup %6273  ;;  %5400 = vmatpush3.msra.mxu1 %v6775_v50  ;;  %5401 = vmatprep.mubr.msk.f32.mxu1 %vm6533_vm0, %v6532_v4 }
 0x494   :  { %v607_v30 = vmul.f32 %v6274_v29, %v6270_v21  ;;  %5404 = vmatprep.subr.mxu1 %v6532_v4 }
 0x496   :  { %5402 = vmatmul.mubr.msk.f32.vlgmr.msra.gmra.mrb[8].mxu1 %vm585_vm2, %v607_v30 }
 0x497   :  { %5406 = vmatprep.mubr.msk.f32.mxu1 %vm6533_vm0, %v6532_v4 }
 0x49a   :  { %5405 = vmatpush3.xpose.msk.msra.mxu1 %vm418_vm1, %v757_v31 }
 0x49b   :  { %5409 = vmatprep.subr.mxu1 %v6532_v4 }
 0x49d   :  { %5407 = vmatmul.mubr.msk.f32.vlgmr.msra.gmra.mrb[10].mxu1 %vm418_vm1, %v755_v23 }
 0x49e   :  { %5410 = vmatpush3.xpose.msk.msra.mxu1 %vm418_vm1, %v835_v34  ;;  %5411 = vmatprep.mubr.msk.f32.mxu1 %vm6533_vm0, %v6532_v4 }
 0x49f   :  { %5414 = vmatprep.subr.mxu1 %v6532_v4 }
 0x4a1   :  { %5412 = vmatmul.mubr.msk.f32.vlgmr.msra.gmra.mrb[12].mxu1 %vm418_vm1, %v833_v35 }
 0x4a2   :  { %5416 = vmatprep.mubr.msk.f32.mxu1 %vm6533_vm0, %v6532_v4 }
 0x565   :  { %v6839_v28 = vpop.f32.mrb[6].mxu1 }
 0x566   :  { %v5398_v38 = vpop.f32.mrb[7].mxu1 }
 0x569   :  { %v6841_v41 = vpop.f32.mrb[8].mxu1 }
 0x56a   :  { %v5403_v42 = vpop.f32.mrb[9].mxu1 }
 0x570   :  { %v828_v43 = vpop.f32.mrb[10].mxu1 }
 0x571   :  { %v910_v44 = vmul.f32 0.17677669, %v828_v43  ;;  %v5408_v45 = vpop.f32.mrb[11].mxu1 }
 0x573   :  { %v912_v47 = vadd.f32 %v910_v44, %v6802_v63 }
 0x574   :  { %v906_v48 = vpop.f32.mrb[12].mxu1 }
 0x575   :  { %v911_v51 = vmul.f32 0.17677669, %v906_v48  ;;  %v5413_v52 = vpop.f32.mrb[13].mxu1  ;;  %v914_v56 = vsel %vm585_vm2, %v912_v47, -inf }
 0x576   :  { %915 = vmax.xlane.f32.xlu0 %v914_v56 }
 0x577   :  { %v913_v57 = vadd.f32 %v911_v51, %v6806_v6 }
 0x579   :  { %v917_v58 = vsel %vm585_vm2, %v913_v57, -inf }
 0x57a   :  { %918 = vmax.xlane.f32.xlu1 %v917_v58 }
 0x58b   :  { %1014 = vrot.lane.b32.xlu1 %v6775_v50, %s6535_s26 }
 0x58f   :  { %1092 = vrot.lane.b32.xlu1 %v6769_v46, %s6536_s10 }
 0x593   :  { %1170 = vrot.lane.b32.xlu1 %v6778_v53, %s6536_s10 }
 0x597   :  { %1168 = vrot.lane.b32.xlu1 %v6786_v54, %s6536_s10 }
 0x603   :  { %v916_v59 = vpop.xlane.xlu0 %915 }
 0x604   :  { %v920_v60 = vsub.f32 %v912_v47, %v916_v59 }
 0x606   :  { %v922_v61 = vmul.f32 1.442695, %v920_v60 }
 0x607   :  { %v919_v62 = vpop.xlane.xlu1 %918 }
 0x608   :  { %6275 = vpow2.f32 %v922_v61  ;;  %v921_v8 = vsub.f32 %v913_v57, %v919_v62 }
 0x60a   :  { %v924_v9 = vmul.f32 1.442695, %v921_v8 }
 0x60b   :  { %v1015_v0 = vpop.permute.xlu1 %1014 }
 0x60c   :  { %6277 = vpow2.f32 %v924_v9 }
 0x60f   :  { %v1093_v1 = vpop.permute.xlu1 %1092 }
 0x612   :  { %v6276_v2 = vpop.eup %6275 }
 0x613   :  { %v1171_v3 = vpop.permute.xlu1 %1170  ;;  %v926_v5 = vsel %vm585_vm2, %v6276_v2, 0.0 }
 0x614   :  { %927 = vadd.xlane.f32.xlu0 %v926_v5  ;;  %5430 = vmatpush3.xpose.msk.msra.mxu0 %vm418_vm1, %v1171_v3 }
 0x615   :  { %5439 = vmatprep.subr.mxu0 %v6532_v4 }
 0x616   :  { %v6278_v10 = vpop.eup %6277 }
 0x617   :  { %v1169_v7 = vpop.permute.xlu1 %1168  ;;  %v929_v11 = vsel %vm585_vm2, %v6278_v10, 0.0 }
 0x618   :  { %5432 = vmatmul.mubr.msk.f32.vlgmr.msra.gmra.mrb[4].mxu0 %vm418_vm1, %v1169_v7 }
 0x619   :  { %5441 = vmatprep.mubr.msk.f32.mxu0 %vm6533_vm0, %v6532_v4 }
 0x62a   :  { %937 = vrot.lane.b32.xlu0 %v6789_v55, %s6535_s26 }
 0x649   :  { %930 = vadd.xlane.f32.xlu0 %v929_v11 }
 0x65f   :  { %1090 = vrot.lane.b32.xlu0 %v6773_v49, %s6536_s10 }
 0x6a1   :  { %v928_v12 = vpop.xlane.xlu0 %927 }
 0x6a2   :  { %6279 = vrcp.f32 %v928_v12 }
 0x6a5   :  { %v938_v13 = vpop.permute.xlu0 %937 }
 0x6a6   :  { %5415 = vmatpush3.msra.mxu1 %v938_v13 }
 0x6a7   :  { %5419 = vmatprep.subr.mxu1 %v6532_v4 }
 0x6ac   :  { %v6280_v14 = vpop.eup %6279 }
 0x6ad   :  { %v934_v15 = vmul.f32 %v6280_v14, %v6276_v2 }
 0x6af   :  { %5417 = vmatmul.mubr.msk.f32.vlgmr.msra.gmra.mrb[14].mxu1 %vm585_vm2, %v934_v15 }
 0x6b0   :  { %5420 = vmatpush3.msra.mxu1 %v1015_v0  ;;  %5421 = vmatprep.mubr.msk.f32.mxu1 %vm6533_vm0, %v6532_v4 }
 0x6b1   :  { %5424 = vmatprep.subr.mxu1 %v6532_v4 }
 0x6d6   :  { %v931_v16 = vpop.xlane.xlu0 %930 }
 0x6d7   :  { %6281 = vrcp.f32 %v931_v16 }
 0x6da   :  { %v1091_v19 = vpop.permute.xlu0 %1090 }
 0x6e1   :  { %v6282_v17 = vpop.eup %6281 }
 0x6e2   :  { %v935_v18 = vmul.f32 %v6282_v17, %v6278_v10 }
 0x6e4   :  { %5422 = vmatmul.mubr.msk.f32.vlgmr.msra.gmra.mrb[16].mxu1 %vm585_vm2, %v935_v18 }
 0x6e5   :  { %5425 = vmatpush3.xpose.msk.msra.mxu1 %vm418_vm1, %v1093_v1  ;;  %5426 = vmatprep.mubr.msk.f32.mxu1 %vm6533_vm0, %v6532_v4 }
 0x6e6   :  { %5434 = vmatprep.subr.mxu1 %v6532_v4 }
 0x6e8   :  { %5427 = vmatmul.mubr.msk.f32.vlgmr.msra.gmra.mrb[18].mxu1 %vm418_vm1, %v1091_v19 }
 0x6e9   :  { %5436 = vmatprep.mubr.msk.f32.mxu1 %vm6533_vm0, %v6532_v4 }
 0x6eb   :  { %v1242_v20 = vpop.f32.mrb[4].mxu0 }
 0x6ec   :  { %v1247_v21 = vmul.f32 0.17677669, %v1242_v20  ;;  %v5433_v22 = vpop.f32.mrb[5].mxu0 }
 0x6ee   :  { %v1249_v23 = vadd.f32 %v1247_v21, %v6806_v6 }
 0x6f0   :  { %v1253_v24 = vsel %vm585_vm2, %v1249_v23, -inf }
 0x6f1   :  { %1254 = vmax.xlane.f32.xlu1 %v1253_v24 }
 0x702   :  { %1348 = vrot.lane.b32.xlu1 %v6775_v50, %s6536_s10 }
 0x706   :  { %1426 = vrot.lane.b32.xlu1 %v6769_v46, %s6530_s21 }
 0x70a   :  { %1504 = vrot.lane.b32.xlu1 %v6778_v53, %s6530_s21 }
 0x70e   :  { %1502 = vrot.lane.b32.xlu1 %v6786_v54, %s6530_s21 }
 0x77e   :  { %v1255_v25 = vpop.xlane.xlu1 %1254 }
 0x77f   :  { %v1257_v30 = vsub.f32 %v1249_v23, %v1255_v25 }
 0x781   :  { %v1260_v31 = vmul.f32 1.442695, %v1257_v30 }
 0x782   :  { %v1349_v26 = vpop.permute.xlu1 %1348  ;;  %v6889_v27 = vpop.f32.mrb[14].mxu1 }
 0x783   :  { %v5418_v29 = vpop.f32.mrb[15].mxu1  ;;  %5440 = vmatpush3.msra.mxu0 %v1349_v26  ;;  %6283 = vpow2.f32 %v1260_v31 }
 0x784   :  { %5449 = vmatprep.subr.mxu0 %v6532_v4 }
 0x786   :  { %v1427_v57 = vpop.permute.xlu1 %1426 }
 0x78a   :  { %v1505_v60 = vpop.permute.xlu1 %1504 }
 0x78d   :  { %v6284_v44 = vpop.eup %6283 }
 0x78e   :  { %v1265_v45 = vsel %vm585_vm2, %v6284_v44, 0.0  ;;  %v1503_v0 = vpop.permute.xlu1 %1502 }
 0x7b7   :  { %v1086_v34 = vpop.f32.mrb[16].mxu1 }
 0x7b8   :  { %v6233_v46 = vpack.i.bf16 %v1086_v34, %v6889_v27  ;;  %v5423_v35 = vpop.f32.mrb[17].mxu1 }
 0x7bb   :  { %v1164_v38 = vpop.f32.mrb[18].mxu1 }
 0x7bc   :  { %v1246_v53 = vmul.f32 0.17677669, %v1164_v38  ;;  %v5428_v42 = vpop.f32.mrb[19].mxu1 }
 0x7be   :  { %v1248_v54 = vadd.f32 %v1246_v53, %v6802_v63 }
 0x7c0   :  { %v1250_v43 = vsel %vm585_vm2, %v1248_v54, -inf }
 0x7c1   :  { %1251 = vmax.xlane.f32.xlu0 %v1250_v43 }
 0x7c5   :  { %1266 = vadd.xlane.f32.xlu0 %v1265_v45  ;;  %v1790_v45 = vld [vmem:[#allocation5] sm:$0xff] }
 0x7db   :  { %1272 = vrot.lane.b32.xlu0 %v6789_v55, %s6536_s10 }
 0x84e   :  { %v1252_v47 = vpop.xlane.xlu0 %1251 }
 0x84f   :  { %v1256_v48 = vsub.f32 %v1248_v54, %v1252_v47  ;;  %v1791_v47 = vld [vmem:[#allocation5 + $0x8] sm:$0xff] }
 0x851   :  { %v1258_v51 = vmul.f32 1.442695, %v1256_v48  ;;  %v1792_v48 = vld [vmem:[#allocation5 + $0x10] sm:$0xff] }
 0x852   :  { %v1267_v52 = vpop.xlane.xlu0 %1266 }
 0x853   :  { %6285 = vpow2.f32 %v1258_v51  ;;  %v5783_v51 = vpack.c.bf16 %v1791_v47, %v1790_v45  ;;  %v1934_v45 = vld [vmem:[#allocation7 + $0x20] sm:$0xff] }
 0x854   :  { %6287 = vrcp.f32 %v1267_v52  ;;  %v1793_v52 = vld [vmem:[#allocation5 + $0x18] sm:$0xff] }
 0x856   :  { %v1273_v56 = vpop.permute.xlu0 %1272 }
 0x857   :  { %5435 = vmatpush3.msra.mxu1 %v1273_v56  ;;  %v5787_v56 = vpack.c.bf16 %v1793_v52, %v1792_v48  ;;  %v1936_v52 = vld [vmem:[#allocation7 + $0x30] sm:$0xff] }
 0x858   :  { %5444 = vmatprep.subr.mxu1 %v6532_v4 }
 0x85d   :  { %v6286_v58 = vpop.eup %6285 }
 0x85e   :  { %v6288_v59 = vpop.eup %6287  ;;  %v1262_v61 = vsel %vm585_vm2, %v6286_v58, 0.0 }
 0x85f   :  { %v1271_v62 = vmul.f32 %v6288_v59, %v6284_v44  ;;  %1263 = vadd.xlane.f32.xlu0 %v1262_v61  ;;  %v1796_v59 = vld [vmem:[#allocation5 + $0x30] sm:$0xff] }
 0x861   :  { %5442 = vmatmul.mubr.msk.f32.vlgmr.msra.gmra.mrb[6].mxu0 %vm585_vm2, %v1271_v62  ;;  %v1798_v62 = vld [vmem:[#allocation5 + $0x40] sm:$0xff] }
 0x862   :  { %5450 = vmatpush3.xpose.msk.msra.mxu0 %vm418_vm1, %v1505_v60  ;;  %5451 = vmatprep.mubr.msk.f32.mxu0 %vm6533_vm0, %v6532_v4  ;;  %v1797_v60 = vld [vmem:[#allocation5 + $0x38] sm:$0xff] }
 0x863   :  { %5459 = vmatprep.subr.mxu0 %v6532_v4  ;;  %v5795_v61 = vpack.c.bf16 %v1797_v60, %v1796_v59  ;;  %v1938_v60 = vld [vmem:[#allocation7 + $0x40] sm:$0xff] }
 0x865   :  { %5452 = vmatmul.mubr.msk.f32.vlgmr.msra.gmra.mrb[8].mxu0 %vm418_vm1, %v1503_v0  ;;  %v1799_v0 = vld [vmem:[#allocation5 + $0x48] sm:$0xff] }
 0x866   :  { %5461 = vmatprep.mubr.msk.f32.mxu0 %vm6533_vm0, %v6532_v4 }
 0x875   :  { %1424 = vrot.lane.b32.xlu0 %v6773_v49, %s6530_s21 }
 0x8ec   :  { %v1264_v1 = vpop.xlane.xlu0 %1263 }
 0x8ed   :  { %6289 = vrcp.f32 %v1264_v1  ;;  %v5799_v1 = vpack.c.bf16 %v1799_v0, %v1798_v62  ;;  %v1940_v62 = vld [vmem:[#allocation7 + $0x50] sm:$0xff] }
 0x8f0   :  { %v1425_v5 = vpop.permute.xlu0 %1424 }
 0x8f7   :  { %v6290_v2 = vpop.eup %6289 }
 0x8f8   :  { %v1270_v3 = vmul.f32 %v6290_v2, %v6286_v58  ;;  %v1795_v58 = vld [vmem:[#allocation5 + $0x28] sm:$0xff]  ;;  %v1800_v2 = vld [vmem:[#allocation5 + $0x50] sm:$0xff] }
 0x8fa   :  { %5437 = vmatmul.mubr.msk.f32.vlgmr.msra.gmra.mrb[20].mxu1 %vm585_vm2, %v1270_v3  ;;  %v1801_v3 = vld [vmem:[#allocation5 + $0x58] sm:$0xff] }
 0x8fb   :  { %5445 = vmatpush3.xpose.msk.msra.mxu1 %vm418_vm1, %v1427_v57  ;;  %5446 = vmatprep.mubr.msk.f32.mxu1 %vm6533_vm0, %v6532_v4  ;;  %v1794_v57 = vld [vmem:[#allocation5 + $0x20] sm:$0xff] }
 0x8fc   :  { %5454 = vmatprep.subr.mxu1 %v6532_v4 }
 0x8fe   :  { %5447 = vmatmul.mubr.msk.f32.vlgmr.msra.gmra.mrb[22].mxu1 %vm418_vm1, %v1425_v5  ;;  %v5803_v5 = vpack.c.bf16 %v1801_v3, %v1800_v2  ;;  %v1947_v2 = vld [vmem:[#allocation7 + $0x88] sm:$0xff] }
 0x8ff   :  { %5456 = vmatprep.mubr.msk.f32.mxu1 %vm6533_vm0, %v6532_v4  ;;  %v1951_v3 = vld [vmem:[#allocation7 + $0xa8] sm:$0xff] }
 0x934   :  { %v1420_v49 = vpop.f32.mrb[6].mxu0 }
 0x935   :  { %v5443_v7 = vpop.f32.mrb[7].mxu0 }
 0x936   :  { %v1803_v7 = vld [vmem:[#allocation5 + $0x68] sm:$0xff] }
 0x938   :  { %v1576_v8 = vpop.f32.mrb[8].mxu0 }
 0x939   :  { %v1581_v9 = vmul.f32 0.17677669, %v1576_v8  ;;  %v5453_v10 = vpop.f32.mrb[9].mxu0 }
 0x93a   :  { %v1805_v10 = vld [vmem:[#allocation5 + $0x78] sm:$0xff] }
 0x93b   :  { %v1583_v11 = vadd.f32 %v1581_v9, %v6806_v6  ;;  %v1804_v9 = vld [vmem:[#allocation5 + $0x70] sm:$0xff] }
 0x93d   :  { %v1587_v12 = vsel %vm585_vm2, %v1583_v11, -inf }
 0x93e   :  { %1588 = vmax.xlane.f32.xlu1 %v1587_v12 }
 0x94f   :  { %1682 = vrot.lane.b32.xlu1 %v6775_v50, %s6530_s21 }
 0x953   :  { %6234 = vrot.lane.b32.xlu1 %v6233_v46, %s6530_s21 }
 0x9cb   :  { %v1589_v13 = vpop.xlane.xlu1 %1588 }
 0x9cc   :  { %v1591_v14 = vsub.f32 %v1583_v11, %v1589_v13  ;;  %v5811_v11 = vpack.c.bf16 %v1805_v10, %v1804_v9  ;;  %v1946_v9 = vld [vmem:[#allocation7 + $0x80] sm:$0xff] }
 0x9cd   :  { %v1344_v15 = vpop.f32.mrb[20].mxu1 }
 0x9ce   :  { %v1594_v16 = vmul.f32 1.442695, %v1591_v14  ;;  %v6238_v17 = vpack.i.bf16 %v1420_v49, %v1344_v15  ;;  %v5438_v18 = vpop.f32.mrb[21].mxu1  ;;  %v1802_v49 = vld [vmem:[#allocation5 + $0x60] sm:$0xff] }
 0x9cf   :  { %v1683_v19 = vpop.permute.xlu1 %1682  ;;  %v5807_v8 = vpack.c.bf16 %v1803_v7, %v1802_v49  ;;  %v5823_v49 = vpack.c.bf16 %v1951_v3, %v1947_v2  ;;  %v1949_v7 = vld [vmem:[#allocation7 + $0x98] sm:$0xff]  ;;  %v1983_v3 = vld [vmem:[#allocation7 + $0x1a8] sm:$0xff] }
 0x9d0   :  { %6291 = vpow2.f32 %v1594_v16  ;;  %5460 = vmatpush3.msra.mxu0 %v1683_v19  ;;  %6239 = vrot.lane.b32.xlu1 %v6238_v17, %s6536_s10 }
 0x9d1   :  { %v1498_v20 = vpop.f32.mrb[22].mxu1 }
 0x9d2   :  { %v1580_v21 = vmul.f32 0.17677669, %v1498_v20  ;;  %v5448_v22 = vpop.f32.mrb[23].mxu1 }
 0x9d3   :  { %v6235_v15 = vpop.permute.xlu1 %6234 }
 0x9d4   :  { %v1582_v23 = vadd.f32 %v1580_v21, %v6802_v63  ;;  %v6237_v17 = vunpack.i.h.bf16 %v6235_v15  ;;  %v6236_v18 = vunpack.i.l.bf16 %v6235_v15 }
 0x9d6   :  { %v1584_v50 = vsel %vm585_vm2, %v1582_v23, -inf  ;;  %v1783_v22 = vsel %vm418_vm1, %v6841_v41, %v6237_v17  ;;  %v4981_v41 = vld [vmem:[%s7349_s7] ss:$0 sm:$0xff] }
 0x9d7   :  { %1585 = vmax.xlane.f32.xlu0 %v1584_v50 }
 0x9da   :  { %v6292_v24 = vpop.eup %6291 }
 0x9db   :  { %v1599_v25 = vsel %vm585_vm2, %v6292_v24, 0.0 }
 0x9dc   :  { %1600 = vadd.xlane.f32.xlu0 %v1599_v25 }
 0xa42   :  { %v6240_v16 = vpop.permute.xlu1 %6239 }
 0xa43   :  { %v6242_v19 = vunpack.i.h.bf16 %v6240_v16  ;;  %v6241_v20 = vunpack.i.l.bf16 %v6240_v16 }
 0xa64   :  { %v1586_v26 = vpop.xlane.xlu0 %1585 }
 0xa65   :  { %v1590_v27 = vsub.f32 %v1582_v23, %v1586_v26  ;;  %v1786_v26 = vsel %vm1784_vm3, %v1783_v22, %v6242_v19 }
 0xa67   :  { %v1592_v29 = vmul.f32 1.442695, %v1590_v27 }
 0xa69   :  { %6293 = vpow2.f32 %v1592_v29  ;;  %v1601_v30 = vpop.xlane.xlu0 %1600 }
 0xa6a   :  { %6295 = vrcp.f32 %v1601_v30 }
 0xa73   :  { %v6294_v31 = vpop.eup %6293 }
 0xa74   :  { %v6296_v34 = vpop.eup %6295  ;;  %v1596_v46 = vsel %vm585_vm2, %v6294_v31, 0.0 }
 0xa75   :  { %v1605_v35 = vmul.f32 %v6296_v34, %v6292_v24  ;;  %1597 = vadd.xlane.f32.xlu0 %v1596_v46  ;;  %v1782_v24 = vsel %vm418_vm1, %v6839_v28, %v6236_v18 }
 0xa76   :  { %v1785_v25 = vsel %vm1784_vm3, %v1782_v24, %v6241_v20  ;;  %v1959_v24 = vld [vmem:[#allocation7 + $0xe8] sm:$0xff] }
 0xa77   :  { %5462 = vmatmul.mubr.msk.f32.vlgmr.msra.gmra.mrb[10].mxu0 %vm585_vm2, %v1605_v35 }
 0xa78   :  { %2080 = vmatprep.mubr.f32.mxu0 %v6532_v4 }
 0xa8b   :  { %1606 = vrot.lane.b32.xlu0 %v6789_v55, %s6530_s21  ;;  %v5791_v55 = vpack.c.bf16 %v1795_v58, %v1794_v57  ;;  %v1943_v58 = vld [vmem:[#allocation7 + $0x68] sm:$0xff] }
 0xb02   :  { %v1598_v38 = vpop.xlane.xlu0 %1597 }
 0xb03   :  { %6297 = vrcp.f32 %v1598_v38  ;;  %v1931_v38 = vld [vmem:[#allocation7 + $0x8] sm:$0xff] }
 0xb06   :  { %v1607_v53 = vpop.permute.xlu0 %1606 }
 0xb07   :  { %5455 = vmatpush3.msra.mxu1 %v1607_v53  ;;  %v1935_v53 = vld [vmem:[#allocation7 + $0x28] sm:$0xff] }
 0xb08   :  { %5784 = vmatprep.subr.bf16.mxu1 %v5783_v51 }
 0xb0d   :  { %v6298_v42 = vpop.eup %6297 }
 0xb0e   :  { %v1604_v54 = vmul.f32 %v6298_v42, %v6294_v31  ;;  %v1933_v42 = vld [vmem:[#allocation7 + $0x18] sm:$0xff] }
 0xb10   :  { %5457 = vmatmul.mubr.msk.f32.vlgmr.msra.gmra.mrb[24].mxu1 %vm585_vm2, %v1604_v54  ;;  %v5815_v54 = vpack.c.bf16 %v1935_v53, %v1931_v38  ;;  %v1967_v38 = vld [vmem:[#allocation7 + $0x128] sm:$0xff]  ;;  %v1965_v53 = vld [vmem:[#allocation7 + $0x118] sm:$0xff] }
 0xb11   :  { %5786 = vmatpush3.bf16.msra.mxu1 %v5783_v51  ;;  %v1932_v51 = vld [vmem:[#allocation7 + $0x10] sm:$0xff] }
 0xb12   :  { %5788 = vmatprep.subr.bf16.mxu1 %v5787_v56  ;;  %5816 = vmatprep.subr.bf16.mxu0 %v5815_v54  ;;  %v5849_v57 = vpack.c.bf16 %v1936_v52, %v1932_v51  ;;  %v1969_v54 = vld [vmem:[#allocation7 + $0x138] sm:$0xff]  ;;  %v1968_v51 = vld [vmem:[#allocation7 + $0x130] sm:$0xff] }
 0xb15   :  { %5790 = vmatpush3.bf16.msra.mxu1 %v5787_v56  ;;  %v1939_v56 = vld [vmem:[#allocation7 + $0x48] sm:$0xff] }
 0xb16   :  { %5792 = vmatprep.subr.bf16.mxu1 %v5791_v55 }
 0xb19   :  { %5794 = vmatpush3.bf16.msra.mxu1 %v5791_v55  ;;  %v1945_v55 = vld [vmem:[#allocation7 + $0x78] sm:$0xff] }
 0xb1a   :  { %5796 = vmatprep.subr.bf16.mxu1 %v5795_v61 }
 0xb1d   :  { %5798 = vmatpush3.bf16.msra.mxu1 %v5795_v61  ;;  %v1942_v61 = vld [vmem:[#allocation7 + $0x60] sm:$0xff] }
 0xb1e   :  { %5800 = vmatprep.subr.bf16.mxu1 %v5799_v1  ;;  %v5821_v0 = vpack.c.bf16 %v1942_v61, %v1938_v60 }
 0xb21   :  { %5802 = vmatpush3.bf16.msra.mxu1 %v5799_v1  ;;  %v1944_v1 = vld [vmem:[#allocation7 + $0x70] sm:$0xff] }
 0xb22   :  { %5804 = vmatprep.subr.bf16.mxu1 %v5803_v5 }
 0xb25   :  { %5806 = vmatpush3.bf16.msra.mxu1 %v5803_v5  ;;  %v5853_v5 = vpack.c.bf16 %v1944_v1, %v1940_v62  ;;  %v1972_v62 = vld [vmem:[#allocation7 + $0x150] sm:$0xff]  ;;  %v1979_v1 = vld [vmem:[#allocation7 + $0x188] sm:$0xff] }
 0xb26   :  { %5808 = vmatprep.subr.bf16.mxu1 %v5807_v8 }
 0xb29   :  { %5810 = vmatpush3.bf16.msra.mxu1 %v5807_v8  ;;  %v1953_v8 = vld [vmem:[#allocation7 + $0xb8] sm:$0xff] }
 0xb2a   :  { %5812 = vmatprep.subr.bf16.mxu1 %v5811_v11  ;;  %v5855_v10 = vpack.c.bf16 %v1953_v8, %v1949_v7  ;;  %v5839_v7 = vpack.c.bf16 %v1983_v3, %v1979_v1  ;;  %v2212_v1 = vld [vmem:[#allocation8 + $0x10] sm:$0xff] }
 0xb2d   :  { %5814 = vmatpush3.bf16.msra.mxu1 %v5811_v11  ;;  %v1950_v11 = vld [vmem:[#allocation7 + $0xa0] sm:$0xff] }
 0xb4a   :  { %v1754_v43 = vpop.f32.mrb[10].mxu0 }
 0xb4b   :  { %v5463_v44 = vpop.f32.mrb[11].mxu0 }
 0xb4c   :  { %v1930_v44 = vld [vmem:[#allocation7] sm:$0xff] }
 0xb4d   :  { %v5817_v48 = vpack.c.bf16 %v1934_v45, %v1930_v44  ;;  %v1966_v44 = vld [vmem:[#allocation7 + $0x120] sm:$0xff]  ;;  %v5863_v45 = vpack.c.bf16 %v1969_v54, %v1965_v53 }
 0xb4f   :  { %5818 = vmatpush1.bf16.msra.mxu0 %v5817_v48  ;;  %v1964_v48 = vld [vmem:[#allocation7 + $0x110] sm:$0xff] }
 0xb50   :  { %v5865_v52 = vpack.c.bf16 %v1968_v51, %v1964_v48  ;;  %v2210_v48 = vld [vmem:[#allocation8] sm:$0xff]  ;;  %v2211_v51 = vld [vmem:[#allocation8 + $0x8] sm:$0xff] }
 0xbe3   :  { %v1678_v12 = vpop.f32.mrb[24].mxu1 }
 0xbe4   :  { %v6243_v13 = vpack.i.bf16 %v1754_v43, %v1678_v12  ;;  %v5458_v14 = vpop.f32.mrb[25].mxu1  ;;  %v1937_v43 = vld [vmem:[#allocation7 + $0x38] sm:$0xff]  ;;  %v1948_v12 = vld [vmem:[#allocation7 + $0x90] sm:$0xff] }
 0xbe5   :  { %v5847_v47 = vpack.c.bf16 %v1937_v43, %v1933_v42  ;;  %v5825_v14 = vpack.c.bf16 %v1950_v11, %v1946_v9  ;;  %v1962_v43 = vld [vmem:[#allocation7 + $0x100] sm:$0xff]  ;;  %v1980_v11 = vld [vmem:[#allocation7 + $0x190] sm:$0xff] }
 0xbe6   :  { %6244 = vrot.lane.b32.xlu0 %v6243_v13, %s6535_s26  ;;  %v1952_v13 = vld [vmem:[#allocation7 + $0xb0] sm:$0xff]  ;;  %v1978_v9 = vld [vmem:[#allocation7 + $0x180] sm:$0xff] }
 0xbe7   :  { %5848 = vmatprep.subr.bf16.mxu1 %v5847_v47  ;;  %v5857_v15 = vpack.c.bf16 %v1952_v13, %v1948_v12  ;;  %v5833_v47 = vpack.c.bf16 %v1966_v44, %v1962_v43  ;;  %v1984_v13 = vld [vmem:[#allocation7 + $0x1b0] sm:$0xff]  ;;  %v4982_v44 = vld [vmem:[%s7350_s8] ss:$0 sm:$0xff] }
 0xc58   :  { %v6245_v21 = vpop.permute.xlu0 %6244 }
 0xc59   :  { %v6247_v23 = vunpack.i.h.bf16 %v6245_v21  ;;  %v6246_v50 = vunpack.i.l.bf16 %v6245_v21 }
 0xc5b   :  { %v1788_v27 = vsel %vm1787_vm4, %v1785_v25, %v6246_v50  ;;  %v1789_v29 = vsel %vm1787_vm4, %v1786_v26, %v6247_v23  ;;  %v1955_v50 = vld [vmem:[#allocation7 + $0xc8] sm:$0xff]  ;;  %v1957_v25 = vld [vmem:[#allocation7 + $0xd8] sm:$0xff] }
 0xc5c   :  { %5496 = vmatprep.mubr.f32.mxu1 %v1788_v27  ;;  %v5827_v26 = vpack.c.bf16 %v1959_v24, %v1955_v50  ;;  %v1961_v27 = vld [vmem:[#allocation7 + $0xf8] sm:$0xff]  ;;  %v1990_v50 = vld [vmem:[#allocation7 + $0x1e0] sm:$0xff]  ;;  %v1988_v24 = vld [vmem:[#allocation7 + $0x1d0] sm:$0xff] }
 0xc5d   :  { %5497 = vmatmul.mubr.f32.vlgmr.msra.gmra.mrb[26].mxu1 %v1789_v29  ;;  %v1954_v29 = vld [vmem:[#allocation7 + $0xc0] sm:$0xff] }
 0xc5e   :  { %2157 = vmatprep.mubr.f32.mxu1 %v6532_v4  ;;  %5850 = vmatpush1.bf16.msra.mxu1 %v5849_v57  ;;  %v1975_v57 = vld [vmem:[#allocation7 + $0x168] sm:$0xff] }
 0xd30   :  { %v5498_v30 = vpop.f32.mrb[26].mxu1 }
 0xd31   :  { %v1885_v31 = vadd.f32 %v5498_v30, %v4981_v41  ;;  %v1879_v34 = vpop.f32.mrb[27].mxu1  ;;  %v5859_v30 = vpack.c.bf16 %v1961_v27, %v1957_v25  ;;  %v1992_v25 = vld [vmem:[#allocation7 + $0x1f0] sm:$0xff] }
 0xd32   :  { %v1880_v28 = vadd.f32 %v4981_v41, %v1879_v34  ;;  %v1958_v41 = vld [vmem:[#allocation7 + $0xe0] sm:$0xff]  ;;  %v1956_v34 = vld [vmem:[#allocation7 + $0xd0] sm:$0xff]  ;;  %v5877_v27 = vpack.c.bf16 %v1992_v25, %v1988_v24  ;;  %v2233_v24 = vld [vmem:[#allocation8 + $0xb8] sm:$0xff] }
 0xd33   :  { %v1889_v46 = vadd.f32 %v1885_v31, %v6744_v36  ;;  %v1941_v36 = vld [vmem:[#allocation7 + $0x58] sm:$0xff]  ;;  %v5829_v31 = vpack.c.bf16 %v1958_v41, %v1954_v29  ;;  %v2226_v29 = vld [vmem:[#allocation8 + $0x80] sm:$0xff]  ;;  %v2227_v41 = vld [vmem:[#allocation8 + $0x88] sm:$0xff] }
 0xd34   :  { %v1888_v35 = vadd.f32 %v1880_v28, %v6738_v33  ;;  %v5819_v33 = vpack.c.bf16 %v1943_v58, %v1939_v56  ;;  %v5851_v59 = vpack.c.bf16 %v1945_v55, %v1941_v36  ;;  %v1960_v28 = vld [vmem:[#allocation7 + $0xf0] sm:$0xff]  ;;  %v1971_v56 = vld [vmem:[#allocation7 + $0x148] sm:$0xff]  ;;  %v1973_v58 = vld [vmem:[#allocation7 + $0x158] sm:$0xff] }
 0xd35   :  { %1894 = vadd.xlane.f32.xlu0 %v1889_v46  ;;  %v5835_v36 = vpack.c.bf16 %v1975_v57, %v1971_v56  ;;  %v1977_v55 = vld [vmem:[#allocation7 + $0x178] sm:$0xff]  ;;  %v2243_v56 = vld [vmem:[#allocation8 + $0x108] sm:$0xff]  ;;  %v2228_v57 = vld [vmem:[#allocation8 + $0x90] sm:$0xff] }
 0xd36   :  { %1892 = vadd.xlane.f32.xlu1 %v1888_v35  ;;  %5820 = vmatprep.subr.bf16.mxu0 %v5819_v33  ;;  %v1970_v33 = vld [vmem:[#allocation7 + $0x140] sm:$0xff]  ;;  %v5867_v60 = vpack.c.bf16 %v1977_v55, %v1973_v58  ;;  %v2260_v55 = vld [vmem:[#allocation8 + $0x190] sm:$0xff] }
 0xd37   :  { %5852 = vmatprep.subr.bf16.mxu1 %v5851_v59  ;;  %5822 = vmatpush1.bf16.msra.mxu0 %v5821_v0  ;;  %v1974_v59 = vld [vmem:[#allocation7 + $0x160] sm:$0xff]  ;;  %v1976_v0 = vld [vmem:[#allocation7 + $0x170] sm:$0xff] }
 0xd38   :  { %5854 = vmatpush1.bf16.msra.mxu1 %v5853_v5  ;;  %5824 = vmatprep.subr.bf16.mxu0 %v5823_v49  ;;  %v5837_v61 = vpack.c.bf16 %v1974_v59, %v1970_v33  ;;  %v5869_v2 = vpack.c.bf16 %v1976_v0, %v1972_v62  ;;  %v1981_v5 = vld [vmem:[#allocation7 + $0x198] sm:$0xff]  ;;  %v5881_v62 = vpack.c.bf16 %v2211_v51, %v2210_v48  ;;  %v2264_v25 = vld [vmem:[#allocation8 + $0x1b0] sm:$0xff]  ;;  %v2250_v48 = vld [vmem:[#allocation8 + $0x140] sm:$0xff] }
 0xd39   :  { %5856 = vmatprep.subr.bf16.mxu1 %v5855_v10  ;;  %v1985_v49 = vld [vmem:[#allocation7 + $0x1b8] sm:$0xff]  ;;  %v1982_v10 = vld [vmem:[#allocation7 + $0x1a0] sm:$0xff]  ;;  %v2251_v51 = vld [vmem:[#allocation8 + $0x148] sm:$0xff] }
 0xd3a   :  { %v5871_v8 = vpack.c.bf16 %v1985_v49, %v1981_v5  ;;  %v5841_v12 = vpack.c.bf16 %v1982_v10, %v1978_v9  ;;  %v2261_v33 = vld [vmem:[#allocation8 + $0x198] sm:$0xff]  ;;  %v2244_v5 = vld [vmem:[#allocation8 + $0x110] sm:$0xff]  ;;  %v2231_v9 = vld [vmem:[#allocation8 + $0xa8] sm:$0xff] }
 0xd3b   :  { %5826 = vmatpush1.bf16.msra.mxu0 %v5825_v14  ;;  %v1987_v14 = vld [vmem:[#allocation7 + $0x1c8] sm:$0xff]  ;;  %v2245_v49 = vld [vmem:[#allocation8 + $0x118] sm:$0xff]  ;;  %v2262_v10 = vld [vmem:[#allocation8 + $0x1a0] sm:$0xff] }
 0xd3c   :  { %5858 = vmatpush1.bf16.msra.mxu1 %v5857_v15  ;;  %5828 = vmatprep.subr.bf16.mxu0 %v5827_v26  ;;  %v1991_v15 = vld [vmem:[#allocation7 + $0x1e8] sm:$0xff] }
 0xd3d   :  { %5860 = vmatprep.subr.bf16.mxu1 %v5859_v30  ;;  %v2258_v30 = vld [vmem:[#allocation8 + $0x180] sm:$0xff] }
 0xd3f   :  { %5830 = vmatpush1.bf16.msra.mxu0 %v5829_v31  ;;  %v5879_v31 = vpack.c.bf16 %v2227_v41, %v2226_v29  ;;  %v2216_v29 = vld [vmem:[#allocation8 + $0x30] sm:$0xff]  ;;  %v2217_v41 = vld [vmem:[#allocation8 + $0x38] sm:$0xff] }
 0xdc2   :  { %v1895_v16 = vpop.xlane.xlu0 %1894 }
 0xdc3   :  { %v1893_v17 = vpop.xlane.xlu1 %1892  ;;  %v1897_v18 = vmul.f32 0.0078125, %v1895_v16  ;;  %v5873_v16 = vpack.c.bf16 %v1984_v13, %v1980_v11  ;;  %v2263_v11 = vld [vmem:[#allocation8 + $0x1a8] sm:$0xff]  ;;  %v5917_v13 = vpack.c.bf16 %v2245_v49, %v2244_v5  ;;  %v2270_v5 = vld [vmem:[#allocation8 + $0x1e0] sm:$0xff] }
 0xdc4   :  { %v1896_v19 = vmul.f32 0.0078125, %v1893_v17  ;;  %v5843_v17 = vpack.c.bf16 %v1991_v15, %v1987_v14  ;;  %v2214_v14 = vld [vmem:[#allocation8 + $0x20] sm:$0xff] }
 0xdc5   :  { %v6950_v21 = vsub.f32 %v1889_v46, %v1897_v18  ;;  %v5861_v46 = vpack.c.bf16 %v1960_v28, %v1956_v34  ;;  %v1989_v18 = vld [vmem:[#allocation7 + $0x1d8] sm:$0xff]  ;;  %v2259_v34 = vld [vmem:[#allocation8 + $0x188] sm:$0xff] }
 0xdc6   :  { %v6948_v20 = vsub.f32 %v1888_v35, %v1896_v19  ;;  %v1963_v35 = vld [vmem:[#allocation7 + $0x108] sm:$0xff]  ;;  %v1993_v19 = vld [vmem:[#allocation7 + $0x1f8] sm:$0xff]  ;;  %v5911_v28 = vpack.c.bf16 %v2259_v34, %v2258_v30  ;;  %v2248_v34 = vld [vmem:[#allocation8 + $0x130] sm:$0xff] }
 0xdc7   :  { %v1901_v23 = vmul.f32 %v6950_v21, %v6950_v21  ;;  %5862 = vmatpush1.bf16.msra.mxu1 %v5861_v46  ;;  %v5831_v42 = vpack.c.bf16 %v1967_v38, %v1963_v35 }
 0xdc8   :  { %v1900_v22 = vmul.f32 %v6948_v20, %v6948_v20  ;;  %5864 = vmatprep.subr.bf16.mxu1 %v5863_v45  ;;  %v4983_v45 = vld [vmem:[%s7351_s9] ss:$0 sm:$0xff] }
 0xdc9   :  { %5832 = vmatprep.subr.bf16.mxu0 %v5831_v42 }
 0xdca   :  { %1902 = vadd.xlane.f32.xlu0 %v1900_v22  ;;  %5834 = vmatpush1.bf16.msra.mxu0 %v5833_v47  ;;  %v1986_v22 = vld [vmem:[#allocation7 + $0x1c0] sm:$0xff] }
 0xdcb   :  { %5866 = vmatpush1.bf16.msra.mxu1 %v5865_v52  ;;  %5836 = vmatprep.subr.bf16.mxu0 %v5835_v36  ;;  %v5845_v26 = vpack.c.bf16 %v1990_v50, %v1986_v22  ;;  %v2242_v52 = vld [vmem:[#allocation8 + $0x100] sm:$0xff]  ;;  %v2229_v36 = vld [vmem:[#allocation8 + $0x98] sm:$0xff]  ;;  %v2232_v50 = vld [vmem:[#allocation8 + $0xb0] sm:$0xff] }
 0xdcc   :  { %5868 = vmatprep.subr.bf16.mxu1 %v5867_v60  ;;  %v5913_v0 = vpack.c.bf16 %v2243_v56, %v2242_v52  ;;  %v5883_v3 = vpack.c.bf16 %v2229_v36, %v2228_v57  ;;  %v5929_v52 = vpack.c.bf16 %v2251_v51, %v2250_v48  ;;  %v2236_v56 = vld [vmem:[#allocation8 + $0xd0] sm:$0xff]  ;;  %v2237_v57 = vld [vmem:[#allocation8 + $0xd8] sm:$0xff] }
 0xdcd   :  { %v5899_v36 = vpack.c.bf16 %v2237_v57, %v2236_v56 }
 0xdce   :  { %1904 = vadd.xlane.f32.xlu0 %v1901_v23  ;;  %5838 = vmatpush1.bf16.msra.mxu0 %v5837_v61  ;;  %v5875_v23 = vpack.c.bf16 %v1993_v19, %v1989_v18  ;;  %v2246_v18 = vld [vmem:[#allocation8 + $0x120] sm:$0xff]  ;;  %v2247_v19 = vld [vmem:[#allocation8 + $0x128] sm:$0xff] }
 0xdcf   :  { %5870 = vmatpush1.bf16.msra.mxu1 %v5869_v2  ;;  %5840 = vmatprep.subr.bf16.mxu0 %v5839_v7  ;;  %v2213_v2 = vld [vmem:[#allocation8 + $0x18] sm:$0xff]  ;;  %v2230_v7 = vld [vmem:[#allocation8 + $0xa0] sm:$0xff] }
 0xdd0   :  { %5872 = vmatprep.subr.bf16.mxu1 %v5871_v8  ;;  %v5887_v15 = vpack.c.bf16 %v2231_v9, %v2230_v7  ;;  %v2271_v7 = vld [vmem:[#allocation8 + $0x1e8] sm:$0xff] }
 0xdd1   :  { %v2223_v9 = vld [vmem:[#allocation8 + $0x68] sm:$0xff] }
 0xdd2   :  { %5842 = vmatpush1.bf16.msra.mxu0 %v5841_v12  ;;  %v5885_v12 = vpack.c.bf16 %v2213_v2, %v2212_v1  ;;  %v2253_v1 = vld [vmem:[#allocation8 + $0x158] sm:$0xff] }
 0xdd3   :  { %5874 = vmatpush1.bf16.msra.mxu1 %v5873_v16  ;;  %5844 = vmatprep.subr.bf16.mxu0 %v5843_v17  ;;  %v5919_v16 = vpack.c.bf16 %v2263_v11, %v2262_v10  ;;  %v2215_v17 = vld [vmem:[#allocation8 + $0x28] sm:$0xff]  ;;  %v5935_v10 = vpack.c.bf16 %v2271_v7, %v2270_v5 }
 0xdd4   :  { %5876 = vmatprep.subr.bf16.mxu1 %v5875_v23  ;;  %v5889_v22 = vpack.c.bf16 %v2215_v17, %v2214_v14  ;;  %v5921_v23 = vpack.c.bf16 %v2247_v19, %v2246_v18  ;;  %v2272_v17 = vld [vmem:[#allocation8 + $0x1f0] sm:$0xff]  ;;  %v2273_v19 = vld [vmem:[#allocation8 + $0x1f8] sm:$0xff] }
 0xdd6   :  { %5846 = vmatpush1.bf16.msra.mxu0 %v5845_v26  ;;  %v5891_v26 = vpack.c.bf16 %v2233_v24, %v2232_v50  ;;  %v5939_v50 = vpack.c.bf16 %v2273_v19, %v2272_v17 }
 0xdd7   :  { %5878 = vmatpush1.bf16.msra.mxu1 %v5877_v27  ;;  %5880 = vmatprep.subr.bf16.mxu0 %v5879_v31  ;;  %v2265_v27 = vld [vmem:[#allocation8 + $0x1b8] sm:$0xff]  ;;  %v5893_v31 = vpack.c.bf16 %v2217_v41, %v2216_v29  ;;  %v1994_v29 = vld [vmem:[%s7353_s11] sm:$0xf]  ;;  %v2010_v41 = vsub.s32 3, %v6752_v32 }
 0xdd8   :  { %5912 = vmatprep.subr.bf16.mxu1 %v5911_v28  ;;  %v5923_v30 = vpack.c.bf16 %v2265_v27, %v2264_v25  ;;  %v2249_v28 = vld [vmem:[#allocation8 + $0x138] sm:$0xff]  ;;  %v2256_v25 = vld [vmem:[#allocation8 + $0x170] sm:$0xff] }
 0xe57   :  { %v1903_v46 = vpop.xlane.xlu0 %1902 }
 0xe58   :  { %v1906_v35 = vmul.f32 0.0078125, %v1903_v46  ;;  %v5925_v46 = vpack.c.bf16 %v2249_v28, %v2248_v34  ;;  %v2003_v34 = vrot.slane %v1994_v29, %v6755_v37  ;;  %v2011_v28 = vrot.slane %v1994_v29, %v2010_v41 }
 0xe5a   :  { %v1908_v38 = vadd.f32 1e-12, %v1906_v35  ;;  %v2234_v35 = vld [vmem:[#allocation8 + $0xc0] sm:$0xff] }
 0xe5b   :  { %v1905_v53 = vpop.xlane.xlu0 %1904 }
 0xe5c   :  { %6299 = vrsqrt.f32 %v1908_v38  ;;  %v1907_v42 = vmul.f32 0.0078125, %v1905_v53  ;;  %v2235_v38 = vld [vmem:[#allocation8 + $0xc8] sm:$0xff]  ;;  %v2266_v53 = vld [vmem:[#allocation8 + $0x1c0] sm:$0xff] }
 0xe5e   :  { %v1909_v54 = vadd.f32 1e-12, %v1907_v42  ;;  %v5895_v42 = vpack.c.bf16 %v2235_v38, %v2234_v35 }
 0xe60   :  { %6301 = vrsqrt.f32 %v1909_v54  ;;  %v2267_v54 = vld [vmem:[#allocation8 + $0x1c8] sm:$0xff] }
 0xe66   :  { %v6300_v43 = vpop.eup %6299 }
 0xe67   :  { %v1912_v47 = vmul.f32 %v6300_v43, %v6948_v20  ;;  %v5915_v20 = vpack.c.bf16 %v2261_v33, %v2260_v55  ;;  %v2218_v43 = vld [vmem:[#allocation8 + $0x40] sm:$0xff]  ;;  %v2269_v55 = vld [vmem:[#allocation8 + $0x1d8] sm:$0xff]  ;;  %v2220_v33 = vld [vmem:[#allocation8 + $0x50] sm:$0xff] }
 0xe69   :  { %v1920_v58 = vmul.f32 %v4982_v44, %v1912_v47 }
 0xe6a   :  { %v6302_v59 = vpop.eup %6301 }
 0xe6b   :  { %v6963_v60 = vadd.f32 %v4983_v45, %v1920_v58  ;;  %v1913_v61 = vmul.f32 %v6302_v59, %v6950_v21  ;;  %v2268_v58 = vld [vmem:[#allocation8 + $0x1d0] sm:$0xff]  ;;  %v2221_v59 = vld [vmem:[#allocation8 + $0x58] sm:$0xff] }
 0xe6d   :  { %2081 = vmatmul.mubr.f32.vlgmr.msra.gmra.mrb[12].mxu0 %v6963_v60  ;;  %2158 = vmatmul.mubr.f32.vlgmr.msra.gmra.mrb[28].mxu1 %v6963_v60  ;;  %v1921_v8 = vmul.f32 %v4982_v44, %v1913_v61  ;;  %v2219_v44 = vld [vmem:[#allocation8 + $0x48] sm:$0xff]  ;;  %v5931_v61 = vpack.c.bf16 %v2269_v55, %v2268_v58 }
 0xe6e   :  { %2086 = vmatprep.mubr.f32.mxu0 %v6532_v4  ;;  %2163 = vmatprep.mubr.f32.mxu1 %v6532_v4  ;;  %v5897_v47 = vpack.c.bf16 %v2219_v44, %v2218_v43 }
 0xe6f   :  { %v6970_v21 = vadd.f32 %v4983_v45, %v1921_v8  ;;  %5882 = vmatpush3.bf16.msra.mxu0 %v5881_v62  ;;  %5914 = vmatpush3.bf16.msra.mxu1 %v5913_v0  ;;  %v5927_v45 = vpack.c.bf16 %v2267_v54, %v2266_v53  ;;  %v5901_v62 = vpack.c.bf16 %v2221_v59, %v2220_v33  ;;  %v2252_v0 = vld [vmem:[#allocation8 + $0x150] sm:$0xff]  ;;  %v2222_v8 = vld [vmem:[#allocation8 + $0x60] sm:$0xff] }
 0xe70   :  { %5884 = vmatprep.subr.bf16.mxu0 %v5883_v3  ;;  %5916 = vmatprep.subr.bf16.mxu1 %v5915_v20  ;;  %v5933_v2 = vpack.c.bf16 %v2253_v1, %v2252_v0  ;;  %v2238_v3 = vld [vmem:[#allocation8 + $0xe0] sm:$0xff]  ;;  %v2239_v20 = vld [vmem:[#allocation8 + $0xe8] sm:$0xff]  ;;  %v5905_v11 = vpack.c.bf16 %v2223_v9, %v2222_v8 }
 0xe71   :  { %2087 = vmatmul.mubr.f32.gmra.mrb[14].mxu0 %v6970_v21  ;;  %2164 = vmatmul.mubr.f32.gmra.mrb[30].mxu1 %v6970_v21  ;;  %v5903_v49 = vpack.c.bf16 %v2239_v20, %v2238_v3 }
 0xe73   :  { %5886 = vmatpush3.bf16.msra.mxu0 %v5885_v12  ;;  %5918 = vmatpush3.bf16.msra.mxu1 %v5917_v13  ;;  %v2254_v12 = vld [vmem:[#allocation8 + $0x160] sm:$0xff]  ;;  %v2255_v13 = vld [vmem:[#allocation8 + $0x168] sm:$0xff] }
 0xe74   :  { %5888 = vmatprep.subr.bf16.mxu0 %v5887_v15  ;;  %5920 = vmatprep.subr.bf16.mxu1 %v5919_v16  ;;  %v5937_v14 = vpack.c.bf16 %v2255_v13, %v2254_v12  ;;  %v2240_v15 = vld [vmem:[#allocation8 + $0xf0] sm:$0xff]  ;;  %v2241_v16 = vld [vmem:[#allocation8 + $0xf8] sm:$0xff] }
 0xe75   :  { %v5907_v18 = vpack.c.bf16 %v2241_v16, %v2240_v15 }
 0xe77   :  { %5890 = vmatpush3.bf16.msra.mxu0 %v5889_v22  ;;  %5922 = vmatpush3.bf16.msra.mxu1 %v5921_v23  ;;  %v2224_v22 = vld [vmem:[#allocation8 + $0x70] sm:$0xff]  ;;  %v2225_v23 = vld [vmem:[#allocation8 + $0x78] sm:$0xff] }
 0xe78   :  { %5892 = vmatprep.subr.bf16.mxu0 %v5891_v26  ;;  %5924 = vmatprep.subr.bf16.mxu1 %v5923_v30  ;;  %v5909_v24 = vpack.c.bf16 %v2225_v23, %v2224_v22  ;;  %v2257_v26 = vld [vmem:[#allocation8 + $0x178] sm:$0xff]  ;;  %v1999_v30 = vrot.slane %v1994_v29, %v6761_v39 }
 0xe79   :  { %v5941_v27 = vpack.c.bf16 %v2257_v26, %v2256_v25 }
 0xe7b   :  { %5894 = vmatpush3.bf16.msra.mxu0 %v5893_v31  ;;  %5926 = vmatpush3.bf16.msra.mxu1 %v5925_v46  ;;  %v2007_v31 = vrot.slane %v1994_v29, %v6764_v40 }
 0xe7c   :  { %5896 = vmatprep.subr.bf16.mxu0 %v5895_v42  ;;  %5928 = vmatprep.subr.bf16.mxu1 %v5927_v45 }
 0xe7f   :  { %5898 = vmatpush3.bf16.msra.mxu0 %v5897_v47  ;;  %5930 = vmatpush3.bf16.msra.mxu1 %v5929_v52 }
 0xe80   :  { %5900 = vmatprep.subr.bf16.mxu0 %v5899_v36  ;;  %5932 = vmatprep.subr.bf16.mxu1 %v5931_v61 }
 0xe83   :  { %5902 = vmatpush3.bf16.msra.mxu0 %v5901_v62  ;;  %5934 = vmatpush3.bf16.msra.mxu1 %v5933_v2 }
 0xe84   :  { %5904 = vmatprep.subr.bf16.mxu0 %v5903_v49  ;;  %5936 = vmatprep.subr.bf16.mxu1 %v5935_v10 }
 0xe87   :  { %5906 = vmatpush3.bf16.msra.mxu0 %v5905_v11  ;;  %5938 = vmatpush3.bf16.msra.mxu1 %v5937_v14 }
 0xe88   :  { %5908 = vmatprep.subr.bf16.mxu0 %v5907_v18  ;;  %5940 = vmatprep.subr.bf16.mxu1 %v5939_v50 }
 0xe8b   :  { %5910 = vmatpush3.bf16.msra.mxu0 %v5909_v24  ;;  %5942 = vmatpush3.bf16.msra.mxu1 %v5941_v27 }
 0xf40   :  { %v2082_v46 = vpop.f32.mrb[12].mxu0  ;;  %v2159_v35 = vpop.f32.mrb[28].mxu1 }
 0xf41   :  { %v2083_v38 = vadd.f32 %v2082_v46, %v1999_v30  ;;  %v2160_v53 = vadd.f32 %v2159_v35, %v2007_v31  ;;  %v2084_v42 = vpop.f32.mrb[13].mxu0  ;;  %v2161_v54 = vpop.f32.mrb[29].mxu1 }
 0xf42   :  { %v2085_v43 = vadd.f32 %v2084_v42, %v2003_v34  ;;  %v2162_v44 = vadd.f32 %v2161_v54, %v2011_v28  ;;  %v4984_v42 = vld [vmem:[%s7355_s13] ss:$0 sm:$0xff] }
 0xf43   :  { %v2178_v45 = vmul.f32 0.70710677, %v2083_v38  ;;  %v2180_v47 = vmul.f32 0.70710677, %v2160_v53  ;;  %v2170_v10 = vmul.f32 0.5, %v2083_v38  ;;  %v2172_v14 = vmul.f32 0.5, %v2160_v53 }
 0xf44   :  { %v2179_v48 = vmul.f32 0.70710677, %v2085_v43  ;;  %v2181_v51 = vmul.f32 0.70710677, %v2162_v44  ;;  %v2088_v52 = vpop.f32.mrb[14].mxu0  ;;  %v2165_v56 = vpop.f32.mrb[30].mxu1 }
 0xf45   :  { %6303 = verf.f32 %v2178_v45  ;;  %v2089_v57 = vadd.f32 %v2088_v52, %v1999_v30  ;;  %v2166_v58 = vadd.f32 %v2165_v56, %v2007_v31  ;;  %v2090_v36 = vpop.f32.mrb[15].mxu0  ;;  %v2167_v55 = vpop.f32.mrb[31].mxu1  ;;  %v2171_v8 = vmul.f32 0.5, %v2085_v43 }
 0xf46   :  { %6305 = verf.f32 %v2180_v47  ;;  %v2091_v33 = vadd.f32 %v2090_v36, %v2003_v34  ;;  %v2168_v59 = vadd.f32 %v2167_v55, %v2011_v28  ;;  %v2173_v11 = vmul.f32 0.5, %v2162_v44 }
 0xf47   :  { %6307 = verf.f32 %v2179_v48  ;;  %v2182_v61 = vmul.f32 0.70710677, %v2089_v57  ;;  %v2184_v62 = vmul.f32 0.70710677, %v2166_v58  ;;  %v2174_v27 = vmul.f32 0.5, %v2089_v57 }
 0xf48   :  { %6309 = verf.f32 %v2181_v51  ;;  %v2183_v0 = vmul.f32 0.70710677, %v2091_v33  ;;  %v2185_v1 = vmul.f32 0.70710677, %v2168_v59  ;;  %v2175_v25 = vmul.f32 0.5, %v2091_v33 }
 0xf49   :  { %6311 = verf.f32 %v2182_v61  ;;  %v2177_v29 = vmul.f32 0.5, %v2168_v59  ;;  %v2176_v31 = vmul.f32 0.5, %v2166_v58 }
 0xf4a   :  { %6313 = verf.f32 %v2184_v62  ;;  %v2475_v62 = vld [vmem:[#allocation2 + $0x188] sm:$0xff] }
 0xf4b   :  { %6315 = verf.f32 %v2183_v0  ;;  %v2478_v0 = vld [vmem:[#allocation2 + $0x1a0] sm:$0xff] }
 0xf4c   :  { %6317 = verf.f32 %v2185_v1  ;;  %v2474_v1 = vld [vmem:[#allocation2 + $0x180] sm:$0xff] }
 0xf4f   :  { %v6304_v2 = vpop.eup %6303 }
 0xf50   :  { %v6306_v3 = vpop.eup %6305  ;;  %v2194_v5 = vadd.f32 1.0, %v6304_v2  ;;  %v5943_v2 = vpack.c.bf16 %v2478_v0, %v2475_v62  ;;  %v2507_v62 = vld [vmem:[#allocation2 + $0x288] sm:$0xff] }
 0xf51   :  { %v6308_v20 = vpop.eup %6307  ;;  %v2196_v7 = vadd.f32 1.0, %v6306_v3  ;;  %v2477_v3 = vld [vmem:[#allocation2 + $0x198] sm:$0xff] }
 0xf52   :  { %v6310_v49 = vpop.eup %6309  ;;  %v2195_v9 = vadd.f32 1.0, %v6308_v20  ;;  %v2202_v17 = vmul.f32 %v2194_v5, %v2170_v10  ;;  %v2481_v20 = vld [vmem:[#allocation2 + $0x1b8] sm:$0xff]  ;;  %v2484_v5 = vld [vmem:[#allocation2 + $0x1d0] sm:$0xff]  ;;  %5944 = vmatprep.subr.bf16.mxu0 %v5943_v2  ;;  %v2511_v2 = vld [vmem:[#allocation2 + $0x2a8] sm:$0xff] }
 0xf53   :  { %v2197_v12 = vadd.f32 1.0, %v6310_v49  ;;  %v6312_v13 = vpop.eup %6311  ;;  %v2204_v22 = vmul.f32 %v2196_v7, %v2172_v14  ;;  %v5945_v49 = vpack.c.bf16 %v2477_v3, %v2474_v1  ;;  %v5947_v7 = vpack.c.bf16 %v2484_v5, %v2481_v20  ;;  %v2480_v10 = vld [vmem:[#allocation2 + $0x1b0] sm:$0xff]  ;;  %v2482_v14 = vld [vmem:[#allocation2 + $0x1c0] sm:$0xff] }
 0xf54   :  { %v2203_v15 = vmul.f32 %v2195_v9, %v2171_v8  ;;  %v6314_v16 = vpop.eup %6313  ;;  %v2198_v23 = vadd.f32 1.0, %v6312_v13  ;;  %v2476_v8 = vld [vmem:[#allocation2 + $0x190] sm:$0xff]  ;;  %v2479_v9 = vld [vmem:[#allocation2 + $0x1a8] sm:$0xff]  ;;  %v2490_v13 = vld [vmem:[#allocation2 + $0x200] sm:$0xff] }
 0xf55   :  { %v2205_v18 = vmul.f32 %v2197_v12, %v2173_v11  ;;  %v6316_v19 = vpop.eup %6315  ;;  %v2200_v24 = vadd.f32 1.0, %v6314_v16  ;;  %v2483_v11 = vld [vmem:[#allocation2 + $0x1c8] sm:$0xff]  ;;  %v2514_v3 = vld [vmem:[#allocation2 + $0x2c0] sm:$0xff] }
 0xf56   :  { %2345 = vmatprep.mubr.f32.mxu0 %v2203_v15  ;;  %v6318_v50 = vpop.eup %6317  ;;  %v2199_v26 = vadd.f32 1.0, %v6316_v19  ;;  %v2206_v46 = vmul.f32 %v2198_v23, %v2174_v27  ;;  %v2487_v12 = vld [vmem:[#allocation2 + $0x1e8] sm:$0xff]  ;;  %v2485_v15 = vld [vmem:[#allocation2 + $0x1d8] sm:$0xff]  ;;  %v2506_v20 = vld [vmem:[#allocation2 + $0x280] sm:$0xff]  ;;  %v5967_v5 = vpack.c.bf16 %v2514_v3, %v2511_v2 }
 0xf57   :  { %2420 = vmatprep.mubr.f32.mxu1 %v2205_v18  ;;  %2346 = vmatmul.mubr.f32.vlgmr.msra.gmra.mrb[16].mxu0 %v2202_v17  ;;  %v2201_v30 = vadd.f32 1.0, %v6318_v50  ;;  %v2208_v35 = vmul.f32 %v2200_v24, %v2176_v31  ;;  %v5951_v16 = vpack.c.bf16 %v2490_v13, %v2487_v12  ;;  %v5979_v17 = vpack.c.bf16 %v2485_v15, %v2482_v14  ;;  %v2486_v18 = vld [vmem:[#allocation2 + $0x1e0] sm:$0xff]  ;;  %v2489_v19 = vld [vmem:[#allocation2 + $0x1f8] sm:$0xff]  ;;  %v2512_v12 = vld [vmem:[#allocation2 + $0x2b0] sm:$0xff] }
 0xf58   :  { %2421 = vmatmul.mubr.f32.vlgmr.msra.gmra.mrb[32].mxu1 %v2204_v22  ;;  %v2207_v34 = vmul.f32 %v2199_v26, %v2175_v25  ;;  %5946 = vmatpush1.bf16.msra.mxu0 %v5945_v49  ;;  %v5953_v22 = vpack.c.bf16 %v2489_v19, %v2486_v18  ;;  %v2493_v31 = vld [vmem:[#allocation2 + $0x218] sm:$0xff]  ;;  %v2516_v14 = vld [vmem:[#allocation2 + $0x2d0] sm:$0xff]  ;;  %v2519_v15 = vld [vmem:[#allocation2 + $0x2e8] sm:$0xff] }
 0xf59   :  { %v2209_v28 = vmul.f32 %v2201_v30, %v2177_v29  ;;  %5948 = vmatprep.subr.bf16.mxu0 %v5947_v7  ;;  %v2509_v49 = vld [vmem:[#allocation2 + $0x298] sm:$0xff]  ;;  %v2510_v7 = vld [vmem:[#allocation2 + $0x2a0] sm:$0xff] }
 0xf5a   :  { %2350 = vmatprep.mubr.f32.mxu0 %v2207_v34  ;;  %v2496_v34 = vld [vmem:[#allocation2 + $0x230] sm:$0xff]  ;;  %v2518_v18 = vld [vmem:[#allocation2 + $0x2e0] sm:$0xff]  ;;  %v2521_v19 = vld [vmem:[#allocation2 + $0x2f8] sm:$0xff] }
 0xf5b   :  { %2425 = vmatprep.mubr.f32.mxu1 %v2209_v28  ;;  %2351 = vmatmul.mubr.f32.gmra.mrb[18].mxu0 %v2206_v46  ;;  %v2488_v28 = vld [vmem:[#allocation2 + $0x1f0] sm:$0xff]  ;;  %v5955_v46 = vpack.c.bf16 %v2496_v34, %v2493_v31  ;;  %v4985_v34 = vld [vmem:[%s7356_s14] ss:$0 sm:$0xff] }
 0xf5c   :  { %2426 = vmatmul.mubr.f32.gmra.mrb[34].mxu1 %v2208_v35  ;;  %2604 = vmatprep.mubr.f32.mxu0 %v6532_v4  ;;  %v2491_v35 = vld [vmem:[#allocation2 + $0x208] sm:$0xff] }
0x102a   :  { %v5127_v38 = vpop.f32.mrb[16].mxu0 }
0x102b   :  { %v5165_v53 = vpop.f32.mrb[32].mxu1  ;;  %v5128_v54 = vpop.f32.mrb[17].mxu0 }
0x102c   :  { %v5129_v43 = vadd.f32 %v5128_v54, %v5127_v38  ;;  %v5166_v44 = vpop.f32.mrb[33].mxu1  ;;  %v2492_v38 = vld [vmem:[#allocation2 + $0x210] sm:$0xff] }
0x102d   :  { %v5167_v45 = vadd.f32 %v5166_v44, %v5165_v53  ;;  %v2495_v53 = vld [vmem:[#allocation2 + $0x228] sm:$0xff]  ;;  %v2502_v44 = vld [vmem:[#allocation2 + $0x260] sm:$0xff] }
0x102e   :  { %v2348_v47 = vadd.f32 %v5129_v43, %v4984_v42  ;;  %v5130_v48 = vpop.f32.mrb[18].mxu0  ;;  %v5957_v54 = vpack.c.bf16 %v2495_v53, %v2492_v38  ;;  %v2499_v43 = vld [vmem:[#allocation2 + $0x248] sm:$0xff] }
0x102f   :  { %v5168_v52 = vpop.f32.mrb[34].mxu1  ;;  %v5131_v56 = vpop.f32.mrb[19].mxu0 }
0x1030   :  { %v2423_v51 = vadd.f32 %v5167_v45, %v2348_v47  ;;  %v5132_v57 = vadd.f32 %v5131_v56, %v5130_v48  ;;  %v5169_v58 = vpop.f32.mrb[35].mxu1  ;;  %v2494_v45 = vld [vmem:[#allocation2 + $0x220] sm:$0xff]  ;;  %v5959_v47 = vpack.c.bf16 %v2502_v44, %v2499_v43  ;;  %v2497_v48 = vld [vmem:[#allocation2 + $0x238] sm:$0xff] }
0x1031   :  { %v5170_v36 = vadd.f32 %v5169_v58, %v5168_v52  ;;  %v2501_v52 = vld [vmem:[#allocation2 + $0x258] sm:$0xff]  ;;  %v5987_v56 = vpack.c.bf16 %v2497_v48, %v2494_v45 }
0x1032   :  { %v2431_v55 = vadd.f32 %v2423_v51, %v6963_v60  ;;  %v2353_v33 = vadd.f32 %v5132_v57, %v4984_v42  ;;  %v5975_v60 = vpack.c.bf16 %v2479_v9, %v2476_v8  ;;  %v5983_v42 = vpack.c.bf16 %v2491_v35, %v2488_v28  ;;  %v2498_v51 = vld [vmem:[#allocation2 + $0x240] sm:$0xff]  ;;  %v2505_v58 = vld [vmem:[#allocation2 + $0x278] sm:$0xff] }
0x1033   :  { %v5961_v57 = vpack.c.bf16 %v2501_v52, %v2498_v51  ;;  %v2513_v8 = vld [vmem:[#allocation2 + $0x2b8] sm:$0xff]  ;;  %v5995_v9 = vpack.c.bf16 %v2509_v49, %v2506_v20 }
0x1034   :  { %2435 = vadd.xlane.f32.xlu1 %v2431_v55  ;;  %v2428_v59 = vadd.f32 %v5170_v36, %v2353_v33  ;;  %5976 = vmatprep.subr.bf16.mxu1 %v5975_v60  ;;  %v2508_v36 = vld [vmem:[#allocation2 + $0x290] sm:$0xff] }
0x1035   :  { %5978 = vmatpush3.bf16.msra.mxu1 %v5975_v60  ;;  %v5963_v33 = vpack.c.bf16 %v2508_v36, %v2505_v58  ;;  %v2517_v60 = vld [vmem:[#allocation2 + $0x2d8] sm:$0xff] }
0x1036   :  { %v2432_v61 = vadd.f32 %v2428_v59, %v6970_v21  ;;  %v5949_v21 = vpack.c.bf16 %v2483_v11, %v2480_v10  ;;  %5980 = vmatprep.subr.bf16.mxu1 %v5979_v17  ;;  %v2503_v59 = vld [vmem:[#allocation2 + $0x268] sm:$0xff]  ;;  %v5969_v10 = vpack.c.bf16 %v2513_v8, %v2510_v7  ;;  %v2520_v11 = vld [vmem:[#allocation2 + $0x2f0] sm:$0xff] }
0x1037   :  { %v5971_v13 = vpack.c.bf16 %v2520_v11, %v2517_v60 }
0x1038   :  { %2437 = vadd.xlane.f32.xlu0 %v2432_v61  ;;  %5950 = vmatpush1.bf16.msra.mxu0 %v5949_v21  ;;  %v2515_v21 = vld [vmem:[#allocation2 + $0x2c8] sm:$0xff] }
0x1039   :  { %5952 = vmatprep.subr.bf16.mxu0 %v5951_v16  ;;  %5982 = vmatpush3.bf16.msra.mxu1 %v5979_v17  ;;  %v5999_v16 = vpack.c.bf16 %v2515_v21, %v2512_v12  ;;  %v5973_v17 = vpack.c.bf16 %v2519_v15, %v2516_v14 }
0x103a   :  { %5984 = vmatprep.subr.bf16.mxu1 %v5983_v42 }
0x103c   :  { %5954 = vmatpush1.bf16.msra.mxu0 %v5953_v22  ;;  %v6003_v22 = vpack.c.bf16 %v2521_v19, %v2518_v18 }
0x103d   :  { %5956 = vmatprep.subr.bf16.mxu0 %v5955_v46  ;;  %5986 = vmatpush3.bf16.msra.mxu1 %v5983_v42  ;;  %v4986_v46 = vld [vmem:[%s7357_s15] ss:$0 sm:$0xff] }
0x103e   :  { %5988 = vmatprep.subr.bf16.mxu1 %v5987_v56 }
0x1040   :  { %5958 = vmatpush1.bf16.msra.mxu0 %v5957_v54 }
0x1041   :  { %5960 = vmatprep.subr.bf16.mxu0 %v5959_v47  ;;  %5990 = vmatpush3.bf16.msra.mxu1 %v5987_v56 }
0x1044   :  { %5962 = vmatpush1.bf16.msra.mxu0 %v5961_v57 }
0x1045   :  { %5964 = vmatprep.subr.bf16.mxu0 %v5963_v33 }
0x10c1   :  { %v2436_v23 = vpop.xlane.xlu1 %2435 }
0x10c2   :  { %v2439_v50 = vmul.f32 0.0078125, %v2436_v23 }
0x10c4   :  { %v6989_v24 = vsub.f32 %v2431_v55, %v2439_v50  ;;  %v2500_v55 = vld [vmem:[#allocation2 + $0x250] sm:$0xff] }
0x10c5   :  { %v2438_v25 = vpop.xlane.xlu0 %2437  ;;  %v5991_v0 = vpack.c.bf16 %v2503_v59, %v2500_v55 }
0x10c6   :  { %v2443_v26 = vmul.f32 %v6989_v24, %v6989_v24  ;;  %v2440_v27 = vmul.f32 0.0078125, %v2438_v25 }
0x10c7   :  { %5992 = vmatprep.subr.bf16.mxu1 %v5991_v0 }
0x10c8   :  { %2445 = vadd.xlane.f32.xlu1 %v2443_v26  ;;  %v6993_v29 = vsub.f32 %v2432_v61, %v2440_v27  ;;  %v2504_v61 = vld [vmem:[#allocation2 + $0x270] sm:$0xff]  ;;  %5994 = vmatpush3.bf16.msra.mxu1 %v5991_v0 }
0x10c9   :  { %v5965_v1 = vpack.c.bf16 %v2507_v62, %v2504_v61  ;;  %5996 = vmatprep.subr.bf16.mxu1 %v5995_v9 }
0x10ca   :  { %v2444_v30 = vmul.f32 %v6993_v29, %v6993_v29 }
0x10cb   :  { %5966 = vmatpush1.bf16.msra.mxu0 %v5965_v1 }
0x10cc   :  { %2447 = vadd.xlane.f32.xlu0 %v2444_v30  ;;  %5968 = vmatprep.subr.bf16.mxu0 %v5967_v5 }
0x10cd   :  { %5998 = vmatpush3.bf16.msra.mxu1 %v5995_v9 }
0x10ce   :  { %6000 = vmatprep.subr.bf16.mxu1 %v5999_v16 }
0x10cf   :  { %5970 = vmatpush1.bf16.msra.mxu0 %v5969_v10 }
0x10d0   :  { %5972 = vmatprep.subr.bf16.mxu0 %v5971_v13 }
0x10d1   :  { %6002 = vmatpush3.bf16.msra.mxu1 %v5999_v16 }
0x10d2   :  { %6004 = vmatprep.subr.bf16.mxu1 %v6003_v22 }
0x10d3   :  { %5974 = vmatpush1.bf16.msra.mxu0 %v5973_v17 }
0x10d4   :  { %5534 = vmatprep.subr.mxu0 %v6532_v4 }
0x10d5   :  { %6006 = vmatpush3.bf16.msra.mxu1 %v6003_v22 }
0x10d6   :  { %5569 = vmatprep.subr.mxu1 %v6532_v4 }
0x1155   :  { %v2446_v23 = vpop.xlane.xlu1 %2445 }
0x1156   :  { %v2449_v50 = vmul.f32 0.0078125, %v2446_v23 }
0x1158   :  { %v2451_v25 = vadd.f32 1e-12, %v2449_v50 }
0x1159   :  { %v2448_v26 = vpop.xlane.xlu0 %2447 }
0x115a   :  { %6319 = vrsqrt.f32 %v2451_v25  ;;  %v2450_v27 = vmul.f32 0.0078125, %v2448_v26 }
0x115c   :  { %v2452_v30 = vadd.f32 1e-12, %v2450_v27 }
0x115e   :  { %6321 = vrsqrt.f32 %v2452_v30 }
0x1164   :  { %v6320_v31 = vpop.eup %6319 }
0x1165   :  { %v2455_v28 = vmul.f32 %v6320_v31, %v6989_v24  ;;  %v4987_v24 = vld [vmem:[%s7347_s5 + $0x3] sm:$0x7] }
0x1166   :  { %v2528_v45 = vrot.slane %v4987_v24, %v6761_v39  ;;  %v2536_v51 = vrot.slane %v4987_v24, %v6764_v40 }
0x1167   :  { %v2463_v35 = vmul.f32 %v4985_v34, %v2455_v28 }
0x1168   :  { %v6322_v38 = vpop.eup %6321 }
0x1169   :  { %v7006_v53 = vadd.f32 %v4986_v46, %v2463_v35  ;;  %v2456_v42 = vmul.f32 %v6322_v38, %v6993_v29  ;;  %v2532_v29 = vrot.slane %v4987_v24, %v6755_v37 }
0x116b   :  { %2605 = vmatmul.mubr.f32.vlgmr.msra.gmra.mrb[20].mxu0 %v7006_v53  ;;  %5531 = vmatprep.mubr.f32.mxu1 %v7006_v53  ;;  %v2464_v54 = vmul.f32 %v4985_v34, %v2456_v42 }
0x116c   :  { %2610 = vmatprep.mubr.f32.mxu0 %v6532_v4 }
0x116d   :  { %v7012_v43 = vadd.f32 %v4986_v46, %v2464_v54 }
0x116f   :  { %2611 = vmatmul.mubr.f32.gmra.mrb[22].mxu0 %v7012_v43  ;;  %5532 = vmatmul.mubr.f32.vlgmr.msra.gmra.mrb[36].mxu1 %v7012_v43 }
0x1170   :  { %5536 = vmatprep.mubr.msk.f32.mxu0 %vm6533_vm0, %v6532_v4  ;;  %5571 = vmatprep.mubr.msk.f32.mxu1 %vm6533_vm0, %v6532_v4 }
0x123e   :  { %v2606_v44 = vpop.f32.mrb[20].mxu0 }
0x123f   :  { %v2608_v47 = vpop.f32.mrb[21].mxu0  ;;  %v7030_v52 = vadd.f32 %v2606_v44, %v2528_v45 }
0x1240   :  { %v7025_v48 = vadd.f32 %v2608_v47, %v2532_v29 }
0x1242   :  { %5535 = vmatpush3.xpose.msk.msra.mxu0 %vm418_vm1, %v7025_v48  ;;  %v2612_v56 = vpop.f32.mrb[22].mxu0  ;;  %v5533_v57 = vpop.f32.mrb[36].mxu1 }
0x1243   :  { %5539 = vmatprep.subr.mxu0 %v6532_v4  ;;  %v7033_v58 = vadd.f32 %v5533_v57, %v2536_v51  ;;  %v2614_v36 = vpop.f32.mrb[23].mxu0  ;;  %v2683_v55 = vpop.f32.mrb[37].mxu1  ;;  %v7043_v59 = vadd.f32 %v2612_v56, %v2528_v45 }
0x1244   :  { %v7035_v33 = vadd.f32 %v2614_v36, %v2532_v29  ;;  %v7046_v61 = vadd.f32 %v2683_v55, %v2536_v51 }
0x1245   :  { %5537 = vmatmul.mubr.msk.f32.vlgmr.msra.gmra.mrb[24].mxu0 %vm418_vm1, %v7030_v52 }
0x1246   :  { %5541 = vmatprep.mubr.msk.f32.mxu0 %vm6533_vm0, %v6532_v4  ;;  %5540 = vmatpush3.xpose.msk.msra.mxu0 %vm418_vm1, %v7035_v33 }
0x1247   :  { %5544 = vmatprep.subr.mxu0 %v6532_v4 }
0x1249   :  { %5542 = vmatmul.mubr.msk.f32.vlgmr.msra.gmra.mrb[26].mxu0 %vm418_vm1, %v7043_v59 }
0x124a   :  { %5545 = vmatpush3.msra.mxu0 %v7046_v61  ;;  %5546 = vmatprep.mubr.msk.f32.mxu0 %vm6533_vm0, %v6532_v4 }
0x124b   :  { %5549 = vmatprep.subr.mxu0 %v6532_v4 }
0x1318   :  { %v2764_v62 = vpop.f32.mrb[24].mxu0 }
0x1319   :  { %v2844_v0 = vmul.f32 0.17677669, %v2764_v62  ;;  %v5538_v1 = vpop.f32.mrb[25].mxu0 }
0x131b   :  { %v2846_v2 = vadd.f32 %v2844_v0, %v6802_v63 }
0x131c   :  { %v2840_v3 = vpop.f32.mrb[26].mxu0 }
0x131d   :  { %v2848_v20 = vsel %vm585_vm2, %v2846_v2, -inf  ;;  %v2845_v5 = vmul.f32 0.17677669, %v2840_v3  ;;  %v5543_v49 = vpop.f32.mrb[27].mxu0 }
0x131e   :  { %2849 = vmax.xlane.f32.xlu1 %v2848_v20 }
0x131f   :  { %v2847_v7 = vadd.f32 %v2845_v5, %v6806_v6 }
0x1321   :  { %v2851_v8 = vsel %vm585_vm2, %v2847_v7, -inf }
0x1322   :  { %2852 = vmax.xlane.f32.xlu0 %v2851_v8 }
0x13ab   :  { %v2850_v9 = vpop.xlane.xlu1 %2849 }
0x13ac   :  { %v2854_v10 = vsub.f32 %v2846_v2, %v2850_v9 }
0x13ae   :  { %v2856_v60 = vmul.f32 1.442695, %v2854_v10 }
0x13af   :  { %v2853_v11 = vpop.xlane.xlu0 %2852 }
0x13b0   :  { %6323 = vpow2.f32 %v2856_v60  ;;  %v2855_v12 = vsub.f32 %v2847_v7, %v2853_v11 }
0x13b2   :  { %v2858_v13 = vmul.f32 1.442695, %v2855_v12 }
0x13b4   :  { %6325 = vpow2.f32 %v2858_v13 }
0x13ba   :  { %v6324_v21 = vpop.eup %6323 }
0x13bb   :  { %v2860_v14 = vsel %vm585_vm2, %v6324_v21, 0.0 }
0x13bc   :  { %2861 = vadd.xlane.f32.xlu1 %v2860_v14 }
0x13be   :  { %v6326_v15 = vpop.eup %6325 }
0x13bf   :  { %v2863_v16 = vsel %vm585_vm2, %v6326_v15, 0.0 }
0x13c0   :  { %2864 = vadd.xlane.f32.xlu0 %v2863_v16 }
0x13cd   :  { %3018 = vrot.lane.b32.xlu1 %v7025_v48, %s6535_s26 }
0x13d1   :  { %3096 = vrot.lane.b32.xlu1 %v7035_v33, %s6535_s26 }
0x13d5   :  { %3094 = vrot.lane.b32.xlu1 %v7043_v59, %s6535_s26 }
0x13d6   :  { %3016 = vrot.lane.b32.xlu0 %v7030_v52, %s6535_s26 }
0x1449   :  { %v2862_v17 = vpop.xlane.xlu1 %2861 }
0x144a   :  { %6327 = vrcp.f32 %v2862_v17 }
0x144d   :  { %v2865_v18 = vpop.xlane.xlu0 %2864  ;;  %v3019_v50 = vpop.permute.xlu1 %3018 }
0x144e   :  { %6329 = vrcp.f32 %v2865_v18 }
0x1451   :  { %v3097_v26 = vpop.permute.xlu1 %3096  ;;  %v3017_v27 = vpop.permute.xlu0 %3016 }
0x1454   :  { %v6328_v19 = vpop.eup %6327 }
0x1455   :  { %v2868_v22 = vmul.f32 %v6328_v19, %v6324_v21  ;;  %v3095_v30 = vpop.permute.xlu1 %3094 }
0x1457   :  { %5547 = vmatmul.mubr.msk.f32.vlgmr.msra.gmra.mrb[28].mxu0 %vm585_vm2, %v2868_v22 }
0x1458   :  { %5550 = vmatpush3.msra.mxu0 %v7033_v58  ;;  %5551 = vmatprep.mubr.msk.f32.mxu0 %vm6533_vm0, %v6532_v4  ;;  %v6330_v23 = vpop.eup %6329 }
0x1459   :  { %5554 = vmatprep.subr.mxu0 %v6532_v4  ;;  %v2869_v25 = vmul.f32 %v6330_v23, %v6326_v15 }
0x145b   :  { %5552 = vmatmul.mubr.msk.f32.vlgmr.msra.gmra.mrb[30].mxu0 %vm585_vm2, %v2869_v25 }
0x145c   :  { %5556 = vmatprep.mubr.msk.f32.mxu0 %vm6533_vm0, %v6532_v4 }
0x145f   :  { %5555 = vmatpush3.xpose.msk.msra.mxu0 %vm418_vm1, %v3019_v50 }
0x1460   :  { %5559 = vmatprep.subr.mxu0 %v6532_v4 }
0x1462   :  { %5557 = vmatmul.mubr.msk.f32.vlgmr.msra.gmra.mrb[32].mxu0 %vm418_vm1, %v3017_v27 }
0x1463   :  { %5560 = vmatpush3.xpose.msk.msra.mxu0 %vm418_vm1, %v3097_v26  ;;  %5561 = vmatprep.mubr.msk.f32.mxu0 %vm6533_vm0, %v6532_v4 }
0x1464   :  { %5564 = vmatprep.subr.mxu0 %v6532_v4 }
0x1466   :  { %5562 = vmatmul.mubr.msk.f32.vlgmr.msra.gmra.mrb[34].mxu0 %vm418_vm1, %v3095_v30 }
0x1467   :  { %5566 = vmatprep.mubr.msk.f32.mxu0 %vm6533_vm0, %v6532_v4 }
0x152a   :  { %v7086_v31 = vpop.f32.mrb[28].mxu0 }
0x152b   :  { %v5548_v34 = vpop.f32.mrb[29].mxu0 }
0x152e   :  { %v7088_v28 = vpop.f32.mrb[30].mxu0 }
0x152f   :  { %v5553_v46 = vpop.f32.mrb[31].mxu0 }
0x1535   :  { %v3090_v35 = vpop.f32.mrb[32].mxu0 }
0x1536   :  { %v3172_v38 = vmul.f32 0.17677669, %v3090_v35  ;;  %v5558_v42 = vpop.f32.mrb[33].mxu0 }
0x1538   :  { %v3174_v54 = vadd.f32 %v3172_v38, %v6802_v63 }
0x1539   :  { %v3168_v24 = vpop.f32.mrb[34].mxu0 }
0x153a   :  { %v3173_v29 = vmul.f32 0.17677669, %v3168_v24  ;;  %v5563_v44 = vpop.f32.mrb[35].mxu0  ;;  %v3176_v45 = vsel %vm585_vm2, %v3174_v54, -inf }
0x153b   :  { %3177 = vmax.xlane.f32.xlu1 %v3176_v45 }
0x153c   :  { %v3175_v47 = vadd.f32 %v3173_v29, %v6806_v6 }
0x153e   :  { %v3179_v51 = vsel %vm585_vm2, %v3175_v47, -inf }
0x153f   :  { %3180 = vmax.xlane.f32.xlu0 %v3179_v51 }
0x154c   :  { %3199 = vrot.lane.b32.xlu1 %v7046_v61, %s6535_s26 }
0x1550   :  { %3354 = vrot.lane.b32.xlu1 %v7025_v48, %s6536_s10 }
0x1554   :  { %3432 = vrot.lane.b32.xlu1 %v7035_v33, %s6536_s10 }
0x1555   :  { %3276 = vrot.lane.b32.xlu0 %v7033_v58, %s6535_s26 }
0x1558   :  { %3352 = vrot.lane.b32.xlu1 %v7030_v52, %s6536_s10 }
0x15c8   :  { %v3178_v56 = vpop.xlane.xlu1 %3177 }
0x15c9   :  { %v3182_v57 = vsub.f32 %v3174_v54, %v3178_v56 }
0x15cb   :  { %v3184_v36 = vmul.f32 1.442695, %v3182_v57 }
0x15cc   :  { %v3200_v55 = vpop.permute.xlu1 %3199  ;;  %v3181_v62 = vpop.xlane.xlu0 %3180 }
0x15cd   :  { %6331 = vpow2.f32 %v3184_v36  ;;  %v3183_v0 = vsub.f32 %v3175_v47, %v3181_v62  ;;  %5565 = vmatpush3.msra.mxu0 %v3200_v55 }
0x15ce   :  { %5574 = vmatprep.subr.mxu0 %v6532_v4 }
0x15cf   :  { %v3186_v1 = vmul.f32 1.442695, %v3183_v0 }
0x15d0   :  { %v3277_v2 = vpop.permute.xlu0 %3276  ;;  %v3355_v9 = vpop.permute.xlu1 %3354 }
0x15d1   :  { %6333 = vpow2.f32 %v3186_v1  ;;  %5570 = vmatpush3.msra.mxu1 %v3277_v2 }
0x15d2   :  { %5579 = vmatprep.subr.mxu1 %v6532_v4 }
0x15d4   :  { %v3433_v60 = vpop.permute.xlu1 %3432 }
0x15d7   :  { %v6332_v3 = vpop.eup %6331 }
0x15d8   :  { %v3188_v20 = vsel %vm585_vm2, %v6332_v3, 0.0  ;;  %v3353_v21 = vpop.permute.xlu1 %3352 }
0x15d9   :  { %3189 = vadd.xlane.f32.xlu0 %v3188_v20 }
0x15db   :  { %v6334_v5 = vpop.eup %6333 }
0x15dc   :  { %v3191_v49 = vsel %vm585_vm2, %v6334_v5, 0.0 }
0x15dd   :  { %3192 = vadd.xlane.f32.xlu0 %v3191_v49 }
0x15f3   :  { %3430 = vrot.lane.b32.xlu0 %v7043_v59, %s6536_s10 }
0x1666   :  { %v3190_v7 = vpop.xlane.xlu0 %3189 }
0x1667   :  { %6335 = vrcp.f32 %v3190_v7 }
0x166a   :  { %v3193_v8 = vpop.xlane.xlu0 %3192 }
0x166b   :  { %6337 = vrcp.f32 %v3193_v8 }
0x166e   :  { %v3431_v14 = vpop.permute.xlu0 %3430 }
0x1671   :  { %v6336_v10 = vpop.eup %6335 }
0x1672   :  { %v3196_v11 = vmul.f32 %v6336_v10, %v6332_v3 }
0x1674   :  { %5567 = vmatmul.mubr.msk.f32.vlgmr.msra.gmra.mrb[36].mxu0 %vm585_vm2, %v3196_v11 }
0x1675   :  { %v6338_v12 = vpop.eup %6337  ;;  %5575 = vmatpush3.xpose.msk.msra.mxu0 %vm418_vm1, %v3355_v9  ;;  %5576 = vmatprep.mubr.msk.f32.mxu0 %vm6533_vm0, %v6532_v4 }
0x1676   :  { %v3197_v13 = vmul.f32 %v6338_v12, %v6334_v5  ;;  %5584 = vmatprep.subr.mxu0 %v6532_v4 }
0x1678   :  { %5572 = vmatmul.mubr.msk.f32.vlgmr.msra.gmra.mrb[38].mxu1 %vm585_vm2, %v3197_v13  ;;  %5577 = vmatmul.mubr.msk.f32.vlgmr.msra.gmra.mrb[38].mxu0 %vm418_vm1, %v3353_v21 }
0x1679   :  { %5580 = vmatpush3.xpose.msk.msra.mxu1 %vm418_vm1, %v3433_v60  ;;  %5581 = vmatprep.mubr.msk.f32.mxu1 %vm6533_vm0, %v6532_v4 }
0x167a   :  { %5589 = vmatprep.subr.mxu1 %v6532_v4  ;;  %5586 = vmatprep.mubr.msk.f32.mxu0 %vm6533_vm0, %v6532_v4 }
0x167c   :  { %5582 = vmatmul.mubr.msk.f32.vlgmr.msra.gmra.mrb[40].mxu1 %vm418_vm1, %v3431_v14 }
0x167d   :  { %5591 = vmatprep.mubr.msk.f32.mxu1 %vm6533_vm0, %v6532_v4 }
0x1747   :  { %v7126_v15 = vpop.f32.mrb[36].mxu0 }
0x1748   :  { %v5568_v16 = vpop.f32.mrb[37].mxu0 }
0x174b   :  { %v7128_v17 = vpop.f32.mrb[38].mxu1  ;;  %v3426_v18 = vpop.f32.mrb[38].mxu0 }
0x174c   :  { %v6248_v19 = vpack.i.bf16 %v7128_v17, %v7126_v15  ;;  %v3508_v22 = vmul.f32 0.17677669, %v3426_v18  ;;  %v5573_v23 = vpop.f32.mrb[39].mxu1  ;;  %v5578_v50 = vpop.f32.mrb[39].mxu0 }
0x174e   :  { %v3510_v25 = vadd.f32 %v3508_v22, %v6802_v63 }
0x174f   :  { %v3504_v26 = vpop.f32.mrb[40].mxu1 }
0x1750   :  { %v3509_v27 = vmul.f32 0.17677669, %v3504_v26  ;;  %v5583_v30 = vpop.f32.mrb[41].mxu1  ;;  %v3512_v34 = vsel %vm585_vm2, %v3510_v25, -inf }
0x1751   :  { %3513 = vmax.xlane.f32.xlu1 %v3512_v34 }
0x1752   :  { %v3511_v46 = vadd.f32 %v3509_v27, %v6806_v6 }
0x1754   :  { %v3515_v35 = vsel %vm585_vm2, %v3511_v46, -inf }
0x1755   :  { %3516 = vmax.xlane.f32.xlu0 %v3515_v35 }
0x1762   :  { %3534 = vrot.lane.b32.xlu1 %v7046_v61, %s6536_s10 }
0x1766   :  { %3688 = vrot.lane.b32.xlu1 %v7025_v48, %s6530_s21 }
0x176a   :  { %3766 = vrot.lane.b32.xlu1 %v7035_v33, %s6530_s21 }
0x176b   :  { %3610 = vrot.lane.b32.xlu0 %v7033_v58, %s6536_s10 }
0x176e   :  { %3686 = vrot.lane.b32.xlu1 %v7030_v52, %s6530_s21 }
0x17de   :  { %v3514_v38 = vpop.xlane.xlu1 %3513 }
0x17df   :  { %v3518_v42 = vsub.f32 %v3510_v25, %v3514_v38 }
0x17e1   :  { %v3520_v54 = vmul.f32 1.442695, %v3518_v42 }
0x17e2   :  { %v3517_v24 = vpop.xlane.xlu0 %3516  ;;  %v3535_v29 = vpop.permute.xlu1 %3534 }
0x17e3   :  { %6339 = vpow2.f32 %v3520_v54  ;;  %v3519_v44 = vsub.f32 %v3511_v46, %v3517_v24  ;;  %5585 = vmatpush3.msra.mxu0 %v3535_v29  ;;  %v4051_v54 = vld [vmem:[#allocation5 + $0x80] sm:$0xff]  ;;  %v4052_v24 = vld [vmem:[#allocation5 + $0x88] sm:$0xff]  ;;  %v4053_v29 = vld [vmem:[#allocation5 + $0x90] sm:$0xff] }
0x17e4   :  { %5594 = vmatprep.subr.mxu0 %v6532_v4 }
0x17e5   :  { %v3522_v48 = vmul.f32 1.442695, %v3519_v44  ;;  %v4054_v44 = vld [vmem:[#allocation5 + $0x98] sm:$0xff] }
0x17e6   :  { %v3611_v45 = vpop.permute.xlu0 %3610  ;;  %v3689_v36 = vpop.permute.xlu1 %3688 }
0x17e7   :  { %6341 = vpow2.f32 %v3522_v48  ;;  %5590 = vmatpush3.msra.mxu1 %v3611_v45  ;;  %v6011_v48 = vpack.c.bf16 %v4054_v44, %v4053_v29  ;;  %v4055_v45 = vld [vmem:[#allocation5 + $0xa0] sm:$0xff]  ;;  %v4197_v44 = vld [vmem:[#allocation7 + $0x210] sm:$0xff] }
0x17e8   :  { %5599 = vmatprep.subr.mxu1 %v6532_v4 }
0x17ea   :  { %v3767_v62 = vpop.permute.xlu1 %3766 }
0x17ed   :  { %v6340_v33 = vpop.eup %6339 }
0x17ee   :  { %v3524_v47 = vsel %vm585_vm2, %v6340_v33, 0.0 }
0x17ef   :  { %3525 = vadd.xlane.f32.xlu0 %v3524_v47 }
0x17f1   :  { %v6342_v52 = vpop.eup %6341 }
0x17f2   :  { %v3527_v51 = vsel %vm585_vm2, %v6342_v52, 0.0 }
0x17f3   :  { %3528 = vadd.xlane.f32.xlu0 %v3527_v51  ;;  %v4058_v51 = vld [vmem:[#allocation5 + $0xb8] sm:$0xff] }
0x1809   :  { %3764 = vrot.lane.b32.xlu0 %v7043_v59, %s6530_s21  ;;  %v3687_v59 = vpop.permute.xlu1 %3686 }
0x187c   :  { %v3526_v56 = vpop.xlane.xlu0 %3525 }
0x187d   :  { %6343 = vrcp.f32 %v3526_v56 }
0x1880   :  { %v3529_v57 = vpop.xlane.xlu0 %3528 }
0x1881   :  { %6345 = vrcp.f32 %v3529_v57  ;;  %v4059_v57 = vld [vmem:[#allocation5 + $0xc0] sm:$0xff] }
0x1884   :  { %v3765_v3 = vpop.permute.xlu0 %3764 }
0x1887   :  { %v6344_v55 = vpop.eup %6343 }
0x1888   :  { %v3532_v0 = vmul.f32 %v6344_v55, %v6340_v33  ;;  %v4056_v33 = vld [vmem:[#allocation5 + $0xa8] sm:$0xff] }
0x1889   :  { %v6015_v47 = vpack.c.bf16 %v4056_v33, %v4055_v45  ;;  %v4204_v45 = vld [vmem:[#allocation7 + $0x248] sm:$0xff] }
0x188a   :  { %5587 = vmatmul.mubr.msk.f32.vlgmr.msra.gmra.mrb[40].mxu0 %vm585_vm2, %v3532_v0  ;;  %v4062_v0 = vld [vmem:[#allocation5 + $0xd8] sm:$0xff] }
0x188b   :  { %v6346_v1 = vpop.eup %6345  ;;  %5595 = vmatpush3.xpose.msk.msra.mxu0 %vm418_vm1, %v3689_v36  ;;  %5596 = vmatprep.mubr.msk.f32.mxu0 %vm6533_vm0, %v6532_v4  ;;  %v4060_v36 = vld [vmem:[#allocation5 + $0xc8] sm:$0xff] }
0x188c   :  { %v3533_v2 = vmul.f32 %v6346_v1, %v6342_v52  ;;  %5604 = vmatprep.subr.mxu0 %v6532_v4  ;;  %v4057_v52 = vld [vmem:[#allocation5 + $0xb0] sm:$0xff]  ;;  %v6023_v55 = vpack.c.bf16 %v4060_v36, %v4059_v57  ;;  %v4207_v57 = vld [vmem:[#allocation7 + $0x260] sm:$0xff] }
0x188d   :  { %v6019_v56 = vpack.c.bf16 %v4058_v51, %v4057_v52  ;;  %v4210_v52 = vld [vmem:[#allocation7 + $0x278] sm:$0xff]  ;;  %v4205_v36 = vld [vmem:[#allocation7 + $0x250] sm:$0xff] }
0x188e   :  { %5592 = vmatmul.mubr.msk.f32.vlgmr.msra.gmra.mrb[42].mxu1 %vm585_vm2, %v3533_v2  ;;  %5597 = vmatmul.mubr.msk.f32.vlgmr.msra.gmra.mrb[42].mxu0 %vm418_vm1, %v3687_v59  ;;  %v4063_v2 = vld [vmem:[#allocation5 + $0xe0] sm:$0xff]  ;;  %v4064_v59 = vld [vmem:[#allocation5 + $0xe8] sm:$0xff] }
0x188f   :  { %5600 = vmatpush3.xpose.msk.msra.mxu1 %vm418_vm1, %v3767_v62  ;;  %5601 = vmatprep.mubr.msk.f32.mxu1 %vm6533_vm0, %v6532_v4  ;;  %v4061_v62 = vld [vmem:[#allocation5 + $0xd0] sm:$0xff] }
0x1890   :  { %5609 = vmatprep.subr.mxu1 %v6532_v4  ;;  %5606 = vmatprep.mubr.msk.f32.mxu0 %vm6533_vm0, %v6532_v4  ;;  %v6027_v1 = vpack.c.bf16 %v4062_v0, %v4061_v62  ;;  %v4209_v62 = vld [vmem:[#allocation7 + $0x270] sm:$0xff]  ;;  %v4212_v0 = vld [vmem:[#allocation7 + $0x288] sm:$0xff] }
0x1892   :  { %5602 = vmatmul.mubr.msk.f32.vlgmr.msra.gmra.mrb[44].mxu1 %vm418_vm1, %v3765_v3  ;;  %v6031_v3 = vpack.c.bf16 %v4064_v59, %v4063_v2  ;;  %v6077_v2 = vpack.c.bf16 %v4209_v62, %v4205_v36  ;;  %v4241_v36 = vld [vmem:[#allocation7 + $0x370] sm:$0xff] }
0x1893   :  { %5611 = vmatprep.mubr.msk.f32.mxu1 %vm6533_vm0, %v6532_v4 }
0x195d   :  { %v3606_v20 = vpop.f32.mrb[40].mxu0 }
0x195e   :  { %v5588_v5 = vpop.f32.mrb[41].mxu0 }
0x195f   :  { %v4066_v5 = vld [vmem:[#allocation5 + $0xf8] sm:$0xff] }
0x1961   :  { %v3682_v49 = vpop.f32.mrb[42].mxu1  ;;  %v3760_v7 = vpop.f32.mrb[42].mxu0 }
0x1962   :  { %v6253_v8 = vpack.i.bf16 %v3682_v49, %v3606_v20  ;;  %v3842_v9 = vmul.f32 0.17677669, %v3760_v7  ;;  %v5593_v10 = vpop.f32.mrb[43].mxu1  ;;  %v5598_v60 = vpop.f32.mrb[43].mxu0  ;;  %v4065_v20 = vld [vmem:[#allocation5 + $0xf0] sm:$0xff] }
0x1963   :  { %v6035_v49 = vpack.c.bf16 %v4066_v5, %v4065_v20  ;;  %v4218_v20 = vld [vmem:[#allocation7 + $0x2b8] sm:$0xff]  ;;  %v4211_v5 = vld [vmem:[#allocation7 + $0x280] sm:$0xff] }
0x1964   :  { %v3844_v11 = vadd.f32 %v3842_v9, %v6802_v63 }
0x1965   :  { %v3838_v12 = vpop.f32.mrb[44].mxu1 }
0x1966   :  { %v3843_v13 = vmul.f32 0.17677669, %v3838_v12  ;;  %v5603_v21 = vpop.f32.mrb[45].mxu1  ;;  %v3846_v14 = vsel %vm585_vm2, %v3844_v11, -inf }
0x1967   :  { %3847 = vmax.xlane.f32.xlu1 %v3846_v14 }
0x1968   :  { %v3845_v16 = vadd.f32 %v3843_v13, %v6806_v6 }
0x196a   :  { %v3849_v18 = vsel %vm585_vm2, %v3845_v16, -inf }
0x196b   :  { %3850 = vmax.xlane.f32.xlu0 %v3849_v18 }
0x1978   :  { %3868 = vrot.lane.b32.xlu1 %v7046_v61, %s6530_s21 }
0x197c   :  { %6249 = vrot.lane.b32.xlu1 %v6248_v19, %s6530_s21 }
0x1980   :  { %6254 = vrot.lane.b32.xlu1 %v6253_v8, %s6536_s10 }
0x19f4   :  { %v3848_v63 = vpop.xlane.xlu1 %3847 }
0x19f5   :  { %v3852_v22 = vsub.f32 %v3844_v11, %v3848_v63 }
0x19f7   :  { %v3854_v23 = vmul.f32 1.442695, %v3852_v22 }
0x19f8   :  { %v3851_v50 = vpop.xlane.xlu0 %3850  ;;  %v3869_v25 = vpop.permute.xlu1 %3868 }
0x19f9   :  { %6347 = vpow2.f32 %v3854_v23  ;;  %v3853_v6 = vsub.f32 %v3845_v16, %v3851_v50  ;;  %5605 = vmatpush3.msra.mxu0 %v3869_v25 }
0x19fb   :  { %v3856_v26 = vmul.f32 1.442695, %v3853_v6 }
0x19fc   :  { %v6250_v11 = vpop.permute.xlu1 %6249 }
0x19fd   :  { %6349 = vpow2.f32 %v3856_v26  ;;  %v6252_v13 = vunpack.i.h.bf16 %v6250_v11  ;;  %v6251_v21 = vunpack.i.l.bf16 %v6250_v11 }
0x19ff   :  { %v4045_v63 = vsel %vm418_vm1, %v7088_v28, %v6252_v13  ;;  %v4044_v50 = vsel %vm418_vm1, %v7086_v31, %v6251_v21  ;;  %v5013_v28 = vld [vmem:[%s7349_s7 + $0x1] ss:$0 sm:$0xff] }
0x1a00   :  { %v6255_v12 = vpop.permute.xlu1 %6254 }
0x1a01   :  { %v6257_v14 = vunpack.i.h.bf16 %v6255_v12  ;;  %v6256_v16 = vunpack.i.l.bf16 %v6255_v12 }
0x1a03   :  { %v6348_v27 = vpop.eup %6347  ;;  %v4046_v25 = vsel %vm1784_vm3, %v4044_v50, %v6256_v16  ;;  %v4047_v6 = vsel %vm1784_vm3, %v4045_v63, %v6257_v14  ;;  %v4222_v50 = vld [vmem:[#allocation7 + $0x2d8] sm:$0xff] }
0x1a04   :  { %v3858_v61 = vsel %vm585_vm2, %v6348_v27, 0.0 }
0x1a05   :  { %3859 = vadd.xlane.f32.xlu0 %v3858_v61 }
0x1a07   :  { %v6350_v30 = vpop.eup %6349 }
0x1a08   :  { %v3861_v15 = vsel %vm585_vm2, %v6350_v30, 0.0 }
0x1a09   :  { %3862 = vadd.xlane.f32.xlu0 %v3861_v15 }
0x1a1f   :  { %3944 = vrot.lane.b32.xlu0 %v7033_v58, %s6530_s21  ;;  %v6007_v58 = vpack.c.bf16 %v4052_v24, %v4051_v54  ;;  %v4195_v54 = vld [vmem:[#allocation7 + $0x200] sm:$0xff] }
0x1a20   :  { %v4199_v24 = vld [vmem:[#allocation7 + $0x220] sm:$0xff] }
0x1a21   :  { %6008 = vmatprep.subr.bf16.mxu0 %v6007_v58 }
0x1a92   :  { %v3860_v17 = vpop.xlane.xlu0 %3859 }
0x1a93   :  { %6351 = vrcp.f32 %v3860_v17 }
0x1a96   :  { %v3863_v19 = vpop.xlane.xlu0 %3862 }
0x1a97   :  { %6353 = vrcp.f32 %v3863_v19 }
0x1a9a   :  { %v3945_v34 = vpop.permute.xlu0 %3944 }
0x1a9b   :  { %5610 = vmatpush3.msra.mxu1 %v3945_v34  ;;  %v4196_v34 = vld [vmem:[#allocation7 + $0x208] sm:$0xff] }
0x1a9d   :  { %v6352_v46 = vpop.eup %6351 }
0x1a9e   :  { %v3866_v35 = vmul.f32 %v6352_v46, %v6348_v27  ;;  %v4200_v46 = vld [vmem:[#allocation7 + $0x228] sm:$0xff] }
0x1aa0   :  { %5607 = vmatmul.mubr.msk.f32.vlgmr.msra.gmra.mrb[44].mxu0 %vm585_vm2, %v3866_v35  ;;  %v4198_v35 = vld [vmem:[#allocation7 + $0x218] sm:$0xff] }
0x1aa1   :  { %v6354_v38 = vpop.eup %6353  ;;  %6010 = vmatpush3.bf16.msra.mxu0 %v6007_v58  ;;  %v6041_v58 = vpack.c.bf16 %v4199_v24, %v4195_v54 }
0x1aa2   :  { %v3867_v42 = vmul.f32 %v6354_v38, %v6350_v30  ;;  %6012 = vmatprep.subr.bf16.mxu0 %v6011_v48  ;;  %v6039_v38 = vpack.c.bf16 %v4200_v46, %v4196_v34  ;;  %v4230_v34 = vld [vmem:[#allocation7 + $0x318] sm:$0xff] }
0x1aa4   :  { %5612 = vmatmul.mubr.msk.f32.vlgmr.msra.gmra.mrb[46].mxu1 %vm585_vm2, %v3867_v42  ;;  %v4202_v42 = vld [vmem:[#allocation7 + $0x238] sm:$0xff]  ;;  %6040 = vmatprep.subr.bf16.mxu1 %v6039_v38  ;;  %v4227_v38 = vld [vmem:[#allocation7 + $0x300] sm:$0xff] }
0x1aa5   :  { %4346 = vmatprep.mubr.f32.mxu1 %v6532_v4  ;;  %6014 = vmatpush3.bf16.msra.mxu0 %v6011_v48  ;;  %v6071_v29 = vpack.c.bf16 %v4202_v42, %v4198_v35  ;;  %v4201_v48 = vld [vmem:[#allocation7 + $0x230] sm:$0xff]  ;;  %v4234_v35 = vld [vmem:[#allocation7 + $0x338] sm:$0xff]  ;;  %v4231_v42 = vld [vmem:[#allocation7 + $0x320] sm:$0xff] }
0x1aa6   :  { %6016 = vmatprep.subr.bf16.mxu0 %v6015_v47  ;;  %v6073_v33 = vpack.c.bf16 %v4201_v48, %v4197_v44  ;;  %6042 = vmatpush1.bf16.msra.mxu1 %v6041_v58  ;;  %v6087_v54 = vpack.c.bf16 %v4234_v35, %v4230_v34  ;;  %v6057_v24 = vpack.c.bf16 %v4231_v42, %v4227_v38  ;;  %v4233_v58 = vld [vmem:[#allocation7 + $0x330] sm:$0xff]  ;;  %v4236_v48 = vld [vmem:[#allocation7 + $0x348] sm:$0xff]  ;;  %v5016_v38 = vld [vmem:[%s7350_s8 + $0x1] ss:$0 sm:$0xff] }
0x1aa7   :  { %v5017_v42 = vld [vmem:[%s7351_s9 + $0x1] ss:$0 sm:$0xff] }
0x1aa9   :  { %6018 = vmatpush3.bf16.msra.mxu0 %v6015_v47  ;;  %v4208_v47 = vld [vmem:[#allocation7 + $0x268] sm:$0xff] }
0x1aaa   :  { %6020 = vmatprep.subr.bf16.mxu0 %v6019_v56 }
0x1aad   :  { %6022 = vmatpush3.bf16.msra.mxu0 %v6019_v56  ;;  %v4203_v56 = vld [vmem:[#allocation7 + $0x240] sm:$0xff] }
0x1aae   :  { %6024 = vmatprep.subr.bf16.mxu0 %v6023_v55 }
0x1ab1   :  { %6026 = vmatpush3.bf16.msra.mxu0 %v6023_v55  ;;  %v6045_v55 = vpack.c.bf16 %v4207_v57, %v4203_v56  ;;  %v4237_v57 = vld [vmem:[#allocation7 + $0x350] sm:$0xff] }
0x1ab2   :  { %6028 = vmatprep.subr.bf16.mxu0 %v6027_v1  ;;  %v6093_v62 = vpack.c.bf16 %v4241_v36, %v4237_v57  ;;  %v4479_v36 = vld [vmem:[#allocation8 + $0x210] sm:$0xff] }
0x1ab5   :  { %6030 = vmatpush3.bf16.msra.mxu0 %v6027_v1  ;;  %v4216_v1 = vld [vmem:[#allocation7 + $0x2a8] sm:$0xff] }
0x1ab6   :  { %6032 = vmatprep.subr.bf16.mxu0 %v6031_v3  ;;  %v6047_v59 = vpack.c.bf16 %v4216_v1, %v4212_v0  ;;  %v4248_v0 = vld [vmem:[#allocation7 + $0x3a8] sm:$0xff]  ;;  %v4246_v1 = vld [vmem:[#allocation7 + $0x398] sm:$0xff] }
0x1ab9   :  { %6034 = vmatpush3.bf16.msra.mxu0 %v6031_v3  ;;  %v4214_v3 = vld [vmem:[#allocation7 + $0x298] sm:$0xff] }
0x1aba   :  { %6036 = vmatprep.subr.bf16.mxu0 %v6035_v49 }
0x1abd   :  { %6038 = vmatpush3.bf16.msra.mxu0 %v6035_v49  ;;  %v6079_v49 = vpack.c.bf16 %v4218_v20, %v4214_v3  ;;  %v4243_v20 = vld [vmem:[#allocation7 + $0x380] sm:$0xff] }
0x1abe   :  { %6072 = vmatprep.subr.bf16.mxu0 %v6071_v29  ;;  %v4229_v29 = vld [vmem:[#allocation7 + $0x310] sm:$0xff] }
0x1abf   :  { %v6089_v44 = vpack.c.bf16 %v4233_v58, %v4229_v29  ;;  %v4478_v29 = vld [vmem:[#allocation8 + $0x208] sm:$0xff]  ;;  %v4509_v58 = vld [vmem:[#allocation8 + $0x300] sm:$0xff] }
0x1b73   :  { %v3940_v7 = vpop.f32.mrb[44].mxu0 }
0x1b74   :  { %v5608_v8 = vpop.f32.mrb[45].mxu0 }
0x1b75   :  { %v4213_v8 = vld [vmem:[#allocation7 + $0x290] sm:$0xff] }
0x1b77   :  { %v4016_v9 = vpop.f32.mrb[46].mxu1 }
0x1b78   :  { %v6258_v10 = vpack.i.bf16 %v4016_v9, %v3940_v7  ;;  %v5613_v60 = vpop.f32.mrb[47].mxu1  ;;  %v4215_v7 = vld [vmem:[#allocation7 + $0x2a0] sm:$0xff]  ;;  %v4217_v9 = vld [vmem:[#allocation7 + $0x2b0] sm:$0xff] }
0x1b79   :  { %v6081_v60 = vpack.c.bf16 %v4217_v9, %v4213_v8  ;;  %v4249_v8 = vld [vmem:[#allocation7 + $0x3b0] sm:$0xff]  ;;  %v4252_v9 = vld [vmem:[#allocation7 + $0x3c8] sm:$0xff] }
0x1b7a   :  { %6259 = vrot.lane.b32.xlu1 %v6258_v10, %s6535_s26  ;;  %v6049_v10 = vpack.c.bf16 %v4215_v7, %v4211_v5  ;;  %v4247_v5 = vld [vmem:[#allocation7 + $0x3a0] sm:$0xff] }
0x1b7b   :  { %v6065_v7 = vpack.c.bf16 %v4247_v5, %v4243_v20  ;;  %v4529_v20 = vld [vmem:[#allocation8 + $0x3a0] sm:$0xff]  ;;  %v4530_v5 = vld [vmem:[#allocation8 + $0x3a8] sm:$0xff] }
0x1bec   :  { %v6260_v18 = vpop.permute.xlu1 %6259 }
0x1bed   :  { %v6262_v22 = vunpack.i.h.bf16 %v6260_v18  ;;  %v6261_v23 = vunpack.i.l.bf16 %v6260_v18 }
0x1bef   :  { %v4048_v26 = vsel %vm1787_vm4, %v4046_v25, %v6261_v23  ;;  %v4049_v27 = vsel %vm1787_vm4, %v4047_v6, %v6262_v22  ;;  %v4220_v22 = vld [vmem:[#allocation7 + $0x2c8] sm:$0xff]  ;;  %v4226_v6 = vld [vmem:[#allocation7 + $0x2f8] sm:$0xff] }
0x1bf0   :  { %5646 = vmatprep.mubr.f32.mxu0 %v4048_v26  ;;  %v4224_v23 = vld [vmem:[#allocation7 + $0x2e8] sm:$0xff]  ;;  %v4219_v26 = vld [vmem:[#allocation7 + $0x2c0] sm:$0xff] }
0x1bf1   :  { %5647 = vmatmul.mubr.f32.vlgmr.msra.gmra.mrb[46].mxu0 %v4049_v27  ;;  %v6051_v25 = vpack.c.bf16 %v4224_v23, %v4220_v22  ;;  %v4223_v27 = vld [vmem:[#allocation7 + $0x2e0] sm:$0xff]  ;;  %v4253_v22 = vld [vmem:[#allocation7 + $0x3d0] sm:$0xff] }
0x1bf2   :  { %4423 = vmatprep.mubr.f32.mxu0 %v6532_v4  ;;  %6074 = vmatpush1.bf16.msra.mxu0 %v6073_v33  ;;  %v4238_v33 = vld [vmem:[#allocation7 + $0x358] sm:$0xff]  ;;  %v4257_v23 = vld [vmem:[#allocation7 + $0x3f0] sm:$0xff] }
0x1cc4   :  { %v5648_v61 = vpop.f32.mrb[46].mxu0 }
0x1cc5   :  { %v4147_v30 = vadd.f32 %v5648_v61, %v5013_v28  ;;  %v4141_v15 = vpop.f32.mrb[47].mxu0  ;;  %v6053_v61 = vpack.c.bf16 %v4223_v27, %v4219_v26  ;;  %v4494_v26 = vld [vmem:[#allocation8 + $0x288] sm:$0xff]  ;;  %v4525_v27 = vld [vmem:[#allocation8 + $0x380] sm:$0xff] }
0x1cc6   :  { %v4142_v31 = vadd.f32 %v5013_v28, %v4141_v15  ;;  %v6083_v28 = vpack.c.bf16 %v4226_v6, %v4222_v50  ;;  %v4225_v15 = vld [vmem:[#allocation7 + $0x2f0] sm:$0xff]  ;;  %v4493_v6 = vld [vmem:[#allocation8 + $0x280] sm:$0xff] }
0x1cc7   :  { %v4151_v17 = vadd.f32 %v4147_v30, %v7012_v43  ;;  %v4206_v43 = vld [vmem:[#allocation7 + $0x258] sm:$0xff]  ;;  %v4221_v30 = vld [vmem:[#allocation7 + $0x2d0] sm:$0xff] }
0x1cc8   :  { %v4150_v19 = vadd.f32 %v4142_v31, %v7006_v53  ;;  %v6043_v53 = vpack.c.bf16 %v4208_v47, %v4204_v45  ;;  %v6075_v51 = vpack.c.bf16 %v4210_v52, %v4206_v43  ;;  %v6085_v31 = vpack.c.bf16 %v4225_v15, %v4221_v30  ;;  %v4240_v45 = vld [vmem:[#allocation7 + $0x368] sm:$0xff]  ;;  %v4242_v43 = vld [vmem:[#allocation7 + $0x378] sm:$0xff]  ;;  %v4235_v52 = vld [vmem:[#allocation7 + $0x340] sm:$0xff] }
0x1cc9   :  { %4158 = vadd.xlane.f32.xlu1 %v4151_v17  ;;  %v6059_v47 = vpack.c.bf16 %v4240_v45, %v4236_v48  ;;  %v4495_v48 = vld [vmem:[#allocation8 + $0x290] sm:$0xff] }
0x1cca   :  { %4156 = vadd.xlane.f32.xlu0 %v4150_v19  ;;  %6044 = vmatprep.subr.bf16.mxu1 %v6043_v53  ;;  %v4239_v53 = vld [vmem:[#allocation7 + $0x360] sm:$0xff] }
0x1ccb   :  { %6076 = vmatprep.subr.bf16.mxu0 %v6075_v51  ;;  %6046 = vmatpush1.bf16.msra.mxu1 %v6045_v55  ;;  %v6091_v51 = vpack.c.bf16 %v4242_v43, %v4238_v33  ;;  %v6061_v56 = vpack.c.bf16 %v4239_v53, %v4235_v52  ;;  %v4244_v55 = vld [vmem:[#allocation7 + $0x388] sm:$0xff]  ;;  %v4496_v33 = vld [vmem:[#allocation8 + $0x298] sm:$0xff] }
0x1ccc   :  { %6078 = vmatpush1.bf16.msra.mxu0 %v6077_v2  ;;  %6048 = vmatprep.subr.bf16.mxu1 %v6047_v59  ;;  %v4250_v2 = vld [vmem:[#allocation7 + $0x3b8] sm:$0xff]  ;;  %v6063_v59 = vpack.c.bf16 %v4248_v0, %v4244_v55  ;;  %v4511_v0 = vld [vmem:[#allocation8 + $0x310] sm:$0xff] }
0x1ccd   :  { %6080 = vmatprep.subr.bf16.mxu0 %v6079_v49  ;;  %v6095_v3 = vpack.c.bf16 %v4250_v2, %v4246_v1  ;;  %v4245_v49 = vld [vmem:[#allocation7 + $0x390] sm:$0xff]  ;;  %v4528_v43 = vld [vmem:[#allocation8 + $0x398] sm:$0xff]  ;;  %v4497_v2 = vld [vmem:[#allocation8 + $0x2a0] sm:$0xff] }
0x1cce   :  { %v4480_v55 = vld [vmem:[#allocation8 + $0x218] sm:$0xff] }
0x1ccf   :  { %6050 = vmatpush1.bf16.msra.mxu1 %v6049_v10  ;;  %v4256_v10 = vld [vmem:[#allocation7 + $0x3e8] sm:$0xff]  ;;  %v4512_v1 = vld [vmem:[#allocation8 + $0x318] sm:$0xff] }
0x1cd0   :  { %6082 = vmatpush1.bf16.msra.mxu0 %v6081_v60  ;;  %6052 = vmatprep.subr.bf16.mxu1 %v6051_v25  ;;  %v6097_v60 = vpack.c.bf16 %v4249_v8, %v4245_v49  ;;  %v6101_v25 = vpack.c.bf16 %v4257_v23, %v4253_v22  ;;  %v6109_v49 = vpack.c.bf16 %v4480_v55, %v4479_v36  ;;  %v4481_v8 = vld [vmem:[#allocation8 + $0x220] sm:$0xff]  ;;  %v4531_v22 = vld [vmem:[#allocation8 + $0x3b0] sm:$0xff] }
0x1cd1   :  { %6084 = vmatprep.subr.bf16.mxu0 %v6083_v28  ;;  %v6103_v28 = vpack.c.bf16 %v4494_v26, %v4493_v6  ;;  %v4484_v6 = vld [vmem:[#allocation8 + $0x238] sm:$0xff]  ;;  %v4505_v55 = vld [vmem:[#allocation8 + $0x2e0] sm:$0xff] }
0x1cd3   :  { %6054 = vmatpush1.bf16.msra.mxu1 %v6053_v61  ;;  %v4526_v61 = vld [vmem:[#allocation8 + $0x388] sm:$0xff] }
0x1cd4   :  { %6086 = vmatpush1.bf16.msra.mxu0 %v6085_v31  ;;  %v6135_v30 = vpack.c.bf16 %v4526_v61, %v4525_v27  ;;  %v4516_v61 = vld [vmem:[#allocation8 + $0x338] sm:$0xff] }
0x1cd5   :  { %6088 = vmatprep.subr.bf16.mxu0 %v6087_v54 }
0x1cd8   :  { %6090 = vmatpush1.bf16.msra.mxu0 %v6089_v44  ;;  %v4510_v44 = vld [vmem:[#allocation8 + $0x308] sm:$0xff] }
0x1cd9   :  { %6092 = vmatprep.subr.bf16.mxu0 %v6091_v51  ;;  %v6137_v57 = vpack.c.bf16 %v4510_v44, %v4509_v58  ;;  %v4503_v58 = vld [vmem:[#allocation8 + $0x2d0] sm:$0xff]  ;;  %v4504_v44 = vld [vmem:[#allocation8 + $0x2d8] sm:$0xff] }
0x1cdc   :  { %6094 = vmatpush1.bf16.msra.mxu0 %v6093_v62  ;;  %v6107_v62 = vpack.c.bf16 %v4496_v33, %v4495_v48  ;;  %v4535_v48 = vld [vmem:[#allocation8 + $0x3d0] sm:$0xff]  ;;  %v4536_v33 = vld [vmem:[#allocation8 + $0x3d8] sm:$0xff] }
0x1cdd   :  { %6096 = vmatprep.subr.bf16.mxu0 %v6095_v3  ;;  %v4498_v3 = vld [vmem:[#allocation8 + $0x2a8] sm:$0xff] }
0x1ce0   :  { %6098 = vmatpush1.bf16.msra.mxu0 %v6097_v60  ;;  %v4482_v60 = vld [vmem:[#allocation8 + $0x228] sm:$0xff] }
0x1d56   :  { %v4159_v11 = vpop.xlane.xlu1 %4158 }
0x1d57   :  { %v4157_v12 = vpop.xlane.xlu0 %4156  ;;  %v4161_v13 = vmul.f32 0.0078125, %v4159_v11  ;;  %v6067_v11 = vpack.c.bf16 %v4256_v10, %v4252_v9  ;;  %v6111_v9 = vpack.c.bf16 %v4498_v3, %v4497_v2  ;;  %v6143_v10 = vpack.c.bf16 %v4530_v5, %v4529_v20  ;;  %v4489_v2 = vld [vmem:[#allocation8 + $0x260] sm:$0xff] }
0x1d58   :  { %v4160_v21 = vmul.f32 0.0078125, %v4157_v12  ;;  %v4254_v12 = vld [vmem:[#allocation7 + $0x3d8] sm:$0xff]  ;;  %v4521_v5 = vld [vmem:[#allocation8 + $0x360] sm:$0xff] }
0x1d59   :  { %v7203_v16 = vsub.f32 %v4151_v17, %v4161_v13  ;;  %v4228_v17 = vld [vmem:[#allocation7 + $0x308] sm:$0xff]  ;;  %v4258_v13 = vld [vmem:[#allocation7 + $0x3f8] sm:$0xff] }
0x1d5a   :  { %v7201_v14 = vsub.f32 %v4150_v19, %v4160_v21  ;;  %v4232_v19 = vld [vmem:[#allocation7 + $0x328] sm:$0xff]  ;;  %v4251_v21 = vld [vmem:[#allocation7 + $0x3c0] sm:$0xff] }
0x1d5b   :  { %v4165_v63 = vmul.f32 %v7203_v16, %v7203_v16  ;;  %v6055_v46 = vpack.c.bf16 %v4232_v19, %v4228_v17 }
0x1d5c   :  { %v4164_v18 = vmul.f32 %v7201_v14, %v7201_v14 }
0x1d5d   :  { %6056 = vmatprep.subr.bf16.mxu1 %v6055_v46 }
0x1d5e   :  { %4166 = vadd.xlane.f32.xlu0 %v4164_v18  ;;  %6058 = vmatpush1.bf16.msra.mxu1 %v6057_v24  ;;  %v6099_v18 = vpack.c.bf16 %v4258_v13, %v4254_v12  ;;  %v4477_v24 = vld [vmem:[#allocation8 + $0x200] sm:$0xff]  ;;  %v4514_v12 = vld [vmem:[#allocation8 + $0x328] sm:$0xff]  ;;  %v6113_v13 = vpack.c.bf16 %v4482_v60, %v4481_v8  ;;  %v4507_v8 = vld [vmem:[#allocation8 + $0x2f0] sm:$0xff] }
0x1d5f   :  { %6060 = vmatprep.subr.bf16.mxu1 %v6059_v47  ;;  %v4527_v47 = vld [vmem:[#allocation8 + $0x390] sm:$0xff] }
0x1d60   :  { %6100 = vmatprep.subr.bf16.mxu0 %v6099_v18  ;;  %v4499_v18 = vld [vmem:[#allocation8 + $0x2b0] sm:$0xff] }
0x1d61   :  { %6102 = vmatpush1.bf16.msra.mxu0 %v6101_v25  ;;  %v4483_v25 = vld [vmem:[#allocation8 + $0x230] sm:$0xff] }
0x1d62   :  { %4168 = vadd.xlane.f32.xlu0 %v4165_v63  ;;  %6062 = vmatpush1.bf16.msra.mxu1 %v6061_v56  ;;  %v4255_v63 = vld [vmem:[#allocation7 + $0x3e0] sm:$0xff]  ;;  %v6105_v56 = vpack.c.bf16 %v4478_v29, %v4477_v24  ;;  %v6117_v27 = vpack.c.bf16 %v4484_v6, %v4483_v25  ;;  %v4518_v24 = vld [vmem:[#allocation8 + $0x348] sm:$0xff] }
0x1d63   :  { %6064 = vmatprep.subr.bf16.mxu1 %v6063_v59  ;;  %v6069_v50 = vpack.c.bf16 %v4255_v63, %v4251_v21  ;;  %6136 = vmatprep.subr.bf16.mxu0 %v6135_v30  ;;  %v4500_v63 = vld [vmem:[#allocation8 + $0x2b8] sm:$0xff] }
0x1d64   :  { %v6115_v23 = vpack.c.bf16 %v4500_v63, %v4499_v18  ;;  %v4523_v63 = vld [vmem:[#allocation8 + $0x370] sm:$0xff] }
0x1d66   :  { %6066 = vmatpush1.bf16.msra.mxu1 %v6065_v7  ;;  %v6141_v7 = vpack.c.bf16 %v4512_v1, %v4511_v0  ;;  %v4538_v1 = vld [vmem:[#allocation8 + $0x3e8] sm:$0xff] }
0x1d67   :  { %6068 = vmatprep.subr.bf16.mxu1 %v6067_v11  ;;  %v4513_v11 = vld [vmem:[#allocation8 + $0x320] sm:$0xff] }
0x1d68   :  { %v6145_v21 = vpack.c.bf16 %v4514_v12, %v4513_v11  ;;  %v4540_v11 = vld [vmem:[#allocation8 + $0x3f8] sm:$0xff]  ;;  %v4491_v12 = vld [vmem:[#allocation8 + $0x270] sm:$0xff] }
0x1d6a   :  { %6070 = vmatpush1.bf16.msra.mxu1 %v6069_v50  ;;  %v4532_v50 = vld [vmem:[#allocation8 + $0x3b8] sm:$0xff] }
0x1d6b   :  { %6104 = vmatprep.subr.bf16.mxu1 %v6103_v28  ;;  %v6147_v26 = vpack.c.bf16 %v4532_v50, %v4531_v22  ;;  %v4515_v28 = vld [vmem:[#allocation8 + $0x330] sm:$0xff]  ;;  %v4524_v22 = vld [vmem:[#allocation8 + $0x378] sm:$0xff]  ;;  %v5018_v50 = vld [vmem:[%s7353_s11 + $0x4] sm:$0xf] }
0x1d6c   :  { %v6149_v30 = vpack.c.bf16 %v4516_v61, %v4515_v28  ;;  %v4265_v25 = vrot.slane %v5018_v50, %v6761_v39  ;;  %v4273_v6 = vrot.slane %v5018_v50, %v6764_v40 }
0x1deb   :  { %v4167_v15 = vpop.xlane.xlu0 %4166 }
0x1dec   :  { %v4170_v31 = vmul.f32 0.0078125, %v4167_v15  ;;  %v4501_v15 = vld [vmem:[#allocation8 + $0x2c0] sm:$0xff] }
0x1dee   :  { %v4172_v17 = vadd.f32 1e-12, %v4170_v31  ;;  %v4502_v31 = vld [vmem:[#allocation8 + $0x2c8] sm:$0xff] }
0x1def   :  { %v4169_v19 = vpop.xlane.xlu0 %4168 }
0x1df0   :  { %6355 = vrsqrt.f32 %v4172_v17  ;;  %v4171_v34 = vmul.f32 0.0078125, %v4169_v19  ;;  %v4533_v17 = vld [vmem:[#allocation8 + $0x3c0] sm:$0xff]  ;;  %v6119_v19 = vpack.c.bf16 %v4502_v31, %v4501_v15 }
0x1df2   :  { %v4173_v46 = vadd.f32 1e-12, %v4171_v34  ;;  %v4534_v34 = vld [vmem:[#allocation8 + $0x3c8] sm:$0xff] }
0x1df4   :  { %6357 = vrsqrt.f32 %v4173_v46  ;;  %v4485_v46 = vld [vmem:[#allocation8 + $0x240] sm:$0xff] }
0x1dfa   :  { %v6356_v35 = vpop.eup %6355 }
0x1dfb   :  { %v4176_v54 = vmul.f32 %v6356_v35, %v7201_v14  ;;  %v6139_v14 = vpack.c.bf16 %v4528_v43, %v4527_v47  ;;  %v4486_v35 = vld [vmem:[#allocation8 + $0x248] sm:$0xff]  ;;  %v4487_v47 = vld [vmem:[#allocation8 + $0x250] sm:$0xff]  ;;  %v4488_v43 = vld [vmem:[#allocation8 + $0x258] sm:$0xff] }
0x1dfd   :  { %v4184_v45 = vmul.f32 %v5016_v38, %v4176_v54  ;;  %v4517_v54 = vld [vmem:[#allocation8 + $0x340] sm:$0xff] }
0x1dfe   :  { %v6358_v52 = vpop.eup %6357  ;;  %v6153_v29 = vpack.c.bf16 %v4518_v24, %v4517_v54 }
0x1dff   :  { %v7216_v53 = vadd.f32 %v5017_v42, %v4184_v45  ;;  %v4177_v51 = vmul.f32 %v6358_v52, %v7203_v16  ;;  %v6123_v45 = vpack.c.bf16 %v4504_v44, %v4503_v58  ;;  %v6155_v52 = vpack.c.bf16 %v4536_v33, %v4535_v48 }
0x1e01   :  { %4347 = vmatmul.mubr.f32.vlgmr.msra.gmra.mrb[48].mxu1 %v7216_v53  ;;  %4424 = vmatmul.mubr.f32.vlgmr.msra.gmra.mrb[48].mxu0 %v7216_v53  ;;  %v4185_v59 = vmul.f32 %v5016_v38, %v4177_v51  ;;  %v6151_v38 = vpack.c.bf16 %v4534_v34, %v4533_v17  ;;  %v6125_v51 = vpack.c.bf16 %v4488_v43, %v4487_v47 }
0x1e02   :  { %4352 = vmatprep.mubr.f32.mxu1 %v6532_v4  ;;  %4429 = vmatprep.mubr.f32.mxu0 %v6532_v4 }
0x1e03   :  { %v7223_v16 = vadd.f32 %v5017_v42, %v4185_v59  ;;  %6106 = vmatpush3.bf16.msra.mxu1 %v6105_v56  ;;  %6138 = vmatpush3.bf16.msra.mxu0 %v6137_v57  ;;  %v6121_v42 = vpack.c.bf16 %v4486_v35, %v4485_v46  ;;  %v4519_v56 = vld [vmem:[#allocation8 + $0x350] sm:$0xff]  ;;  %v4520_v57 = vld [vmem:[#allocation8 + $0x358] sm:$0xff]  ;;  %v4490_v59 = vld [vmem:[#allocation8 + $0x268] sm:$0xff] }
0x1e04   :  { %6108 = vmatprep.subr.bf16.mxu1 %v6107_v62  ;;  %6140 = vmatprep.subr.bf16.mxu0 %v6139_v14  ;;  %v6157_v36 = vpack.c.bf16 %v4520_v57, %v4519_v56  ;;  %v4506_v62 = vld [vmem:[#allocation8 + $0x2e8] sm:$0xff]  ;;  %v4537_v14 = vld [vmem:[#allocation8 + $0x3e0] sm:$0xff]  ;;  %v6129_v20 = vpack.c.bf16 %v4490_v59, %v4489_v2 }
0x1e05   :  { %4353 = vmatmul.mubr.f32.gmra.mrb[50].mxu1 %v7223_v16  ;;  %4430 = vmatmul.mubr.f32.gmra.mrb[50].mxu0 %v7223_v16  ;;  %v6127_v0 = vpack.c.bf16 %v4506_v62, %v4505_v55  ;;  %v6159_v3 = vpack.c.bf16 %v4538_v1, %v4537_v14 }
0x1e07   :  { %6110 = vmatpush3.bf16.msra.mxu1 %v6109_v49  ;;  %6142 = vmatpush3.bf16.msra.mxu0 %v6141_v7  ;;  %v4522_v49 = vld [vmem:[#allocation8 + $0x368] sm:$0xff] }
0x1e08   :  { %6112 = vmatprep.subr.bf16.mxu1 %v6111_v9  ;;  %6144 = vmatprep.subr.bf16.mxu0 %v6143_v10  ;;  %v6161_v7 = vpack.c.bf16 %v4522_v49, %v4521_v5  ;;  %v4508_v9 = vld [vmem:[#allocation8 + $0x2f8] sm:$0xff]  ;;  %v4539_v10 = vld [vmem:[#allocation8 + $0x3f0] sm:$0xff] }
0x1e09   :  { %v6131_v60 = vpack.c.bf16 %v4508_v9, %v4507_v8 }
0x1e0b   :  { %6114 = vmatpush3.bf16.msra.mxu1 %v6113_v13  ;;  %6146 = vmatpush3.bf16.msra.mxu0 %v6145_v21  ;;  %v4492_v13 = vld [vmem:[#allocation8 + $0x278] sm:$0xff]  ;;  %v6163_v21 = vpack.c.bf16 %v4540_v11, %v4539_v10 }
0x1e0c   :  { %6116 = vmatprep.subr.bf16.mxu1 %v6115_v23  ;;  %6148 = vmatprep.subr.bf16.mxu0 %v6147_v26  ;;  %v6133_v18 = vpack.c.bf16 %v4492_v13, %v4491_v12  ;;  %v6165_v23 = vpack.c.bf16 %v4524_v22, %v4523_v63  ;;  %v4269_v26 = vrot.slane %v5018_v50, %v6755_v37 }
0x1e0f   :  { %6118 = vmatpush3.bf16.msra.mxu1 %v6117_v27  ;;  %6150 = vmatpush3.bf16.msra.mxu0 %v6149_v30  ;;  %v4277_v27 = vrot.slane %v5018_v50, %v2010_v41 }
0x1e10   :  { %6120 = vmatprep.subr.bf16.mxu1 %v6119_v19  ;;  %6152 = vmatprep.subr.bf16.mxu0 %v6151_v38 }
0x1e13   :  { %6122 = vmatpush3.bf16.msra.mxu1 %v6121_v42  ;;  %6154 = vmatpush3.bf16.msra.mxu0 %v6153_v29 }
0x1e14   :  { %6124 = vmatprep.subr.bf16.mxu1 %v6123_v45  ;;  %6156 = vmatprep.subr.bf16.mxu0 %v6155_v52 }
0x1e17   :  { %6126 = vmatpush3.bf16.msra.mxu1 %v6125_v51  ;;  %6158 = vmatpush3.bf16.msra.mxu0 %v6157_v36 }
0x1e18   :  { %6128 = vmatprep.subr.bf16.mxu1 %v6127_v0  ;;  %6160 = vmatprep.subr.bf16.mxu0 %v6159_v3 }
0x1e1b   :  { %6130 = vmatpush3.bf16.msra.mxu1 %v6129_v20  ;;  %6162 = vmatpush3.bf16.msra.mxu0 %v6161_v7 }
0x1e1c   :  { %6132 = vmatprep.subr.bf16.mxu1 %v6131_v60  ;;  %6164 = vmatprep.subr.bf16.mxu0 %v6163_v21 }
0x1e1f   :  { %6134 = vmatpush3.bf16.msra.mxu1 %v6133_v18  ;;  %6166 = vmatpush3.bf16.msra.mxu0 %v6165_v23 }
0x1ed4   :  { %v4348_v28 = vpop.f32.mrb[48].mxu1  ;;  %v4425_v61 = vpop.f32.mrb[48].mxu0 }
0x1ed5   :  { %v4349_v30 = vadd.f32 %v4348_v28, %v4265_v25  ;;  %v4426_v15 = vadd.f32 %v4425_v61, %v4273_v6  ;;  %v4350_v31 = vpop.f32.mrb[49].mxu1  ;;  %v4427_v17 = vpop.f32.mrb[49].mxu0 }
0x1ed6   :  { %v4351_v19 = vadd.f32 %v4350_v31, %v4269_v26  ;;  %v4428_v34 = vadd.f32 %v4427_v17, %v4277_v27 }
0x1ed7   :  { %v4444_v46 = vmul.f32 0.70710677, %v4349_v30  ;;  %v4446_v35 = vmul.f32 0.70710677, %v4426_v15  ;;  %v4436_v55 = vmul.f32 0.5, %v4349_v30  ;;  %v4438_v1 = vmul.f32 0.5, %v4426_v15 }
0x1ed8   :  { %v4445_v38 = vmul.f32 0.70710677, %v4351_v19  ;;  %v4447_v42 = vmul.f32 0.70710677, %v4428_v34  ;;  %v4354_v39 = vpop.f32.mrb[50].mxu1  ;;  %v4431_v40 = vpop.f32.mrb[50].mxu0 }
0x1ed9   :  { %6359 = verf.f32 %v4444_v46  ;;  %v4355_v37 = vadd.f32 %v4354_v39, %v4265_v25  ;;  %v4432_v54 = vadd.f32 %v4431_v40, %v4273_v6  ;;  %v4356_v32 = vpop.f32.mrb[51].mxu1  ;;  %v4433_v41 = vpop.f32.mrb[51].mxu0  ;;  %v4437_v57 = vmul.f32 0.5, %v4351_v19  ;;  %v5020_v6 = vld [vmem:[%s7355_s13 + $0x1] ss:$0 sm:$0xff] }
0x1eda   :  { %6361 = verf.f32 %v4446_v35  ;;  %v4357_v24 = vadd.f32 %v4356_v32, %v4269_v26  ;;  %v4434_v29 = vadd.f32 %v4433_v41, %v4277_v27  ;;  %v4439_v62 = vmul.f32 0.5, %v4428_v34  ;;  %v4743_v40 = vld [vmem:[%s7358_s16] sm:$0xff] }
0x1edb   :  { %6363 = verf.f32 %v4445_v38  ;;  %v4448_v58 = vmul.f32 0.70710677, %v4355_v37  ;;  %v4450_v44 = vmul.f32 0.70710677, %v4432_v54  ;;  %v4440_v11 = vmul.f32 0.5, %v4355_v37  ;;  %v4744_v37 = vld [vmem:[%s7358_s16 + $0x8] sm:$0xff] }
0x1edc   :  { %6365 = verf.f32 %v4447_v42  ;;  %v4449_v48 = vmul.f32 0.70710677, %v4357_v24  ;;  %v4451_v45 = vmul.f32 0.70710677, %v4434_v29  ;;  %v4441_v10 = vmul.f32 0.5, %v4357_v24 }
0x1edd   :  { %6367 = verf.f32 %v4448_v58  ;;  %v4443_v12 = vmul.f32 0.5, %v4434_v29  ;;  %v4442_v21 = vmul.f32 0.5, %v4432_v54  ;;  %v6537_v54 = vmov 0.0|0.0  }
0x1ede   :  { %6369 = verf.f32 %v4450_v44  ;;  %6167 = vmatprep.subr.bf16.mxu1 %v6537_v54  ;;  %v6168_v32 = vpack.c.bf16 %v4744_v37, %v4743_v40  ;;  %6191 = vmatprep.subr.bf16.mxu0 %v6537_v54 }
0x1edf   :  { %6371 = verf.f32 %v4449_v48 }
0x1ee0   :  { %6373 = verf.f32 %v4451_v45  ;;  %v4745_v45 = vld [vmem:[%s7358_s16 + $0x10] sm:$0xff] }
0x1ee3   :  { %v6360_v33 = vpop.eup %6359 }
0x1ee4   :  { %v6362_v47 = vpop.eup %6361  ;;  %v4460_v52 = vadd.f32 1.0, %v6360_v33  ;;  %v4746_v33 = vld [vmem:[%s7358_s16 + $0x18] sm:$0xff] }
0x1ee5   :  { %v6364_v43 = vpop.eup %6363  ;;  %v4462_v56 = vadd.f32 1.0, %v6362_v47  ;;  %v6171_v47 = vpack.c.bf16 %v4746_v33, %v4745_v45  ;;  %v5025_v45 = vld [vmem:[%s7359_s17] ss:$0 sm:$0xff] }
0x1ee6   :  { %v6366_v51 = vpop.eup %6365  ;;  %v4461_v36 = vadd.f32 1.0, %v6364_v43  ;;  %v4468_v3 = vmul.f32 %v4460_v52, %v4436_v55  ;;  %v4747_v43 = vld [vmem:[%s7358_s16 + $0x20] sm:$0xff]  ;;  %v4748_v52 = vld [vmem:[%s7358_s16 + $0x28] sm:$0xff] }
0x1ee7   :  { %v4463_v14 = vadd.f32 1.0, %v6366_v51  ;;  %v6368_v0 = vpop.eup %6367  ;;  %v4470_v49 = vmul.f32 %v4462_v56, %v4438_v1  ;;  %v6174_v51 = vpack.c.bf16 %v4748_v52, %v4747_v43  ;;  %v4749_v56 = vld [vmem:[%s7358_s16 + $0x30] sm:$0xff]  ;;  %v4751_v55 = vld [vmem:[%s7358_s16 + $0x40] sm:$0xff]  ;;  %v4754_v1 = vld [vmem:[%s7358_s16 + $0x58] sm:$0xff] }
0x1ee8   :  { %v4469_v2 = vmul.f32 %v4461_v36, %v4437_v57  ;;  %v6370_v59 = vpop.eup %6369  ;;  %v4464_v7 = vadd.f32 1.0, %v6368_v0  ;;  %v4750_v57 = vld [vmem:[%s7358_s16 + $0x38] sm:$0xff]  ;;  %v4753_v0 = vld [vmem:[%s7358_s16 + $0x50] sm:$0xff] }
0x1ee9   :  { %v4471_v20 = vmul.f32 %v4463_v14, %v4439_v62  ;;  %v6372_v5 = vpop.eup %6371  ;;  %v4466_v9 = vadd.f32 1.0, %v6370_v59  ;;  %v6177_v36 = vpack.c.bf16 %v4750_v57, %v4749_v56  ;;  %v4752_v62 = vld [vmem:[%s7358_s16 + $0x48] sm:$0xff]  ;;  %v4755_v59 = vld [vmem:[%s7358_s16 + $0x60] sm:$0xff] }
0x1eea   :  { %4613 = vmatprep.mubr.f32.mxu1 %v4469_v2  ;;  %v6374_v8 = vpop.eup %6373  ;;  %v4465_v60 = vadd.f32 1.0, %v6372_v5  ;;  %v4472_v22 = vmul.f32 %v4464_v7, %v4440_v11  ;;  %v6180_v14 = vpack.c.bf16 %v4752_v62, %v4751_v55  ;;  %v6183_v2 = vpack.c.bf16 %v4754_v1, %v4753_v0  ;;  %v4846_v11 = vld [vmem:[#allocation10 + $0x18] sm:$0xff] }
0x1eeb   :  { %4688 = vmatprep.mubr.f32.mxu0 %v4471_v20  ;;  %4614 = vmatmul.mubr.f32.vlgmr.msra.gmra.mrb[52].mxu1 %v4468_v3  ;;  %v4467_v13 = vadd.f32 1.0, %v6374_v8  ;;  %v4474_v23 = vmul.f32 %v4466_v9, %v4442_v21  ;;  %v4756_v3 = vld [vmem:[%s7358_s16 + $0x68] sm:$0xff]  ;;  %v4757_v20 = vld [vmem:[%s7358_s16 + $0x70] sm:$0xff]  ;;  %v4843_v8 = vld [vmem:[#allocation10] sm:$0xff] }
0x1eec   :  { %4689 = vmatmul.mubr.f32.vlgmr.msra.gmra.mrb[52].mxu0 %v4470_v49  ;;  %v4473_v18 = vmul.f32 %v4465_v60, %v4441_v10  ;;  %6169 = vmatpush3.bf16.msra.mxu1 %v6168_v32  ;;  %v6186_v5 = vpack.c.bf16 %v4756_v3, %v4755_v59  ;;  %v4758_v49 = vld [vmem:[%s7358_s16 + $0x78] sm:$0xff]  ;;  %v4844_v9 = vld [vmem:[#allocation10 + $0x8] sm:$0xff]  ;;  %v4845_v10 = vld [vmem:[#allocation10 + $0x10] sm:$0xff] }
0x1eed   :  { %v4475_v63 = vmul.f32 %v4467_v13, %v4443_v12  ;;  %6170 = vmatprep.subr.bf16.mxu1 %v6537_v54  ;;  %v6189_v7 = vpack.c.bf16 %v4758_v49, %v4757_v20  ;;  %v6192_v60 = vpack.c.bf16 %v4844_v9, %v4843_v8  ;;  %v6195_v12 = vpack.c.bf16 %v4846_v11, %v4845_v10  ;;  %v4847_v13 = vld [vmem:[#allocation10 + $0x20] sm:$0xff]  ;;  %v4848_v21 = vld [vmem:[#allocation10 + $0x28] sm:$0xff]  ;;  %v4853_v32 = vld [vmem:[#allocation10 + $0x50] sm:$0xff] }
0x1eee   :  { %4618 = vmatprep.mubr.f32.mxu1 %v4473_v18  ;;  %v6198_v18 = vpack.c.bf16 %v4848_v21, %v4847_v13 }
0x1eef   :  { %4693 = vmatprep.mubr.f32.mxu0 %v4475_v63  ;;  %4619 = vmatmul.mubr.f32.gmra.mrb[54].mxu1 %v4472_v22  ;;  %v4849_v63 = vld [vmem:[#allocation10 + $0x30] sm:$0xff]  ;;  %v4850_v22 = vld [vmem:[#allocation10 + $0x38] sm:$0xff] }
0x1ef0   :  { %4694 = vmatmul.mubr.f32.gmra.mrb[54].mxu0 %v4474_v23  ;;  %5681 = vmatprep.mubr.msk.f32.mxu1 %vm6533_vm0, %v6532_v4  ;;  %v6201_v23 = vpack.c.bf16 %v4850_v22, %v4849_v63 }
0x1ef1   :  { %5716 = vmatprep.mubr.msk.f32.mxu0 %vm6533_vm0, %v6532_v4  ;;  %6172 = vmatpush3.bf16.msra.mxu1 %v6171_v47 }
0x1ef2   :  { %6173 = vmatprep.subr.bf16.mxu1 %v6537_v54  ;;  %6193 = vmatpush3.bf16.msra.mxu0 %v6192_v60 }
0x1ef3   :  { %6194 = vmatprep.subr.bf16.mxu0 %v6537_v54 }
0x1ef5   :  { %6175 = vmatpush3.bf16.msra.mxu1 %v6174_v51  ;;  %v5026_v51 = vld [vmem:[%s7361_s19] ss:$0 sm:$0xff] }
0x1ef6   :  { %6176 = vmatprep.subr.bf16.mxu1 %v6537_v54  ;;  %6196 = vmatpush3.bf16.msra.mxu0 %v6195_v12 }
0x1ef7   :  { %6197 = vmatprep.subr.bf16.mxu0 %v6537_v54 }
0x1ef9   :  { %6178 = vmatpush3.bf16.msra.mxu1 %v6177_v36 }
0x1efa   :  { %6179 = vmatprep.subr.bf16.mxu1 %v6537_v54  ;;  %6199 = vmatpush3.bf16.msra.mxu0 %v6198_v18 }
0x1efb   :  { %6200 = vmatprep.subr.bf16.mxu0 %v6537_v54 }
0x1efd   :  { %6181 = vmatpush3.bf16.msra.mxu1 %v6180_v14 }
0x1efe   :  { %6182 = vmatprep.subr.bf16.mxu1 %v6537_v54  ;;  %6202 = vmatpush3.bf16.msra.mxu0 %v6201_v23 }
0x1eff   :  { %6203 = vmatprep.subr.bf16.mxu0 %v6537_v54 }
0x1f01   :  { %6184 = vmatpush3.bf16.msra.mxu1 %v6183_v2 }
0x1f02   :  { %6185 = vmatprep.subr.bf16.mxu1 %v6537_v54 }
0x1f05   :  { %6187 = vmatpush3.bf16.msra.mxu1 %v6186_v5 }
0x1f06   :  { %6188 = vmatprep.subr.bf16.mxu1 %v6537_v54 }
0x1f09   :  { %6190 = vmatpush3.bf16.msra.mxu1 %v6189_v7 }
0x1fbe   :  { %v5271_v50 = vpop.f32.mrb[52].mxu1 }
0x1fbf   :  { %v5309_v25 = vpop.f32.mrb[52].mxu0  ;;  %v5272_v26 = vpop.f32.mrb[53].mxu1 }
0x1fc0   :  { %v5273_v27 = vadd.f32 %v5272_v26, %v5271_v50  ;;  %v5310_v28 = vpop.f32.mrb[53].mxu0  ;;  %v4851_v50 = vld [vmem:[#allocation10 + $0x40] sm:$0xff] }
0x1fc1   :  { %v5311_v61 = vadd.f32 %v5310_v28, %v5309_v25  ;;  %v4852_v25 = vld [vmem:[#allocation10 + $0x48] sm:$0xff] }
0x1fc2   :  { %v4616_v30 = vadd.f32 %v5273_v27, %v5020_v6  ;;  %v5274_v15 = vpop.f32.mrb[54].mxu1 }
0x1fc3   :  { %v5312_v17 = vpop.f32.mrb[54].mxu0  ;;  %v5275_v19 = vpop.f32.mrb[55].mxu1 }
0x1fc4   :  { %v4691_v31 = vadd.f32 %v5311_v61, %v4616_v30  ;;  %v5276_v34 = vadd.f32 %v5275_v19, %v5274_v15  ;;  %v5313_v46 = vpop.f32.mrb[55].mxu0 }
0x1fc5   :  { %v5314_v35 = vadd.f32 %v5313_v46, %v5312_v17 }
0x1fc6   :  { %v4699_v4 = vadd.f32 %v4691_v31, %v7216_v53  ;;  %v4621_v38 = vadd.f32 %v5276_v34, %v5020_v6  ;;  %v6204_v6 = vpack.c.bf16 %v4852_v25, %v4851_v50  ;;  %v5023_v34 = vld [vmem:[%s7356_s14 + $0x1] ss:$0 sm:$0xff] }
0x1fc8   :  { %4705 = vadd.xlane.f32.xlu1 %v4699_v4  ;;  %v4696_v42 = vadd.f32 %v5314_v35, %v4621_v38  ;;  %6205 = vmatpush3.bf16.msra.mxu0 %v6204_v6  ;;  %v5024_v38 = vld [vmem:[%s7357_s15 + $0x1] ss:$0 sm:$0xff] }
0x1fc9   :  { %6206 = vmatprep.subr.bf16.mxu0 %v6537_v54 }
0x1fca   :  { %v4700_v39 = vadd.f32 %v4696_v42, %v7223_v16 }
0x1fcc   :  { %4707 = vadd.xlane.f32.xlu0 %v4700_v39 }
0x2055   :  { %v4706_v53 = vpop.xlane.xlu1 %4705 }
0x2056   :  { %v4709_v16 = vmul.f32 0.0078125, %v4706_v53  ;;  %v4854_v53 = vld [vmem:[#allocation10 + $0x58] sm:$0xff] }
0x2058   :  { %v7253_v41 = vsub.f32 %v4699_v4, %v4709_v16  ;;  %v6207_v16 = vpack.c.bf16 %v4854_v53, %v4853_v32 }
0x2059   :  { %v4708_v24 = vpop.xlane.xlu0 %4707 }
0x205a   :  { %v4713_v29 = vmul.f32 %v7253_v41, %v7253_v41  ;;  %v4710_v58 = vmul.f32 0.0078125, %v4708_v24  ;;  %v4856_v24 = vld [vmem:[#allocation10 + $0x68] sm:$0xff]  ;;  %6208 = vmatpush3.bf16.msra.mxu0 %v6207_v16 }
0x205b   :  { %6209 = vmatprep.subr.bf16.mxu0 %v6537_v54 }
0x205c   :  { %4715 = vadd.xlane.f32.xlu1 %v4713_v29  ;;  %v7257_v44 = vsub.f32 %v4700_v39, %v4710_v58  ;;  %v4857_v58 = vld [vmem:[#allocation10 + $0x70] sm:$0xff] }
0x205e   :  { %v4714_v48 = vmul.f32 %v7257_v44, %v7257_v44 }
0x2060   :  { %4717 = vadd.xlane.f32.xlu0 %v4714_v48 }
0x20e9   :  { %v4716_v26 = vpop.xlane.xlu1 %4715 }
0x20ea   :  { %v4719_v27 = vmul.f32 0.0078125, %v4716_v26 }
0x20ec   :  { %v4721_v28 = vadd.f32 1e-12, %v4719_v27 }
0x20ed   :  { %v4718_v61 = vpop.xlane.xlu0 %4717 }
0x20ee   :  { %6375 = vrsqrt.f32 %v4721_v28  ;;  %v4720_v30 = vmul.f32 0.0078125, %v4718_v61 }
0x20f0   :  { %v4722_v15 = vadd.f32 1e-12, %v4720_v30 }
0x20f2   :  { %6377 = vrsqrt.f32 %v4722_v15 }
0x20f8   :  { %v6376_v31 = vpop.eup %6375 }
0x20f9   :  { %v4725_v17 = vmul.f32 %v6376_v31, %v7253_v41  ;;  %v4855_v41 = vld [vmem:[#allocation10 + $0x60] sm:$0xff] }
0x20fa   :  { %v6210_v29 = vpack.c.bf16 %v4856_v24, %v4855_v41 }
0x20fb   :  { %v4733_v35 = vmul.f32 %v5023_v34, %v4725_v17 }
0x20fc   :  { %v6378_v19 = vpop.eup %6377  ;;  %6211 = vmatpush3.bf16.msra.mxu0 %v6210_v29 }
0x20fd   :  { %v4726_v46 = vmul.f32 %v6378_v19, %v7257_v44  ;;  %v4741_v39 = vadd.f32 %v5024_v38, %v4733_v35  ;;  %v4858_v44 = vld [vmem:[#allocation10 + $0x78] sm:$0xff]  ;;  %6212 = vmatprep.subr.bf16.mxu0 %v6537_v54 }
0x20fe   :  { %v6213_v48 = vpack.c.bf16 %v4858_v44, %v4857_v58 }
0x20ff   :  { %v4734_v4 = vmul.f32 %v5023_v34, %v4726_v46 }
0x2100   :  { %6214 = vmatpush3.bf16.msra.mxu0 %v6213_v48 }
0x2101   :  { %v4742_v42 = vadd.f32 %v5024_v38, %v4734_v4 }
0x2103   :  { %v4768_v40 = vrot.slane %v4742_v42, 7 }
0x2105   :  { %v4770_v37 = vsel %vm4769_vm5, %v4768_v40, %v4741_v39 }
0x2106   :  { %5682 = vmatmul.mubr.f32.vlgmr.msra.gmra.mrb[56].mxu1 %v4770_v37 }
0x21d9   :  { %v4838_v33 = vpop.f32.mrb[56].mxu1 }
0x21da   :  { %v4839_v47 = vadd.f32 %v5025_v45, %v4838_v33  ;;  %v5683_v43 = vpop.f32.mrb[57].mxu1 }
0x21dc   :  { %6379 = vtanh.f32 %v4839_v47 }
0x21e6   :  { %v6380_v52 = vpop.eup %6379 }
0x21e7   :  { %5717 = vmatmul.mubr.f32.vlgmr.msra.gmra.mrb[56].mxu0 %v6380_v52 }
0x22ba   :  { %v4932_v56 = vpop.f32.mrb[56].mxu0 }
0x22bb   :  { %v4933_v57 = vadd.f32 %v5026_v51, %v4932_v56  ;;  %v5718_v54 = vpop.f32.mrb[57].mxu0 }
0x22bd   :  { %4936 = vst [vmem:[#allocation11] sm:$0x3] %v4933_v57 }
0x22be   :  { %6502 = shalt.err (!%p6499_p2)
}
0x22bf   :  { %s7377_s25 = sld [smem:[#allocation21_spill]] }
0x22c5   :  { %s6503_s5 = scalar_lea.hbm %s7377_s25, 32 }
0x22c6   :  { %p6504_p3 = scmp.ne.s32.totalorder %s7377_s25, %s6503_s5  ;;  %p6507_p4 = scmp.lt.u32.totalorder %s6503_s5, %s7377_s25 }
0x22c8   :  { %p6509_p5 = pnand %p6507_p4, %p6504_p3 }
0x22ca   :  { %6512 = shalt.err (!%p6509_p5)
}
0x22cb   :  { %4946 = dma.vmem_to_hbm [thread:$0]  %s4944_s20, 32, %s7377_s25, [#allocation4]  }
0x22cc   :  { %6519 = dma.done.wait [#allocation4], 32  }
0x22cd   :  { %6520 = vsyncadd [#allocation4], 4294967264 }
0x22ce   :  { %4950 = vsyncpa [#allocation3], 1 }
0x22cf   :  { %4951 = vsyncpa [#allocation6], 1 }
0x22d0   :  { %4952 = vsyncpa [#allocation9], 1 }
0x22d1   :  { %4953 = vsyncpa [#allocation4], 1 }

</bundles_post_ra>
